<compile_context>
chip_gen: v5e
topology: v5e:2x2
jax: 0.10.0
libtpu: 0.0.40
codegen_flags: <defaults>
</compile_context>

<pallas_src>
import jax
import jax.numpy as jnp
import numpy as np
from jax.experimental import pallas as pl
from jax.experimental.pallas import tpu as pltpu

# ----------------------------- small demo configuration ---------------------------
B = 2                 # batch
CHANNELS = 8          # coupling channels (must be even)
HALF = CHANNELS // 2
HIDDEN = 128          # hidden_channels: multiple of 128 -> lane-dense WaveNet compute
KSIZE = 3             # kernel_size
DRATE = 2             # dilation_rate
NLAYERS = 3           # n_layers (WaveNet depth inside each coupling layer)
NFLOWS = 2            # n_flows (module default is 4; kept small for the demo)
L = 64                # sequence length (multiple of 8 -> sublane aligned)

PAD_K = (KSIZE - 1) // 2
DILATIONS = tuple(DRATE ** i for i in range(NLAYERS))
MAXPAD = PAD_K * max(DILATIONS)                  # halo rows needed by largest dilation
MAXPAD_A = max(8, ((MAXPAD + 7) // 8) * 8)       # halo rounded up to 8 sublanes


# ----------------------------------- kernel ---------------------------------------
def _coupling_block_kernel(x_ref, mask_ref,
                           pre_w, in_w, rs_w, rs_last_w, post_w,
                           pre_b, in_b, rs_b, rs_last_b, post_b,
                           o_ref, pad_ref):
    # Zero ONLY the two halo bands of the padded conv staging buffer once per grid
    # step; every conv overwrites the L-row center, the halos are never written.
    pad_ref[:MAXPAD_A, :] = jnp.zeros((MAXPAD_A, HIDDEN), jnp.float32)
    pad_ref[MAXPAD_A + L:, :] = jnp.zeros((MAXPAD_A, HIDDEN), jnp.float32)

    mask = mask_ref[0]                    # (L, 1) f32
    x = x_ref[0]                          # (L, CHANNELS) f32
    # Carried halves.  The per-flow channel Flip is absorbed into the wrapper's
    # weight packing, so the kernel never permutes channels.
    p = x[:, :HALF]
    q = x[:, HALF:]

    def gated_dilated_conv(h, f, i, dil):
        # "same"-padded dilated conv as ONE fused matmul over all K taps: write only
        # the (8-row aligned) L center rows of the zero-halo buffer, gather the K
        # shifted views and contract against the pre-stacked (K*HIDDEN, 2*HIDDEN)
        # bf16 weight.
        pad_ref[MAXPAD_A:MAXPAD_A + L, :] = h
        taps = []
        for k in range(KSIZE):
            start = MAXPAD_A + (k - PAD_K) * dil          # static tap offset
            taps.append(pad_ref[start:start + L, :])
        xcat = jnp.concatenate(taps, axis=1).astype(jnp.bfloat16)   # (L, K*HIDDEN)
        y = jnp.dot(xcat, in_w[f, i], preferred_element_type=jnp.float32)
        y = y + in_b[f, i]                                # bias once, after the matmul
        # gated tanh/sigmoid unit; sigmoid(v) = 0.5*tanh(0.5*v)+0.5 runs on the EUP.
        return jnp.tanh(y[:, :HIDDEN]) * (0.5 * jnp.tanh(0.5 * y[:, HIDDEN:]) + 0.5)

    for f in range(NFLOWS):
        # ----------- ResidualCouplingLayer (mean_only=True, forward) ---------------
        h = jnp.dot(p.astype(jnp.bfloat16), pre_w[f],
                    preferred_element_type=jnp.float32) + pre_b[f]
        h = h * mask
        skip = jnp.zeros((L, HIDDEN), jnp.float32)
        for i in range(NLAYERS):
            acts = gated_dilated_conv(h, f, i, DILATIONS[i]).astype(jnp.bfloat16)
            if i < NLAYERS - 1:
                rs = jnp.dot(acts, rs_w[f, i],
                             preferred_element_type=jnp.float32) + rs_b[f, i]
                h = (h + rs[:, :HIDDEN]) * mask           # residual half
                skip = skip + rs[:, HIDDEN:]              # skip half
            else:
                # last layer is skip-only: dedicated (HIDDEN, HIDDEN) weight
                skip = skip + jnp.dot(acts, rs_last_w[f],
                                      preferred_element_type=jnp.float32) + rs_last_b[f]
        skip = skip * mask
        m = jnp.dot(skip.astype(jnp.bfloat16), post_w[f],
                    preferred_element_type=jnp.float32) + post_b[f]
        m = m * mask
        # mean_only => logs == 0 => exp(logs) == 1.  Flip is absorbed into the weight
        # packing, so the flow reduces to a transform + swap of the carried halves.
        p, q = m + q * mask, p

    o_ref[0] = jnp.concatenate([p, q], axis=1)


# ----------------------------------- wrapper --------------------------------------
def residual_coupling_block_forward(x_ncl, x_mask, params):
    """x_ncl: (B, CHANNELS, L) f32.  x_mask: (B, 1, L) f32.  params: torch-layout f32
    arrays (see __main__).  Returns (B, CHANNELS, L) f32."""
    x_blc = jnp.transpose(x_ncl, (0, 2, 1)).astype(jnp.float32)       # (B, L, C)
    mask_bl1 = jnp.transpose(x_mask, (0, 2, 1)).astype(jnp.float32)   # (B, L, 1)

    # ---- pack weights so every conv is `activations @ W`; K taps stacked along the
    #      contraction dim; Flip absorbed (odd flows: reverse pre input channels and
    #      post output channels); cast to bf16 (halves weight VMEM + HBM bytes) ------
    pre_w = jnp.transpose(params["pre_w"], (0, 2, 1))                 # (F, HALF, H)
    pre_w = jnp.stack([pre_w[f, ::-1, :] if f % 2 else pre_w[f]
                       for f in range(NFLOWS)])

    post_w = jnp.transpose(params["post_w"], (0, 2, 1))               # (F, H, HALF)
    post_w = jnp.stack([post_w[f, :, ::-1] if f % 2 else post_w[f]
                        for f in range(NFLOWS)])
    post_b = jnp.stack([params["post_b"][f, ::-1] if f % 2 else params["post_b"][f]
                        for f in range(NFLOWS)]).reshape(NFLOWS, 1, HALF)

    in_w = jnp.transpose(params["in_w"], (0, 1, 4, 3, 2)).reshape(
        NFLOWS, NLAYERS, KSIZE * HIDDEN, 2 * HIDDEN)                  # (F, NL, K*H, 2H)

    rs_w = jnp.transpose(params["rs_w"][:, :NLAYERS - 1], (0, 1, 3, 2))   # (F, NL-1, H, 2H)
    rs_last_w = jnp.transpose(params["rs_w"][:, NLAYERS - 1, :HIDDEN, :],
                              (0, 2, 1))                              # (F, H, H)

    pre_b = params["pre_b"].reshape(NFLOWS, 1, HIDDEN)
    in_b = params["in_b"].reshape(NFLOWS, NLAYERS, 1, 2 * HIDDEN)
    rs_b = params["rs_b"][:, :NLAYERS - 1].reshape(NFLOWS, NLAYERS - 1, 1, 2 * HIDDEN)
    rs_last_b = params["rs_b"][:, NLAYERS - 1, :HIDDEN].reshape(NFLOWS, 1, HIDDEN)

    pre_w, in_w, rs_w, rs_last_w, post_w = (
        a.astype(jnp.bfloat16) for a in (pre_w, in_w, rs_w, rs_last_w, post_w))

    out = pl.pallas_call(
        _coupling_block_kernel,
        out_shape=jax.ShapeDtypeStruct((B, L, CHANNELS), jnp.float32),
        grid_spec=pltpu.PrefetchScalarGridSpec(
            num_scalar_prefetch=0,
            grid=(B,),
            in_specs=[
                pl.BlockSpec((1, L, CHANNELS), lambda b: (b, 0, 0)),         # x
                pl.BlockSpec((1, L, 1), lambda b: (b, 0, 0)),                # mask
                # weights/biases: constant block index -> fetched once, kept resident
                pl.BlockSpec((NFLOWS, HALF, HIDDEN), lambda b: (0, 0, 0)),
                pl.BlockSpec((NFLOWS, NLAYERS, KSIZE * HIDDEN, 2 * HIDDEN),
                             lambda b: (0, 0, 0, 0)),
                pl.BlockSpec((NFLOWS, NLAYERS - 1, HIDDEN, 2 * HIDDEN),
                             lambda b: (0, 0, 0, 0)),
                pl.BlockSpec((NFLOWS, HIDDEN, HIDDEN), lambda b: (0, 0, 0)),
                pl.BlockSpec((NFLOWS, HIDDEN, HALF), lambda b: (0, 0, 0)),
                pl.BlockSpec((NFLOWS, 1, HIDDEN), lambda b: (0, 0, 0)),
                pl.BlockSpec((NFLOWS, NLAYERS, 1, 2 * HIDDEN),
                             lambda b: (0, 0, 0, 0)),
                pl.BlockSpec((NFLOWS, NLAYERS - 1, 1, 2 * HIDDEN),
                             lambda b: (0, 0, 0, 0)),
                pl.BlockSpec((NFLOWS, 1, HIDDEN), lambda b: (0, 0, 0)),
                pl.BlockSpec((NFLOWS, 1, HALF), lambda b: (0, 0, 0)),
            ],
            out_specs=pl.BlockSpec((1, L, CHANNELS), lambda b: (b, 0, 0)),
            scratch_shapes=[
                pltpu.VMEM((L + 2 * MAXPAD_A, HIDDEN), jnp.float32),   # conv pad buf
            ],
        ),
        compiler_params=pltpu.CompilerParams(
            dimension_semantics=("parallel",),
            vmem_limit_bytes=32 * 1024 * 1024,   # explicit budget; demo uses a few MiB
        ),
    )(x_blc, mask_bl1, pre_w, in_w, rs_w, rs_last_w, post_w,
      pre_b, in_b, rs_b, rs_last_b, post_b)

    if NFLOWS % 2 == 1:
        # odd flow count: undo the carried-representation channel reversal (wrapper side)
        out = jnp.concatenate([out[..., :HALF][..., ::-1],
                               out[..., HALF:][..., ::-1]], axis=-1)
    return jnp.transpose(out, (0, 2, 1))         # back to (B, C, L)


# ----------------- pure-JAX reference (mirrors the PyTorch forward, NCL) -----------
def _ref_forward(x, x_mask, params):
    hp = jax.lax.Precision.HIGHEST
    for f in range(NFLOWS):
        x0, x1 = x[:, :HALF, :], x[:, HALF:, :]
        h = jnp.einsum("oi,bil->bol", params["pre_w"][f], x0, precision=hp)
        h = (h + params["pre_b"][f][None, :, None]) * x_mask
        skip = jnp.zeros_like(h)
        for i in range(NLAYERS):
            d = DILATIONS[i]
            pad = (KSIZE * d - d) // 2
            x_in = jax.lax.conv_general_dilated(
                h, params["in_w"][f, i], window_strides=(1,), padding=[(pad, pad)],
                rhs_dilation=(d,), dimension_numbers=("NCH", "OIH", "NCH"),
                precision=hp)
            x_in = x_in + params["in_b"][f, i][None, :, None]
            acts = jnp.tanh(x_in[:, :HIDDEN, :]) * jax.nn.sigmoid(x_in[:, HIDDEN:, :])
            if i < NLAYERS - 1:
                rs = jnp.einsum("oi,bil->bol", params["rs_w"][f, i], acts, precision=hp)
                rs = rs + params["rs_b"][f, i][None, :, None]
                h = (h + rs[:, :HIDDEN, :]) * x_mask
                skip = skip + rs[:, HIDDEN:, :]
            else:
                rs = jnp.einsum("oi,bil->bol", params["rs_w"][f, i, :HIDDEN], acts,
                                precision=hp)
                skip = skip + rs + params["rs_b"][f, i, :HIDDEN][None, :, None]
        skip = skip * x_mask
        m = jnp.einsum("oi,bil->bol", params["post_w"][f], skip, precision=hp)
        m = (m + params["post_b"][f][None, :, None]) * x_mask
        x1 = m + x1 * x_mask                      # mean_only => logs = 0
        x = jnp.concatenate([x0, x1], axis=1)
        x = x[:, ::-1, :]                         # Flip over the channel dim
    return x


if __name__ == "__main__":
    key = jax.random.PRNGKey(0)
    keys = jax.random.split(key, 10)

    x = jax.random.normal(keys[0], (B, CHANNELS, L), jnp.float32)
    lengths = jnp.array([L, (3 * L) // 4], dtype=jnp.int32)
    x_mask = (jnp.arange(L)[None, :] < lengths[:, None]).astype(jnp.float32)[:, None, :]

    # Synthetic *effective* weights (weight_norm is a reparameterization; at init the
    # effective weight equals the raw weight).  torch zero-inits the `post` conv, which
    # would make every flow a pure channel flip; small random weights are used so the
    # coupling math is actually exercised.
    def rnd(k, shape, scale):
        return scale * jax.random.normal(k, shape, jnp.float32)

    params = {
        "pre_w":  rnd(keys[1], (NFLOWS, HIDDEN, HALF), 0.1),
        "pre_b":  rnd(keys[2], (NFLOWS, HIDDEN), 0.05),
        "in_w":   rnd(keys[3], (NFLOWS, NLAYERS, 2 * HIDDEN, HIDDEN, KSIZE), 0.1),
        "in_b":   rnd(keys[4], (NFLOWS, NLAYERS, 2 * HIDDEN), 0.05),
        "rs_w":   rnd(keys[5], (NFLOWS, NLAYERS, 2 * HIDDEN, HIDDEN), 0.1),
        "rs_b":   rnd(keys[6], (NFLOWS, NLAYERS, 2 * HIDDEN), 0.05),
        "post_w": rnd(keys[7], (NFLOWS, HALF, HIDDEN), 0.1),
        "post_b": rnd(keys[8], (NFLOWS, HALF), 0.05),
    }

    out = residual_coupling_block_forward(x, x_mask, params)
    out = jax.block_until_ready(out)

    ref = _ref_forward(x, x_mask, params)
    assert out.shape == x.shape
    np.testing.assert_allclose(np.asarray(out), np.asarray(ref), atol=3e-2, rtol=3e-2)
    print("KERNEL_OK")
</pallas_src>

<mosaic_0001>
module attributes {stable_mosaic.version = 11 : i64} {
  func.func @_coupling_block_kernel(%arg0: i32, %arg1: memref<1x64x8xf32, #tpu.memory_space<vmem>>, %arg2: memref<1x64x1xf32, #tpu.memory_space<vmem>>, %arg3: memref<2x4x128xbf16, #tpu.memory_space<vmem>>, %arg4: memref<2x3x384x256xbf16, #tpu.memory_space<vmem>>, %arg5: memref<2x2x128x256xbf16, #tpu.memory_space<vmem>>, %arg6: memref<2x128x128xbf16, #tpu.memory_space<vmem>>, %arg7: memref<2x128x4xbf16, #tpu.memory_space<vmem>>, %arg8: memref<2x1x128xf32, #tpu.memory_space<vmem>>, %arg9: memref<2x3x1x256xf32, #tpu.memory_space<vmem>>, %arg10: memref<2x2x1x256xf32, #tpu.memory_space<vmem>>, %arg11: memref<2x1x128xf32, #tpu.memory_space<vmem>>, %arg12: memref<2x1x4xf32, #tpu.memory_space<vmem>>, %arg13: memref<1x64x8xf32, #tpu.memory_space<vmem>>, %arg14: memref<80x128xf32, #tpu.memory_space<vmem>>) attributes {dimension_semantics = [#tpu.dimension_semantics<parallel>], iteration_bounds = array<i64: 2>, scalar_prefetch = 0 : i64, scratch_operands = 1 : i64, tpu.core_type = #tpu.core_type<tc>, window_params = [{transform_indices = @transform_0, window_bounds = array<i64: 1, 64, 8>}, {transform_indices = @transform_1, window_bounds = array<i64: 1, 64, 1>}, {pipeline_mode = #tpu.pipeline_mode<synchronous>, transform_indices = @transform_2, window_bounds = array<i64: 2, 4, 128>}, {pipeline_mode = #tpu.pipeline_mode<synchronous>, transform_indices = @transform_3, window_bounds = array<i64: 2, 3, 384, 256>}, {pipeline_mode = #tpu.pipeline_mode<synchronous>, transform_indices = @transform_4, window_bounds = array<i64: 2, 2, 128, 256>}, {pipeline_mode = #tpu.pipeline_mode<synchronous>, transform_indices = @transform_5, window_bounds = array<i64: 2, 128, 128>}, {pipeline_mode = #tpu.pipeline_mode<synchronous>, transform_indices = @transform_6, window_bounds = array<i64: 2, 128, 4>}, {pipeline_mode = #tpu.pipeline_mode<synchronous>, transform_indices = @transform_7, window_bounds = array<i64: 2, 1, 128>}, {pipeline_mode = #tpu.pipeline_mode<synchronous>, transform_indices = @transform_8, window_bounds = array<i64: 2, 3, 1, 256>}, {pipeline_mode = #tpu.pipeline_mode<synchronous>, transform_indices = @transform_9, window_bounds = array<i64: 2, 2, 1, 256>}, {pipeline_mode = #tpu.pipeline_mode<synchronous>, transform_indices = @transform_10, window_bounds = array<i64: 2, 1, 128>}, {pipeline_mode = #tpu.pipeline_mode<synchronous>, transform_indices = @transform_11, window_bounds = array<i64: 2, 1, 4>}, {transform_indices = @transform_12, window_bounds = array<i64: 1, 64, 8>}]} {
    %cst = arith.constant 0.000000e+00 : f32
    %0 = vector.broadcast %cst : f32 to vector<8x128xf32>
    %c0 = arith.constant 0 : index
    %c0_0 = arith.constant 0 : index
    %1 = vector.load %arg14[%c0, %c0_0] : memref<80x128xf32, #tpu.memory_space<vmem>>, vector<8x128xf32>
    tpu.vector_store %arg14[%c0, %c0_0], %0 {strides = array<i32>} : memref<80x128xf32, #tpu.memory_space<vmem>>, vector<8x128xf32>,
    %cst_1 = arith.constant 0.000000e+00 : f32
    %2 = vector.broadcast %cst_1 : f32 to vector<8x128xf32>
    %c72 = arith.constant 72 : index
    %c0_2 = arith.constant 0 : index
    %3 = vector.load %arg14[%c72, %c0_2] : memref<80x128xf32, #tpu.memory_space<vmem>>, vector<8x128xf32>
    tpu.vector_store %arg14[%c72, %c0_2], %2 {strides = array<i32>} : memref<80x128xf32, #tpu.memory_space<vmem>>, vector<8x128xf32>,
    %c0_3 = arith.constant 0 : index
    %c0_4 = arith.constant 0 : index
    %c0_5 = arith.constant 0 : index
    %4 = vector.load %arg2[%c0_3, %c0_4, %c0_5] : memref<1x64x1xf32, #tpu.memory_space<vmem>>, vector<1x64x1xf32>
    %5 = vector.shape_cast %4 : vector<1x64x1xf32> to vector<64x1xf32>
    %c0_6 = arith.constant 0 : index
    %c0_7 = arith.constant 0 : index
    %c0_8 = arith.constant 0 : index
    %6 = vector.load %arg1[%c0_6, %c0_7, %c0_8] : memref<1x64x8xf32, #tpu.memory_space<vmem>>, vector<1x64x8xf32>
    %7 = vector.shape_cast %6 : vector<1x64x8xf32> to vector<64x8xf32>
    %8 = vector.extract_strided_slice %7 {offsets = [0, 0], sizes = [64, 4], strides = [1, 1]} : vector<64x8xf32> to vector<64x4xf32>
    %9 = vector.extract_strided_slice %7 {offsets = [0, 4], sizes = [64, 4], strides = [1, 1]} : vector<64x8xf32> to vector<64x4xf32>
    %10 = arith.truncf %8 : vector<64x4xf32> to vector<64x4xbf16>
    %c0_9 = arith.constant 0 : index
    %c0_10 = arith.constant 0 : index
    %c0_11 = arith.constant 0 : index
    %11 = vector.load %arg3[%c0_9, %c0_10, %c0_11] : memref<2x4x128xbf16, #tpu.memory_space<vmem>>, vector<1x4x128xbf16>
    %12 = vector.shape_cast %11 : vector<1x4x128xbf16> to vector<4x128xbf16>
    %cst_12 = arith.constant dense<0.000000e+00> : vector<64x128xf32>
    %13 = tpu.matmul %10, %12, %cst_12 {dimension_numbers = #tpu.dot_dimension_numbers<[1], [0], [0], [1], [0, 0, 1, 1], [], []>} : vector<64x4xbf16>, vector<4x128xbf16>, vector<64x128xf32> -> vector<64x128xf32>
    %c0_13 = arith.constant 0 : index
    %c0_14 = arith.constant 0 : index
    %c0_15 = arith.constant 0 : index
    %14 = vector.load %arg8[%c0_13, %c0_14, %c0_15] : memref<2x1x128xf32, #tpu.memory_space<vmem>>, vector<1x1x128xf32>
    %15 = vector.shape_cast %14 : vector<1x1x128xf32> to vector<1x128xf32>
    %16 = vector.broadcast %15 : vector<1x128xf32> to vector<64x128xf32>
    %17 = arith.addf %13, %16 : vector<64x128xf32>
    %18 = vector.broadcast %5 : vector<64x1xf32> to vector<64x128xf32>
    %19 = arith.mulf %17, %18 : vector<64x128xf32>
    %cst_16 = arith.constant 0.000000e+00 : f32
    %20 = vector.broadcast %cst_16 : f32 to vector<64x128xf32>
    %c8 = arith.constant 8 : index
    %c0_17 = arith.constant 0 : index
    %21 = vector.load %arg14[%c8, %c0_17] : memref<80x128xf32, #tpu.memory_space<vmem>>, vector<64x128xf32>
    tpu.vector_store %arg14[%c8, %c0_17], %19 {strides = array<i32>} : memref<80x128xf32, #tpu.memory_space<vmem>>, vector<64x128xf32>,
    %c7 = arith.constant 7 : index
    %c0_18 = arith.constant 0 : index
    %22 = vector.load %arg14[%c7, %c0_18] : memref<80x128xf32, #tpu.memory_space<vmem>>, vector<64x128xf32>
    %c8_19 = arith.constant 8 : index
    %c0_20 = arith.constant 0 : index
    %23 = vector.load %arg14[%c8_19, %c0_20] : memref<80x128xf32, #tpu.memory_space<vmem>>, vector<64x128xf32>
    %c9 = arith.constant 9 : index
    %c0_21 = arith.constant 0 : index
    %24 = vector.load %arg14[%c9, %c0_21] : memref<80x128xf32, #tpu.memory_space<vmem>>, vector<64x128xf32>
    %25 = tpu.concatenate %22, %23, %24 in 1 : vector<64x128xf32>, vector<64x128xf32>, vector<64x128xf32> -> vector<64x384xf32>
    %26 = arith.truncf %25 : vector<64x384xf32> to vector<64x384xbf16>
    %c0_22 = arith.constant 0 : index
    %c0_23 = arith.constant 0 : index
    %c0_24 = arith.constant 0 : index
    %c0_25 = arith.constant 0 : index
    %27 = vector.load %arg4[%c0_22, %c0_23, %c0_24, %c0_25] : memref<2x3x384x256xbf16, #tpu.memory_space<vmem>>, vector<1x1x384x256xbf16>
    %28 = vector.shape_cast %27 : vector<1x1x384x256xbf16> to vector<384x256xbf16>
    %cst_26 = arith.constant dense<0.000000e+00> : vector<64x256xf32>
    %29 = tpu.matmul %26, %28, %cst_26 {dimension_numbers = #tpu.dot_dimension_numbers<[1], [0], [0], [1], [0, 0, 1, 1], [], []>} : vector<64x384xbf16>, vector<384x256xbf16>, vector<64x256xf32> -> vector<64x256xf32>
    %c0_27 = arith.constant 0 : index
    %c0_28 = arith.constant 0 : index
    %c0_29 = arith.constant 0 : index
    %c0_30 = arith.constant 0 : index
    %30 = vector.load %arg9[%c0_27, %c0_28, %c0_29, %c0_30] : memref<2x3x1x256xf32, #tpu.memory_space<vmem>>, vector<1x1x1x256xf32>
    %31 = vector.shape_cast %30 : vector<1x1x1x256xf32> to vector<1x256xf32>
    %32 = vector.broadcast %31 : vector<1x256xf32> to vector<64x256xf32>
    %33 = arith.addf %29, %32 : vector<64x256xf32>
    %34 = vector.extract_strided_slice %33 {offsets = [0, 0], sizes = [64, 128], strides = [1, 1]} : vector<64x256xf32> to vector<64x128xf32>
    %35 = math.tanh %34 : vector<64x128xf32>
    %36 = vector.extract_strided_slice %33 {offsets = [0, 128], sizes = [64, 128], strides = [1, 1]} : vector<64x256xf32> to vector<64x128xf32>
    %cst_31 = arith.constant 5.000000e-01 : f32
    %37 = vector.broadcast %cst_31 : f32 to vector<64x128xf32>
    %38 = arith.mulf %37, %36 : vector<64x128xf32>
    %39 = math.tanh %38 : vector<64x128xf32>
    %cst_32 = arith.constant 5.000000e-01 : f32
    %40 = vector.broadcast %cst_32 : f32 to vector<64x128xf32>
    %41 = arith.mulf %40, %39 : vector<64x128xf32>
    %cst_33 = arith.constant 5.000000e-01 : f32
    %42 = vector.broadcast %cst_33 : f32 to vector<64x128xf32>
    %43 = arith.addf %41, %42 : vector<64x128xf32>
    %44 = arith.mulf %35, %43 : vector<64x128xf32>
    %45 = arith.truncf %44 : vector<64x128xf32> to vector<64x128xbf16>
    %c0_34 = arith.constant 0 : index
    %c0_35 = arith.constant 0 : index
    %c0_36 = arith.constant 0 : index
    %c0_37 = arith.constant 0 : index
    %46 = vector.load %arg5[%c0_34, %c0_35, %c0_36, %c0_37] : memref<2x2x128x256xbf16, #tpu.memory_space<vmem>>, vector<1x1x128x256xbf16>
    %47 = vector.shape_cast %46 : vector<1x1x128x256xbf16> to vector<128x256xbf16>
    %cst_38 = arith.constant dense<0.000000e+00> : vector<64x256xf32>
    %48 = tpu.matmul %45, %47, %cst_38 {dimension_numbers = #tpu.dot_dimension_numbers<[1], [0], [0], [1], [0, 0, 1, 1], [], []>} : vector<64x128xbf16>, vector<128x256xbf16>, vector<64x256xf32> -> vector<64x256xf32>
    %c0_39 = arith.constant 0 : index
    %c0_40 = arith.constant 0 : index
    %c0_41 = arith.constant 0 : index
    %c0_42 = arith.constant 0 : index
    %49 = vector.load %arg10[%c0_39, %c0_40, %c0_41, %c0_42] : memref<2x2x1x256xf32, #tpu.memory_space<vmem>>, vector<1x1x1x256xf32>
    %50 = vector.shape_cast %49 : vector<1x1x1x256xf32> to vector<1x256xf32>
    %51 = vector.broadcast %50 : vector<1x256xf32> to vector<64x256xf32>
    %52 = arith.addf %48, %51 : vector<64x256xf32>
    %53 = vector.extract_strided_slice %52 {offsets = [0, 0], sizes = [64, 128], strides = [1, 1]} : vector<64x256xf32> to vector<64x128xf32>
    %54 = arith.addf %19, %53 : vector<64x128xf32>
    %55 = vector.broadcast %5 : vector<64x1xf32> to vector<64x128xf32>
    %56 = arith.mulf %54, %55 : vector<64x128xf32>
    %57 = vector.extract_strided_slice %52 {offsets = [0, 128], sizes = [64, 128], strides = [1, 1]} : vector<64x256xf32> to vector<64x128xf32>
    %58 = arith.addf %20, %57 : vector<64x128xf32>
    %c8_43 = arith.constant 8 : index
    %c0_44 = arith.constant 0 : index
    %59 = vector.load %arg14[%c8_43, %c0_44] : memref<80x128xf32, #tpu.memory_space<vmem>>, vector<64x128xf32>
    tpu.vector_store %arg14[%c8_43, %c0_44], %56 {strides = array<i32>} : memref<80x128xf32, #tpu.memory_space<vmem>>, vector<64x128xf32>,
    %c6 = arith.constant 6 : index
    %c0_45 = arith.constant 0 : index
    %60 = vector.load %arg14[%c6, %c0_45] : memref<80x128xf32, #tpu.memory_space<vmem>>, vector<64x128xf32>
    %c8_46 = arith.constant 8 : index
    %c0_47 = arith.constant 0 : index
    %61 = vector.load %arg14[%c8_46, %c0_47] : memref<80x128xf32, #tpu.memory_space<vmem>>, vector<64x128xf32>
    %c10 = arith.constant 10 : index
    %c0_48 = arith.constant 0 : index
    %62 = vector.load %arg14[%c10, %c0_48] : memref<80x128xf32, #tpu.memory_space<vmem>>, vector<64x128xf32>
    %63 = tpu.concatenate %60, %61, %62 in 1 : vector<64x128xf32>, vector<64x128xf32>, vector<64x128xf32> -> vector<64x384xf32>
    %64 = arith.truncf %63 : vector<64x384xf32> to vector<64x384xbf16>
    %c0_49 = arith.constant 0 : index
    %c1 = arith.constant 1 : index
    %c0_50 = arith.constant 0 : index
    %c0_51 = arith.constant 0 : index
    %65 = vector.load %arg4[%c0_49, %c1, %c0_50, %c0_51] : memref<2x3x384x256xbf16, #tpu.memory_space<vmem>>, vector<1x1x384x256xbf16>
    %66 = vector.shape_cast %65 : vector<1x1x384x256xbf16> to vector<384x256xbf16>
    %cst_52 = arith.constant dense<0.000000e+00> : vector<64x256xf32>
    %67 = tpu.matmul %64, %66, %cst_52 {dimension_numbers = #tpu.dot_dimension_numbers<[1], [0], [0], [1], [0, 0, 1, 1], [], []>} : vector<64x384xbf16>, vector<384x256xbf16>, vector<64x256xf32> -> vector<64x256xf32>
    %c0_53 = arith.constant 0 : index
    %c1_54 = arith.constant 1 : index
    %c0_55 = arith.constant 0 : index
    %c0_56 = arith.constant 0 : index
    %68 = vector.load %arg9[%c0_53, %c1_54, %c0_55, %c0_56] : memref<2x3x1x256xf32, #tpu.memory_space<vmem>>, vector<1x1x1x256xf32>
    %69 = vector.shape_cast %68 : vector<1x1x1x256xf32> to vector<1x256xf32>
    %70 = vector.broadcast %69 : vector<1x256xf32> to vector<64x256xf32>
    %71 = arith.addf %67, %70 : vector<64x256xf32>
    %72 = vector.extract_strided_slice %71 {offsets = [0, 0], sizes = [64, 128], strides = [1, 1]} : vector<64x256xf32> to vector<64x128xf32>
    %73 = math.tanh %72 : vector<64x128xf32>
    %74 = vector.extract_strided_slice %71 {offsets = [0, 128], sizes = [64, 128], strides = [1, 1]} : vector<64x256xf32> to vector<64x128xf32>
    %cst_57 = arith.constant 5.000000e-01 : f32
    %75 = vector.broadcast %cst_57 : f32 to vector<64x128xf32>
    %76 = arith.mulf %75, %74 : vector<64x128xf32>
    %77 = math.tanh %76 : vector<64x128xf32>
    %cst_58 = arith.constant 5.000000e-01 : f32
    %78 = vector.broadcast %cst_58 : f32 to vector<64x128xf32>
    %79 = arith.mulf %78, %77 : vector<64x128xf32>
    %cst_59 = arith.constant 5.000000e-01 : f32
    %80 = vector.broadcast %cst_59 : f32 to vector<64x128xf32>
    %81 = arith.addf %79, %80 : vector<64x128xf32>
    %82 = arith.mulf %73, %81 : vector<64x128xf32>
    %83 = arith.truncf %82 : vector<64x128xf32> to vector<64x128xbf16>
    %c0_60 = arith.constant 0 : index
    %c1_61 = arith.constant 1 : index
    %c0_62 = arith.constant 0 : index
    %c0_63 = arith.constant 0 : index
    %84 = vector.load %arg5[%c0_60, %c1_61, %c0_62, %c0_63] : memref<2x2x128x256xbf16, #tpu.memory_space<vmem>>, vector<1x1x128x256xbf16>
    %85 = vector.shape_cast %84 : vector<1x1x128x256xbf16> to vector<128x256xbf16>
    %cst_64 = arith.constant dense<0.000000e+00> : vector<64x256xf32>
    %86 = tpu.matmul %83, %85, %cst_64 {dimension_numbers = #tpu.dot_dimension_numbers<[1], [0], [0], [1], [0, 0, 1, 1], [], []>} : vector<64x128xbf16>, vector<128x256xbf16>, vector<64x256xf32> -> vector<64x256xf32>
    %c0_65 = arith.constant 0 : index
    %c1_66 = arith.constant 1 : index
    %c0_67 = arith.constant 0 : index
    %c0_68 = arith.constant 0 : index
    %87 = vector.load %arg10[%c0_65, %c1_66, %c0_67, %c0_68] : memref<2x2x1x256xf32, #tpu.memory_space<vmem>>, vector<1x1x1x256xf32>
    %88 = vector.shape_cast %87 : vector<1x1x1x256xf32> to vector<1x256xf32>
    %89 = vector.broadcast %88 : vector<1x256xf32> to vector<64x256xf32>
    %90 = arith.addf %86, %89 : vector<64x256xf32>
    %91 = vector.extract_strided_slice %90 {offsets = [0, 0], sizes = [64, 128], strides = [1, 1]} : vector<64x256xf32> to vector<64x128xf32>
    %92 = arith.addf %56, %91 : vector<64x128xf32>
    %93 = vector.broadcast %5 : vector<64x1xf32> to vector<64x128xf32>
    %94 = arith.mulf %92, %93 : vector<64x128xf32>
    %95 = vector.extract_strided_slice %90 {offsets = [0, 128], sizes = [64, 128], strides = [1, 1]} : vector<64x256xf32> to vector<64x128xf32>
    %96 = arith.addf %58, %95 : vector<64x128xf32>
    %c8_69 = arith.constant 8 : index
    %c0_70 = arith.constant 0 : index
    %97 = vector.load %arg14[%c8_69, %c0_70] : memref<80x128xf32, #tpu.memory_space<vmem>>, vector<64x128xf32>
    tpu.vector_store %arg14[%c8_69, %c0_70], %94 {strides = array<i32>} : memref<80x128xf32, #tpu.memory_space<vmem>>, vector<64x128xf32>,
    %c4 = arith.constant 4 : index
    %c0_71 = arith.constant 0 : index
    %98 = vector.load %arg14[%c4, %c0_71] : memref<80x128xf32, #tpu.memory_space<vmem>>, vector<64x128xf32>
    %c8_72 = arith.constant 8 : index
    %c0_73 = arith.constant 0 : index
    %99 = vector.load %arg14[%c8_72, %c0_73] : memref<80x128xf32, #tpu.memory_space<vmem>>, vector<64x128xf32>
    %c12 = arith.constant 12 : index
    %c0_74 = arith.constant 0 : index
    %100 = vector.load %arg14[%c12, %c0_74] : memref<80x128xf32, #tpu.memory_space<vmem>>, vector<64x128xf32>
    %101 = tpu.concatenate %98, %99, %100 in 1 : vector<64x128xf32>, vector<64x128xf32>, vector<64x128xf32> -> vector<64x384xf32>
    %102 = arith.truncf %101 : vector<64x384xf32> to vector<64x384xbf16>
    %c0_75 = arith.constant 0 : index
    %c2 = arith.constant 2 : index
    %c0_76 = arith.constant 0 : index
    %c0_77 = arith.constant 0 : index
    %103 = vector.load %arg4[%c0_75, %c2, %c0_76, %c0_77] : memref<2x3x384x256xbf16, #tpu.memory_space<vmem>>, vector<1x1x384x256xbf16>
    %104 = vector.shape_cast %103 : vector<1x1x384x256xbf16> to vector<384x256xbf16>
    %cst_78 = arith.constant dense<0.000000e+00> : vector<64x256xf32>
    %105 = tpu.matmul %102, %104, %cst_78 {dimension_numbers = #tpu.dot_dimension_numbers<[1], [0], [0], [1], [0, 0, 1, 1], [], []>} : vector<64x384xbf16>, vector<384x256xbf16>, vector<64x256xf32> -> vector<64x256xf32>
    %c0_79 = arith.constant 0 : index
    %c2_80 = arith.constant 2 : index
    %c0_81 = arith.constant 0 : index
    %c0_82 = arith.constant 0 : index
    %106 = vector.load %arg9[%c0_79, %c2_80, %c0_81, %c0_82] : memref<2x3x1x256xf32, #tpu.memory_space<vmem>>, vector<1x1x1x256xf32>
    %107 = vector.shape_cast %106 : vector<1x1x1x256xf32> to vector<1x256xf32>
    %108 = vector.broadcast %107 : vector<1x256xf32> to vector<64x256xf32>
    %109 = arith.addf %105, %108 : vector<64x256xf32>
    %110 = vector.extract_strided_slice %109 {offsets = [0, 0], sizes = [64, 128], strides = [1, 1]} : vector<64x256xf32> to vector<64x128xf32>
    %111 = math.tanh %110 : vector<64x128xf32>
    %112 = vector.extract_strided_slice %109 {offsets = [0, 128], sizes = [64, 128], strides = [1, 1]} : vector<64x256xf32> to vector<64x128xf32>
    %cst_83 = arith.constant 5.000000e-01 : f32
    %113 = vector.broadcast %cst_83 : f32 to vector<64x128xf32>
    %114 = arith.mulf %113, %112 : vector<64x128xf32>
    %115 = math.tanh %114 : vector<64x128xf32>
    %cst_84 = arith.constant 5.000000e-01 : f32
    %116 = vector.broadcast %cst_84 : f32 to vector<64x128xf32>
    %117 = arith.mulf %116, %115 : vector<64x128xf32>
    %cst_85 = arith.constant 5.000000e-01 : f32
    %118 = vector.broadcast %cst_85 : f32 to vector<64x128xf32>
    %119 = arith.addf %117, %118 : vector<64x128xf32>
    %120 = arith.mulf %111, %119 : vector<64x128xf32>
    %121 = arith.truncf %120 : vector<64x128xf32> to vector<64x128xbf16>
    %c0_86 = arith.constant 0 : index
    %c0_87 = arith.constant 0 : index
    %c0_88 = arith.constant 0 : index
    %122 = vector.load %arg6[%c0_86, %c0_87, %c0_88] : memref<2x128x128xbf16, #tpu.memory_space<vmem>>, vector<1x128x128xbf16>
    %123 = vector.shape_cast %122 : vector<1x128x128xbf16> to vector<128x128xbf16>
    %cst_89 = arith.constant dense<0.000000e+00> : vector<64x128xf32>
    %124 = tpu.matmul %121, %123, %cst_89 {dimension_numbers = #tpu.dot_dimension_numbers<[1], [0], [0], [1], [0, 0, 1, 1], [], []>} : vector<64x128xbf16>, vector<128x128xbf16>, vector<64x128xf32> -> vector<64x128xf32>
    %125 = arith.addf %96, %124 : vector<64x128xf32>
    %c0_90 = arith.constant 0 : index
    %c0_91 = arith.constant 0 : index
    %c0_92 = arith.constant 0 : index
    %126 = vector.load %arg11[%c0_90, %c0_91, %c0_92] : memref<2x1x128xf32, #tpu.memory_space<vmem>>, vector<1x1x128xf32>
    %127 = vector.shape_cast %126 : vector<1x1x128xf32> to vector<1x128xf32>
    %128 = vector.broadcast %127 : vector<1x128xf32> to vector<64x128xf32>
    %129 = arith.addf %125, %128 : vector<64x128xf32>
    %130 = vector.broadcast %5 : vector<64x1xf32> to vector<64x128xf32>
    %131 = arith.mulf %129, %130 : vector<64x128xf32>
    %132 = arith.truncf %131 : vector<64x128xf32> to vector<64x128xbf16>
    %c0_93 = arith.constant 0 : index
    %c0_94 = arith.constant 0 : index
    %c0_95 = arith.constant 0 : index
    %133 = vector.load %arg7[%c0_93, %c0_94, %c0_95] : memref<2x128x4xbf16, #tpu.memory_space<vmem>>, vector<1x128x4xbf16>
    %134 = vector.shape_cast %133 : vector<1x128x4xbf16> to vector<128x4xbf16>
    %cst_96 = arith.constant dense<0.000000e+00> : vector<64x4xf32>
    %135 = tpu.matmul %132, %134, %cst_96 {dimension_numbers = #tpu.dot_dimension_numbers<[1], [0], [0], [1], [0, 0, 1, 1], [], []>} : vector<64x128xbf16>, vector<128x4xbf16>, vector<64x4xf32> -> vector<64x4xf32>
    %c0_97 = arith.constant 0 : index
    %c0_98 = arith.constant 0 : index
    %c0_99 = arith.constant 0 : index
    %136 = vector.load %arg12[%c0_97, %c0_98, %c0_99] : memref<2x1x4xf32, #tpu.memory_space<vmem>>, vector<1x1x4xf32>
    %137 = vector.shape_cast %136 : vector<1x1x4xf32> to vector<1x4xf32>
    %138 = vector.broadcast %137 : vector<1x4xf32> to vector<64x4xf32>
    %139 = arith.addf %135, %138 : vector<64x4xf32>
    %140 = vector.broadcast %5 : vector<64x1xf32> to vector<64x4xf32>
    %141 = arith.mulf %139, %140 : vector<64x4xf32>
    %142 = vector.broadcast %5 : vector<64x1xf32> to vector<64x4xf32>
    %143 = arith.mulf %9, %142 : vector<64x4xf32>
    %144 = arith.addf %141, %143 : vector<64x4xf32>
    %145 = arith.truncf %144 : vector<64x4xf32> to vector<64x4xbf16>
    %c1_100 = arith.constant 1 : index
    %c0_101 = arith.constant 0 : index
    %c0_102 = arith.constant 0 : index
    %146 = vector.load %arg3[%c1_100, %c0_101, %c0_102] : memref<2x4x128xbf16, #tpu.memory_space<vmem>>, vector<1x4x128xbf16>
    %147 = vector.shape_cast %146 : vector<1x4x128xbf16> to vector<4x128xbf16>
    %cst_103 = arith.constant dense<0.000000e+00> : vector<64x128xf32>
    %148 = tpu.matmul %145, %147, %cst_103 {dimension_numbers = #tpu.dot_dimension_numbers<[1], [0], [0], [1], [0, 0, 1, 1], [], []>} : vector<64x4xbf16>, vector<4x128xbf16>, vector<64x128xf32> -> vector<64x128xf32>
    %c1_104 = arith.constant 1 : index
    %c0_105 = arith.constant 0 : index
    %c0_106 = arith.constant 0 : index
    %149 = vector.load %arg8[%c1_104, %c0_105, %c0_106] : memref<2x1x128xf32, #tpu.memory_space<vmem>>, vector<1x1x128xf32>
    %150 = vector.shape_cast %149 : vector<1x1x128xf32> to vector<1x128xf32>
    %151 = vector.broadcast %150 : vector<1x128xf32> to vector<64x128xf32>
    %152 = arith.addf %148, %151 : vector<64x128xf32>
    %153 = vector.broadcast %5 : vector<64x1xf32> to vector<64x128xf32>
    %154 = arith.mulf %152, %153 : vector<64x128xf32>
    %cst_107 = arith.constant 0.000000e+00 : f32
    %155 = vector.broadcast %cst_107 : f32 to vector<64x128xf32>
    %c8_108 = arith.constant 8 : index
    %c0_109 = arith.constant 0 : index
    %156 = vector.load %arg14[%c8_108, %c0_109] : memref<80x128xf32, #tpu.memory_space<vmem>>, vector<64x128xf32>
    tpu.vector_store %arg14[%c8_108, %c0_109], %154 {strides = array<i32>} : memref<80x128xf32, #tpu.memory_space<vmem>>, vector<64x128xf32>,
    %c7_110 = arith.constant 7 : index
    %c0_111 = arith.constant 0 : index
    %157 = vector.load %arg14[%c7_110, %c0_111] : memref<80x128xf32, #tpu.memory_space<vmem>>, vector<64x128xf32>
    %c8_112 = arith.constant 8 : index
    %c0_113 = arith.constant 0 : index
    %158 = vector.load %arg14[%c8_112, %c0_113] : memref<80x128xf32, #tpu.memory_space<vmem>>, vector<64x128xf32>
    %c9_114 = arith.constant 9 : index
    %c0_115 = arith.constant 0 : index
    %159 = vector.load %arg14[%c9_114, %c0_115] : memref<80x128xf32, #tpu.memory_space<vmem>>, vector<64x128xf32>
    %160 = tpu.concatenate %157, %158, %159 in 1 : vector<64x128xf32>, vector<64x128xf32>, vector<64x128xf32> -> vector<64x384xf32>
    %161 = arith.truncf %160 : vector<64x384xf32> to vector<64x384xbf16>
    %c1_116 = arith.constant 1 : index
    %c0_117 = arith.constant 0 : index
    %c0_118 = arith.constant 0 : index
    %c0_119 = arith.constant 0 : index
    %162 = vector.load %arg4[%c1_116, %c0_117, %c0_118, %c0_119] : memref<2x3x384x256xbf16, #tpu.memory_space<vmem>>, vector<1x1x384x256xbf16>
    %163 = vector.shape_cast %162 : vector<1x1x384x256xbf16> to vector<384x256xbf16>
    %cst_120 = arith.constant dense<0.000000e+00> : vector<64x256xf32>
    %164 = tpu.matmul %161, %163, %cst_120 {dimension_numbers = #tpu.dot_dimension_numbers<[1], [0], [0], [1], [0, 0, 1, 1], [], []>} : vector<64x384xbf16>, vector<384x256xbf16>, vector<64x256xf32> -> vector<64x256xf32>
    %c1_121 = arith.constant 1 : index
    %c0_122 = arith.constant 0 : index
    %c0_123 = arith.constant 0 : index
    %c0_124 = arith.constant 0 : index
    %165 = vector.load %arg9[%c1_121, %c0_122, %c0_123, %c0_124] : memref<2x3x1x256xf32, #tpu.memory_space<vmem>>, vector<1x1x1x256xf32>
    %166 = vector.shape_cast %165 : vector<1x1x1x256xf32> to vector<1x256xf32>
    %167 = vector.broadcast %166 : vector<1x256xf32> to vector<64x256xf32>
    %168 = arith.addf %164, %167 : vector<64x256xf32>
    %169 = vector.extract_strided_slice %168 {offsets = [0, 0], sizes = [64, 128], strides = [1, 1]} : vector<64x256xf32> to vector<64x128xf32>
    %170 = math.tanh %169 : vector<64x128xf32>
    %171 = vector.extract_strided_slice %168 {offsets = [0, 128], sizes = [64, 128], strides = [1, 1]} : vector<64x256xf32> to vector<64x128xf32>
    %cst_125 = arith.constant 5.000000e-01 : f32
    %172 = vector.broadcast %cst_125 : f32 to vector<64x128xf32>
    %173 = arith.mulf %172, %171 : vector<64x128xf32>
    %174 = math.tanh %173 : vector<64x128xf32>
    %cst_126 = arith.constant 5.000000e-01 : f32
    %175 = vector.broadcast %cst_126 : f32 to vector<64x128xf32>
    %176 = arith.mulf %175, %174 : vector<64x128xf32>
    %cst_127 = arith.constant 5.000000e-01 : f32
    %177 = vector.broadcast %cst_127 : f32 to vector<64x128xf32>
    %178 = arith.addf %176, %177 : vector<64x128xf32>
    %179 = arith.mulf %170, %178 : vector<64x128xf32>
    %180 = arith.truncf %179 : vector<64x128xf32> to vector<64x128xbf16>
    %c1_128 = arith.constant 1 : index
    %c0_129 = arith.constant 0 : index
    %c0_130 = arith.constant 0 : index
    %c0_131 = arith.constant 0 : index
    %181 = vector.load %arg5[%c1_128, %c0_129, %c0_130, %c0_131] : memref<2x2x128x256xbf16, #tpu.memory_space<vmem>>, vector<1x1x128x256xbf16>
    %182 = vector.shape_cast %181 : vector<1x1x128x256xbf16> to vector<128x256xbf16>
    %cst_132 = arith.constant dense<0.000000e+00> : vector<64x256xf32>
    %183 = tpu.matmul %180, %182, %cst_132 {dimension_numbers = #tpu.dot_dimension_numbers<[1], [0], [0], [1], [0, 0, 1, 1], [], []>} : vector<64x128xbf16>, vector<128x256xbf16>, vector<64x256xf32> -> vector<64x256xf32>
    %c1_133 = arith.constant 1 : index
    %c0_134 = arith.constant 0 : index
    %c0_135 = arith.constant 0 : index
    %c0_136 = arith.constant 0 : index
    %184 = vector.load %arg10[%c1_133, %c0_134, %c0_135, %c0_136] : memref<2x2x1x256xf32, #tpu.memory_space<vmem>>, vector<1x1x1x256xf32>
    %185 = vector.shape_cast %184 : vector<1x1x1x256xf32> to vector<1x256xf32>
    %186 = vector.broadcast %185 : vector<1x256xf32> to vector<64x256xf32>
    %187 = arith.addf %183, %186 : vector<64x256xf32>
    %188 = vector.extract_strided_slice %187 {offsets = [0, 0], sizes = [64, 128], strides = [1, 1]} : vector<64x256xf32> to vector<64x128xf32>
    %189 = arith.addf %154, %188 : vector<64x128xf32>
    %190 = vector.broadcast %5 : vector<64x1xf32> to vector<64x128xf32>
    %191 = arith.mulf %189, %190 : vector<64x128xf32>
    %192 = vector.extract_strided_slice %187 {offsets = [0, 128], sizes = [64, 128], strides = [1, 1]} : vector<64x256xf32> to vector<64x128xf32>
    %193 = arith.addf %155, %192 : vector<64x128xf32>
    %c8_137 = arith.constant 8 : index
    %c0_138 = arith.constant 0 : index
    %194 = vector.load %arg14[%c8_137, %c0_138] : memref<80x128xf32, #tpu.memory_space<vmem>>, vector<64x128xf32>
    tpu.vector_store %arg14[%c8_137, %c0_138], %191 {strides = array<i32>} : memref<80x128xf32, #tpu.memory_space<vmem>>, vector<64x128xf32>,
    %c6_139 = arith.constant 6 : index
    %c0_140 = arith.constant 0 : index
    %195 = vector.load %arg14[%c6_139, %c0_140] : memref<80x128xf32, #tpu.memory_space<vmem>>, vector<64x128xf32>
    %c8_141 = arith.constant 8 : index
    %c0_142 = arith.constant 0 : index
    %196 = vector.load %arg14[%c8_141, %c0_142] : memref<80x128xf32, #tpu.memory_space<vmem>>, vector<64x128xf32>
    %c10_143 = arith.constant 10 : index
    %c0_144 = arith.constant 0 : index
    %197 = vector.load %arg14[%c10_143, %c0_144] : memref<80x128xf32, #tpu.memory_space<vmem>>, vector<64x128xf32>
    %198 = tpu.concatenate %195, %196, %197 in 1 : vector<64x128xf32>, vector<64x128xf32>, vector<64x128xf32> -> vector<64x384xf32>
    %199 = arith.truncf %198 : vector<64x384xf32> to vector<64x384xbf16>
    %c1_145 = arith.constant 1 : index
    %c1_146 = arith.constant 1 : index
    %c0_147 = arith.constant 0 : index
    %c0_148 = arith.constant 0 : index
    %200 = vector.load %arg4[%c1_145, %c1_146, %c0_147, %c0_148] : memref<2x3x384x256xbf16, #tpu.memory_space<vmem>>, vector<1x1x384x256xbf16>
    %201 = vector.shape_cast %200 : vector<1x1x384x256xbf16> to vector<384x256xbf16>
    %cst_149 = arith.constant dense<0.000000e+00> : vector<64x256xf32>
    %202 = tpu.matmul %199, %201, %cst_149 {dimension_numbers = #tpu.dot_dimension_numbers<[1], [0], [0], [1], [0, 0, 1, 1], [], []>} : vector<64x384xbf16>, vector<384x256xbf16>, vector<64x256xf32> -> vector<64x256xf32>
    %c1_150 = arith.constant 1 : index
    %c1_151 = arith.constant 1 : index
    %c0_152 = arith.constant 0 : index
    %c0_153 = arith.constant 0 : index
    %203 = vector.load %arg9[%c1_150, %c1_151, %c0_152, %c0_153] : memref<2x3x1x256xf32, #tpu.memory_space<vmem>>, vector<1x1x1x256xf32>
    %204 = vector.shape_cast %203 : vector<1x1x1x256xf32> to vector<1x256xf32>
    %205 = vector.broadcast %204 : vector<1x256xf32> to vector<64x256xf32>
    %206 = arith.addf %202, %205 : vector<64x256xf32>
    %207 = vector.extract_strided_slice %206 {offsets = [0, 0], sizes = [64, 128], strides = [1, 1]} : vector<64x256xf32> to vector<64x128xf32>
    %208 = math.tanh %207 : vector<64x128xf32>
    %209 = vector.extract_strided_slice %206 {offsets = [0, 128], sizes = [64, 128], strides = [1, 1]} : vector<64x256xf32> to vector<64x128xf32>
    %cst_154 = arith.constant 5.000000e-01 : f32
    %210 = vector.broadcast %cst_154 : f32 to vector<64x128xf32>
    %211 = arith.mulf %210, %209 : vector<64x128xf32>
    %212 = math.tanh %211 : vector<64x128xf32>
    %cst_155 = arith.constant 5.000000e-01 : f32
    %213 = vector.broadcast %cst_155 : f32 to vector<64x128xf32>
    %214 = arith.mulf %213, %212 : vector<64x128xf32>
    %cst_156 = arith.constant 5.000000e-01 : f32
    %215 = vector.broadcast %cst_156 : f32 to vector<64x128xf32>
    %216 = arith.addf %214, %215 : vector<64x128xf32>
    %217 = arith.mulf %208, %216 : vector<64x128xf32>
    %218 = arith.truncf %217 : vector<64x128xf32> to vector<64x128xbf16>
    %c1_157 = arith.constant 1 : index
    %c1_158 = arith.constant 1 : index
    %c0_159 = arith.constant 0 : index
    %c0_160 = arith.constant 0 : index
    %219 = vector.load %arg5[%c1_157, %c1_158, %c0_159, %c0_160] : memref<2x2x128x256xbf16, #tpu.memory_space<vmem>>, vector<1x1x128x256xbf16>
    %220 = vector.shape_cast %219 : vector<1x1x128x256xbf16> to vector<128x256xbf16>
    %cst_161 = arith.constant dense<0.000000e+00> : vector<64x256xf32>
    %221 = tpu.matmul %218, %220, %cst_161 {dimension_numbers = #tpu.dot_dimension_numbers<[1], [0], [0], [1], [0, 0, 1, 1], [], []>} : vector<64x128xbf16>, vector<128x256xbf16>, vector<64x256xf32> -> vector<64x256xf32>
    %c1_162 = arith.constant 1 : index
    %c1_163 = arith.constant 1 : index
    %c0_164 = arith.constant 0 : index
    %c0_165 = arith.constant 0 : index
    %222 = vector.load %arg10[%c1_162, %c1_163, %c0_164, %c0_165] : memref<2x2x1x256xf32, #tpu.memory_space<vmem>>, vector<1x1x1x256xf32>
    %223 = vector.shape_cast %222 : vector<1x1x1x256xf32> to vector<1x256xf32>
    %224 = vector.broadcast %223 : vector<1x256xf32> to vector<64x256xf32>
    %225 = arith.addf %221, %224 : vector<64x256xf32>
    %226 = vector.extract_strided_slice %225 {offsets = [0, 0], sizes = [64, 128], strides = [1, 1]} : vector<64x256xf32> to vector<64x128xf32>
    %227 = arith.addf %191, %226 : vector<64x128xf32>
    %228 = vector.broadcast %5 : vector<64x1xf32> to vector<64x128xf32>
    %229 = arith.mulf %227, %228 : vector<64x128xf32>
    %230 = vector.extract_strided_slice %225 {offsets = [0, 128], sizes = [64, 128], strides = [1, 1]} : vector<64x256xf32> to vector<64x128xf32>
    %231 = arith.addf %193, %230 : vector<64x128xf32>
    %c8_166 = arith.constant 8 : index
    %c0_167 = arith.constant 0 : index
    %232 = vector.load %arg14[%c8_166, %c0_167] : memref<80x128xf32, #tpu.memory_space<vmem>>, vector<64x128xf32>
    tpu.vector_store %arg14[%c8_166, %c0_167], %229 {strides = array<i32>} : memref<80x128xf32, #tpu.memory_space<vmem>>, vector<64x128xf32>,
    %c4_168 = arith.constant 4 : index
    %c0_169 = arith.constant 0 : index
    %233 = vector.load %arg14[%c4_168, %c0_169] : memref<80x128xf32, #tpu.memory_space<vmem>>, vector<64x128xf32>
    %c8_170 = arith.constant 8 : index
    %c0_171 = arith.constant 0 : index
    %234 = vector.load %arg14[%c8_170, %c0_171] : memref<80x128xf32, #tpu.memory_space<vmem>>, vector<64x128xf32>
    %c12_172 = arith.constant 12 : index
    %c0_173 = arith.constant 0 : index
    %235 = vector.load %arg14[%c12_172, %c0_173] : memref<80x128xf32, #tpu.memory_space<vmem>>, vector<64x128xf32>
    %236 = tpu.concatenate %233, %234, %235 in 1 : vector<64x128xf32>, vector<64x128xf32>, vector<64x128xf32> -> vector<64x384xf32>
    %237 = arith.truncf %236 : vector<64x384xf32> to vector<64x384xbf16>
    %c1_174 = arith.constant 1 : index
    %c2_175 = arith.constant 2 : index
    %c0_176 = arith.constant 0 : index
    %c0_177 = arith.constant 0 : index
    %238 = vector.load %arg4[%c1_174, %c2_175, %c0_176, %c0_177] : memref<2x3x384x256xbf16, #tpu.memory_space<vmem>>, vector<1x1x384x256xbf16>
    %239 = vector.shape_cast %238 : vector<1x1x384x256xbf16> to vector<384x256xbf16>
    %cst_178 = arith.constant dense<0.000000e+00> : vector<64x256xf32>
    %240 = tpu.matmul %237, %239, %cst_178 {dimension_numbers = #tpu.dot_dimension_numbers<[1], [0], [0], [1], [0, 0, 1, 1], [], []>} : vector<64x384xbf16>, vector<384x256xbf16>, vector<64x256xf32> -> vector<64x256xf32>
    %c1_179 = arith.constant 1 : index
    %c2_180 = arith.constant 2 : index
    %c0_181 = arith.constant 0 : index
    %c0_182 = arith.constant 0 : index
    %241 = vector.load %arg9[%c1_179, %c2_180, %c0_181, %c0_182] : memref<2x3x1x256xf32, #tpu.memory_space<vmem>>, vector<1x1x1x256xf32>
    %242 = vector.shape_cast %241 : vector<1x1x1x256xf32> to vector<1x256xf32>
    %243 = vector.broadcast %242 : vector<1x256xf32> to vector<64x256xf32>
    %244 = arith.addf %240, %243 : vector<64x256xf32>
    %245 = vector.extract_strided_slice %244 {offsets = [0, 0], sizes = [64, 128], strides = [1, 1]} : vector<64x256xf32> to vector<64x128xf32>
    %246 = math.tanh %245 : vector<64x128xf32>
    %247 = vector.extract_strided_slice %244 {offsets = [0, 128], sizes = [64, 128], strides = [1, 1]} : vector<64x256xf32> to vector<64x128xf32>
    %cst_183 = arith.constant 5.000000e-01 : f32
    %248 = vector.broadcast %cst_183 : f32 to vector<64x128xf32>
    %249 = arith.mulf %248, %247 : vector<64x128xf32>
    %250 = math.tanh %249 : vector<64x128xf32>
    %cst_184 = arith.constant 5.000000e-01 : f32
    %251 = vector.broadcast %cst_184 : f32 to vector<64x128xf32>
    %252 = arith.mulf %251, %250 : vector<64x128xf32>
    %cst_185 = arith.constant 5.000000e-01 : f32
    %253 = vector.broadcast %cst_185 : f32 to vector<64x128xf32>
    %254 = arith.addf %252, %253 : vector<64x128xf32>
    %255 = arith.mulf %246, %254 : vector<64x128xf32>
    %256 = arith.truncf %255 : vector<64x128xf32> to vector<64x128xbf16>
    %c1_186 = arith.constant 1 : index
    %c0_187 = arith.constant 0 : index
    %c0_188 = arith.constant 0 : index
    %257 = vector.load %arg6[%c1_186, %c0_187, %c0_188] : memref<2x128x128xbf16, #tpu.memory_space<vmem>>, vector<1x128x128xbf16>
    %258 = vector.shape_cast %257 : vector<1x128x128xbf16> to vector<128x128xbf16>
    %cst_189 = arith.constant dense<0.000000e+00> : vector<64x128xf32>
    %259 = tpu.matmul %256, %258, %cst_189 {dimension_numbers = #tpu.dot_dimension_numbers<[1], [0], [0], [1], [0, 0, 1, 1], [], []>} : vector<64x128xbf16>, vector<128x128xbf16>, vector<64x128xf32> -> vector<64x128xf32>
    %260 = arith.addf %231, %259 : vector<64x128xf32>
    %c1_190 = arith.constant 1 : index
    %c0_191 = arith.constant 0 : index
    %c0_192 = arith.constant 0 : index
    %261 = vector.load %arg11[%c1_190, %c0_191, %c0_192] : memref<2x1x128xf32, #tpu.memory_space<vmem>>, vector<1x1x128xf32>
    %262 = vector.shape_cast %261 : vector<1x1x128xf32> to vector<1x128xf32>
    %263 = vector.broadcast %262 : vector<1x128xf32> to vector<64x128xf32>
    %264 = arith.addf %260, %263 : vector<64x128xf32>
    %265 = vector.broadcast %5 : vector<64x1xf32> to vector<64x128xf32>
    %266 = arith.mulf %264, %265 : vector<64x128xf32>
    %267 = arith.truncf %266 : vector<64x128xf32> to vector<64x128xbf16>
    %c1_193 = arith.constant 1 : index
    %c0_194 = arith.constant 0 : index
    %c0_195 = arith.constant 0 : index
    %268 = vector.load %arg7[%c1_193, %c0_194, %c0_195] : memref<2x128x4xbf16, #tpu.memory_space<vmem>>, vector<1x128x4xbf16>
    %269 = vector.shape_cast %268 : vector<1x128x4xbf16> to vector<128x4xbf16>
    %cst_196 = arith.constant dense<0.000000e+00> : vector<64x4xf32>
    %270 = tpu.matmul %267, %269, %cst_196 {dimension_numbers = #tpu.dot_dimension_numbers<[1], [0], [0], [1], [0, 0, 1, 1], [], []>} : vector<64x128xbf16>, vector<128x4xbf16>, vector<64x4xf32> -> vector<64x4xf32>
    %c1_197 = arith.constant 1 : index
    %c0_198 = arith.constant 0 : index
    %c0_199 = arith.constant 0 : index
    %271 = vector.load %arg12[%c1_197, %c0_198, %c0_199] : memref<2x1x4xf32, #tpu.memory_space<vmem>>, vector<1x1x4xf32>
    %272 = vector.shape_cast %271 : vector<1x1x4xf32> to vector<1x4xf32>
    %273 = vector.broadcast %272 : vector<1x4xf32> to vector<64x4xf32>
    %274 = arith.addf %270, %273 : vector<64x4xf32>
    %275 = vector.broadcast %5 : vector<64x1xf32> to vector<64x4xf32>
    %276 = arith.mulf %274, %275 : vector<64x4xf32>
    %277 = vector.broadcast %5 : vector<64x1xf32> to vector<64x4xf32>
    %278 = arith.mulf %8, %277 : vector<64x4xf32>
    %279 = arith.addf %276, %278 : vector<64x4xf32>
    %280 = tpu.concatenate %279, %144 in 1 : vector<64x4xf32>, vector<64x4xf32> -> vector<64x8xf32>
    %c0_200 = arith.constant 0 : index
    %c0_201 = arith.constant 0 : index
    %c0_202 = arith.constant 0 : index
    %281 = vector.load %arg13[%c0_200, %c0_201, %c0_202] : memref<1x64x8xf32, #tpu.memory_space<vmem>>, vector<1x64x8xf32>
    %282 = vector.shape_cast %281 : vector<1x64x8xf32> to vector<64x8xf32>
    %283 = vector.shape_cast %280 : vector<64x8xf32> to vector<1x64x8xf32>
    tpu.vector_store %arg13[%c0_200, %c0_201, %c0_202], %283 {strides = array<i32>} : memref<1x64x8xf32, #tpu.memory_space<vmem>>, vector<1x64x8xf32>,
    return
  }
  func.func @transform_0(%arg0: i32) -> (i32, i32, i32) {
    %c0_i32 = arith.constant 0 : i32
    %c0_i32_0 = arith.constant 0 : i32
    %c0_i32_1 = arith.constant 0 : i32
    return %arg0, %c0_i32, %c0_i32_0 : i32, i32, i32
  }
  func.func @transform_1(%arg0: i32) -> (i32, i32, i32) {
    %c0_i32 = arith.constant 0 : i32
    %c0_i32_0 = arith.constant 0 : i32
    %c0_i32_1 = arith.constant 0 : i32
    return %arg0, %c0_i32, %c0_i32_0 : i32, i32, i32
  }
  func.func @transform_2(%arg0: i32) -> (i32, i32, i32) {
    %c0_i32 = arith.constant 0 : i32
    %c0_i32_0 = arith.constant 0 : i32
    %c0_i32_1 = arith.constant 0 : i32
    %c0_i32_2 = arith.constant 0 : i32
    return %c0_i32, %c0_i32_0, %c0_i32_1 : i32, i32, i32
  }
  func.func @transform_3(%arg0: i32) -> (i32, i32, i32, i32) {
    %c0_i32 = arith.constant 0 : i32
    %c0_i32_0 = arith.constant 0 : i32
    %c0_i32_1 = arith.constant 0 : i32
    %c0_i32_2 = arith.constant 0 : i32
    %c0_i32_3 = arith.constant 0 : i32
    return %c0_i32, %c0_i32_0, %c0_i32_1, %c0_i32_2 : i32, i32, i32, i32
  }
  func.func @transform_4(%arg0: i32) -> (i32, i32, i32, i32) {
    %c0_i32 = arith.constant 0 : i32
    %c0_i32_0 = arith.constant 0 : i32
    %c0_i32_1 = arith.constant 0 : i32
    %c0_i32_2 = arith.constant 0 : i32
    %c0_i32_3 = arith.constant 0 : i32
    return %c0_i32, %c0_i32_0, %c0_i32_1, %c0_i32_2 : i32, i32, i32, i32
  }
  func.func @transform_5(%arg0: i32) -> (i32, i32, i32) {
    %c0_i32 = arith.constant 0 : i32
    %c0_i32_0 = arith.constant 0 : i32
    %c0_i32_1 = arith.constant 0 : i32
    %c0_i32_2 = arith.constant 0 : i32
    return %c0_i32, %c0_i32_0, %c0_i32_1 : i32, i32, i32
  }
  func.func @transform_6(%arg0: i32) -> (i32, i32, i32) {
    %c0_i32 = arith.constant 0 : i32
    %c0_i32_0 = arith.constant 0 : i32
    %c0_i32_1 = arith.constant 0 : i32
    %c0_i32_2 = arith.constant 0 : i32
    return %c0_i32, %c0_i32_0, %c0_i32_1 : i32, i32, i32
  }
  func.func @transform_7(%arg0: i32) -> (i32, i32, i32) {
    %c0_i32 = arith.constant 0 : i32
    %c0_i32_0 = arith.constant 0 : i32
    %c0_i32_1 = arith.constant 0 : i32
    %c0_i32_2 = arith.constant 0 : i32
    return %c0_i32, %c0_i32_0, %c0_i32_1 : i32, i32, i32
  }
  func.func @transform_8(%arg0: i32) -> (i32, i32, i32, i32) {
    %c0_i32 = arith.constant 0 : i32
    %c0_i32_0 = arith.constant 0 : i32
    %c0_i32_1 = arith.constant 0 : i32
    %c0_i32_2 = arith.constant 0 : i32
    %c0_i32_3 = arith.constant 0 : i32
    return %c0_i32, %c0_i32_0, %c0_i32_1, %c0_i32_2 : i32, i32, i32, i32
  }
  func.func @transform_9(%arg0: i32) -> (i32, i32, i32, i32) {
    %c0_i32 = arith.constant 0 : i32
    %c0_i32_0 = arith.constant 0 : i32
    %c0_i32_1 = arith.constant 0 : i32
    %c0_i32_2 = arith.constant 0 : i32
    %c0_i32_3 = arith.constant 0 : i32
    return %c0_i32, %c0_i32_0, %c0_i32_1, %c0_i32_2 : i32, i32, i32, i32
  }
  func.func @transform_10(%arg0: i32) -> (i32, i32, i32) {
    %c0_i32 = arith.constant 0 : i32
    %c0_i32_0 = arith.constant 0 : i32
    %c0_i32_1 = arith.constant 0 : i32
    %c0_i32_2 = arith.constant 0 : i32
    return %c0_i32, %c0_i32_0, %c0_i32_1 : i32, i32, i32
  }
  func.func @transform_11(%arg0: i32) -> (i32, i32, i32) {
    %c0_i32 = arith.constant 0 : i32
    %c0_i32_0 = arith.constant 0 : i32
    %c0_i32_1 = arith.constant 0 : i32
    %c0_i32_2 = arith.constant 0 : i32
    return %c0_i32, %c0_i32_0, %c0_i32_1 : i32, i32, i32
  }
  func.func @transform_12(%arg0: i32) -> (i32, i32, i32) {
    %c0_i32 = arith.constant 0 : i32
    %c0_i32_0 = arith.constant 0 : i32
    %c0_i32_1 = arith.constant 0 : i32
    return %arg0, %c0_i32, %c0_i32_0 : i32, i32, i32
  }
}

</mosaic_0001>

<bundles_post_ra>
// kernel: tpu_custom_call.1
= control target key start
LH: loop header
LB: loop body
LE: loop exit
PB: predicated region body
PF: predicated region fallthrough
CT: control target
= control target key end

     0   :  { %s9368_s0 = inlined_call_operand.vmem [shape: f32[2,64,8], index: 0, kind: input, shape index: {}]   ;;  %s9369_s1 = inlined_call_operand.vmem [shape: f32[2,64,1], index: 1, kind: input, shape index: {}]   ;;  %s9370_s2 = inlined_call_operand.hbm [shape: bf16[2,4,128], index: 2, kind: input, shape index: {}]   ;;  %s9371_s3 = inlined_call_operand.hbm [shape: bf16[2,3,384,256], index: 3, kind: input, shape index: {}]   ;;  %s9372_s4 = inlined_call_operand.hbm [shape: bf16[2,2,128,256], index: 4, kind: input, shape index: {}]   ;;  %s9373_s5 = inlined_call_operand.hbm [shape: bf16[2,128,128], index: 5, kind: input, shape index: {}]   ;;  %s9374_s6 = inlined_call_operand.vmem [shape: bf16[2,128,4], index: 6, kind: input, shape index: {}]   ;;  %s9375_s7 = inlined_call_operand.hbm [shape: f32[2,1,128], index: 7, kind: input, shape index: {}]   ;;  %s9376_s8 = inlined_call_operand.hbm [shape: f32[2,3,1,256], index: 8, kind: input, shape index: {}]   ;;  %s9377_s9 = inlined_call_operand.hbm [shape: f32[2,2,1,256], index: 9, kind: input, shape index: {}]   ;;  %s9378_s10 = inlined_call_operand.hbm [shape: f32[2,1,128], index: 10, kind: input, shape index: {}]   ;;  %s9379_s11 = inlined_call_operand.hbm [shape: f32[2,1,4], index: 11, kind: input, shape index: {}]   ;;  %s9380_s12 = inlined_call_operand.vmem [shape: f32[2,64,8], index: 12, kind: output, shape index: {}]  }
   0x1   :  { %9392 = sst [smem:[#allocation25_spill]] %s9370_s2 }
   0x2   :  { %9393 = sst [smem:[#allocation26_spill]] %s9371_s3 }
   0x3   :  { %17 = vsyncpa [#allocation4], 0 }
   0x4   :  { %18 = vsyncpa [#allocation6], 0 }
   0x5   :  { %19 = vsyncpa [#allocation9], 0 }
   0x6   :  { %20 = vsyncpa [#allocation12], 0 }
   0x7   :  { %21 = vsyncpa [#allocation15], 0  ;;  %s8329_s21 = smov 0  }
   0x8 LB: > { %s9394_s3 = sld [smem:[#allocation26_spill]]  ;;  %s8338_s25 = sadd.s32 4294967295, %s8241_s21   ;;  %s8241_s21 = sphi %s8329_s21, %s27_s21  }
   0x9   : > { %p5616_p0 = scmp.ge.s32.totalorder %s8241_s21, 1  ;;  %p320_p1 = scmp.lt.s32.totalorder %s8241_s21, 3 }
   0xa   : > { %p7665_p2 = scmp.eq.s32.totalorder %s8338_s25, 0  ;;  %s8243_s27 = smov [#allocation5]  }
   0xb   : > { %p8343_p3 = pnand %p5616_p0, %p320_p1  ;;  %s347_s28 = sshll.u32 %s8243_s27, 4  ;;  %s348_s28 = int_to_ptr.vmem [resolvable:$true] %s347_s28 }
   0xc   : > { %s373_s13 = sshll.u32 %s9373_s5, 4  ;;  %s8244_s15 = smov [#allocation8]   ;;  %s374_s13 = int_to_ptr.hbm [resolvable:$true] %s373_s13 }
   0xd   : > { %p7637_p4 = pneg %p8343_p3  ;;  %s375_s16 = sshll.u32 %s8244_s15, 4  ;;  %s376_s16 = int_to_ptr.vmem [resolvable:$true] %s375_s16 }
   0xe   : > { %s345_s24 = sshll.u32 %s9394_s3, 4  ;;  %s9381_s17 = smov 128   ;;  %s346_s24 = int_to_ptr.hbm [resolvable:$true] %s345_s24 }
   0xf   : > { %p8354_p5 = pnand %p7665_p2, %p7637_p4  ;;  %s9382_s18 = smov 8  }
  0x10   : > { %s8247_s19 = smov 64   ;;  %s8248_s20 = smov 4  }
  0x11   : > { %7643 = dma.hbm_to_vmem [thread:$0]  (!%p8354_p5), %s346_s24, 36864, %s348_s28, [#allocation6], %s9381_s17, %s9381_s17, %s9382_s18  }
  0x12   : > { %7649 = dma.hbm_to_vmem [thread:$0]  (!%p8354_p5), %s374_s13, 2048, %s376_s16, [#allocation9], %s8247_s19, %s8247_s19, %s8248_s20  }
  0x13   : > { %s404_s27 = sshll.u32 %s9376_s8, 4  ;;  %s8249_s29 = smov [#allocation11]   ;;  %s405_s27 = int_to_ptr.hbm [resolvable:$true] %s404_s27 }
  0x14   : > { %s406_s30 = sshll.u32 %s8249_s29, 4  ;;  %s9387_s15 = smov 32   ;;  %s407_s30 = int_to_ptr.vmem [resolvable:$true] %s406_s30 }
  0x15   : > { %s9388_s3 = smov 2   ;;  %s432_s13 = sshll.u32 %s9378_s10, 4  ;;  %s433_s13 = int_to_ptr.hbm [resolvable:$true] %s432_s13 }
  0x16   : > { %7655 = dma.hbm_to_vmem [thread:$0]  (!%p8354_p5), %s405_s27, 192, %s407_s30, [#allocation12], %s9387_s15, %s9387_s15, %s9388_s3  }
  0x17   : > { %s8252_s16 = smov [#allocation14]   ;;  %s9397_s2 = sld [smem:[#allocation25_spill]] }
  0x18   : > { %s434_s19 = sshll.u32 %s8252_s16, 4  ;;  %s9383_s29 = smov 16   ;;  %s435_s19 = int_to_ptr.vmem [resolvable:$true] %s434_s19 }
  0x19   : > { %s9385_s17 = smov 1   ;;  %s8255_s27 = smov [#allocation3]  }
  0x1a   : > { %7661 = dma.hbm_to_vmem [thread:$0]  (!%p8354_p5), %s433_s13, 32, %s435_s19, [#allocation15], %s9383_s29, %s9383_s29, %s9385_s17  }
  0x1b   : > { %s333_s30 = sshll.u32 %s8255_s27, 4  ;;  %s359_s16 = sshll.u32 %s9372_s4, 4  ;;  %s334_s30 = int_to_ptr.vmem [resolvable:$true] %s333_s30  ;;  %s360_s16 = int_to_ptr.hbm [resolvable:$true] %s359_s16 }
  0x1c   : > { %s390_s18 = sshll.u32 %s9375_s7, 4  ;;  %s8256_s13 = smov [#allocation7]   ;;  %s391_s18 = int_to_ptr.hbm [resolvable:$true] %s390_s18 }
  0x1d   : > { %s331_s23 = sshll.u32 %s9397_s2, 4  ;;  %s361_s19 = sshll.u32 %s8256_s13, 4  ;;  %s332_s23 = int_to_ptr.hbm [resolvable:$true] %s331_s23  ;;  %s362_s19 = int_to_ptr.vmem [resolvable:$true] %s361_s19 }
  0x1e   : > { %7640 = dma.hbm_to_vmem [thread:$0]  (!%p8354_p5), %s332_s23, 64, %s334_s30, [#allocation4], %s9387_s15, %s9387_s15, %s9388_s3  }
  0x1f   : > { %s9398_s27 = smov 8   ;;  %s9399_s24 = smov 128  }
  0x20   : > { %7646 = dma.hbm_to_vmem [thread:$0]  (!%p8354_p5), %s360_s16, 8192, %s362_s19, [#allocation6], %s9399_s24, %s9399_s24, %s9398_s27  }
  0x21   : > { %s8257_s28 = smov [#allocation10]   ;;  %s418_s23 = sshll.u32 %s9377_s9, 4  ;;  %s419_s23 = int_to_ptr.hbm [resolvable:$true] %s418_s23 }
  0x22   : > { %s392_s29 = sshll.u32 %s8257_s28, 4  ;;  %s9400_s30 = smov 1   ;;  %s393_s29 = int_to_ptr.vmem [resolvable:$true] %s392_s29 }
  0x23   : > { %s9401_s20 = smov 16   ;;  %s446_s15 = sshll.u32 %s9379_s11, 4  ;;  %s447_s15 = int_to_ptr.hbm [resolvable:$true] %s446_s15 }
  0x24   : > { %7652 = dma.hbm_to_vmem [thread:$0]  (!%p8354_p5), %s391_s18, 32, %s393_s29, [#allocation9], %s9401_s20, %s9401_s20, %s9400_s30  }
  0x25   : > { %s8258_s3 = smov [#allocation13]   ;;  %s9402_s19 = smov 2  }
  0x26   : > { %s420_s16 = sshll.u32 %s8258_s3, 4  ;;  %s9403_s27 = smov 32   ;;  %s421_s16 = int_to_ptr.vmem [resolvable:$true] %s420_s16 }
  0x27   : > { %7658 = dma.hbm_to_vmem [thread:$0]  (!%p8354_p5), %s419_s23, 128, %s421_s16, [#allocation12], %s9403_s27, %s9403_s27, %s9402_s19  }
  0x28   : > { %s8259_s2 = smov [#allocation16]   ;;  %480 = sbr.rel (%p8343_p3) target bundleno = 2976 (0xba0), region = 68 }
  0x29   : > { %s448_s17 = sshll.u32 %s8259_s2, 4  ;;  %s449_s17 = int_to_ptr.vmem [resolvable:$true] %s448_s17 }
  0x2a   : > { %7664 = dma.hbm_to_vmem [thread:$0]  (!%p8354_p5), %s447_s15, 32, %s449_s17, [#allocation15], %s9401_s20, %s9401_s20, %s9400_s30  }
  0x2d   : > { %8220 = dma.done.wait (%p7665_p2), [#allocation4], 64  }
  0x2e   : > { %8222 = vsyncadd (%p7665_p2), [#allocation4], 4294967232 }
  0x2f   : > { %8224 = dma.done.wait (%p7665_p2), [#allocation6], 45056  }
  0x30   : > { %8226 = vsyncadd (%p7665_p2), [#allocation6], 4294922240 }
  0x31   : > { %8228 = dma.done.wait (%p7665_p2), [#allocation9], 2080  }
  0x32   : > { %8230 = vsyncadd (%p7665_p2), [#allocation9], 4294965216 }
  0x33   : > { %8232 = dma.done.wait (%p7665_p2), [#allocation12], 320  }
  0x34   : > { %8234 = vsyncadd (%p7665_p2), [#allocation12], 4294966976 }
  0x35   : > { %8236 = dma.done.wait (%p7665_p2), [#allocation15], 64  }
  0x36   : > { %8238 = vsyncadd (%p7665_p2), [#allocation15], 4294967232  ;;  %p568_p6 = scmp.lt.s32.totalorder %s8338_s25, 1  ;;  %v8260_v0 = vmov 0   ;;  %vm624_vm0 = vcmask 1041408   ;;  %vm611_vm1 = vcmask 31744  }
  0x37   : > { %7712 = vset.pattern.permute.xlu0 %v8260_v0  ;;  %7713 = vset.pattern.permute.xlu1 %v8260_v0  ;;  %v606_v1 = vld [vmem:[#allocation3] sm:$0x3]  ;;  %v5705_v14 = vld [vmem:[#allocation5 + $0x70] sm:$0xf]  ;;  %v7223_v15 = vld [vmem:[#allocation5 + $0x74] sm:$0xf0] }
  0x38   : > { %s9411_s25 = smov (!%p568_p6, %s8338_s25), 1  ;;  %7714 = vset.pattern.permute.xlu2 %v8260_v0  ;;  %v626_v3 = vsel %vm624_vm0, %v606_v1, 0  ;;  %v7222_v16 = vld [vmem:[#allocation5 + $0x74] sm:$0xf]  ;;  %v5706_v17 = vor.u32 %v7223_v15, %v5705_v14  ;;  %v5707_v18 = vld [vmem:[#allocation5 + $0x78] sm:$0xf0] }
  0x39   : > { %s8445_s3 = sshll.u32 %s9411_s25, 6  ;;  %635 = vmatpush.bf16.msra.mxu0 %v626_v3  ;;  %7592 = vmatpush.bf16.msra.mxu3 %v626_v3  ;;  %v5710_v19 = vor.u32 %v7222_v16, %v5707_v18  ;;  %v5697_v29 = vld [vmem:[#allocation5 + $0x60] sm:$0xf]  ;;  %v7221_v30 = vld [vmem:[#allocation5 + $0x64] sm:$0xf0]  ;;  %v8261_v63 = vmov 0.0  }
  0x3a   : > { %s8451_s18 = scalar_lea.vmem %s9368_s0, %s8445_s3  ;;  %s8457_s24 = scalar_lea.vmem %s9369_s1, %s8445_s3  ;;  %1043 = vmatpush.bf16.msra.mxu1 %v5706_v17  ;;  %7593 = vmatpush.bf16.msra.mxu2 %v5706_v17  ;;  %v7220_v31 = vld [vmem:[#allocation5 + $0x64] sm:$0xf]  ;;  %v5698_v32 = vor.u32 %v7221_v30, %v5697_v29  ;;  %v5699_v33 = vld [vmem:[#allocation5 + $0x68] sm:$0xf0]  ;;  %v5689_v35 = vld [vmem:[#allocation5 + $0x50] sm:$0xf] }
  0x3b   : > { %v8460_v2 = vld [vmem:[%s8451_s18] sm:$0xff]  ;;  %v8464_v4 = vld [vmem:[%s8451_s18 + $0x8] sm:$0xff]  ;;  %v589_v9 = vld [vmem:[%s8457_s24 + $0x18] sm:$0xff]  ;;  %v5702_v34 = vor.u32 %v7220_v31, %v5699_v33  ;;  %584 = vst [vmem:[#allocation2] sm:$0xff] %v8261_v63  ;;  %s8262_s25 = smov 124   ;;  %vm5450_vm2 = vcmask 64512  }
  0x3c   : > { %v8467_v5 = vld [vmem:[%s8451_s18 + $0x20] sm:$0xff]  ;;  %v8470_v6 = vld [vmem:[%s8451_s18 + $0x28] sm:$0xff]  ;;  %v602_v7 = vpack.c.bf16 %v8464_v4, %v8460_v2  ;;  %674 = vperm.xlu0 %7712, %v589_v9   ;;  %v593_v11 = vld [vmem:[%s8457_s24 + $0x38] sm:$0xff]  ;;  %585 = vst [vmem:[#allocation2 + $0x48] sm:$0xff] %v8261_v63 }
  0x3d   : > { %v604_v8 = vpack.c.bf16 %v8470_v6, %v8467_v5  ;;  %v591_v10 = vld [vmem:[%s8457_s24 + $0x28] sm:$0xff]  ;;  %v590_v12 = vld [vmem:[%s8457_s24 + $0x20] sm:$0xff]  ;;  %v592_v13 = vld [vmem:[%s8457_s24 + $0x30] sm:$0xff]  ;;  %694 = vperm.xlu2 %7714, %v593_v11   ;;  %1130 = vmatpush.bf16.msrb.mxu0 %v5710_v19 }
  0x3e   : > { %684 = vperm.xlu1 %7713, %v591_v10   ;;  %5643 = vmatmul.msk.bf16.vlgmr.msra.gmra.mxu0 %vm611_vm1, %v602_v7  ;;  %v586_v20 = vld [vmem:[%s8457_s24] sm:$0xff]  ;;  %v8485_v21 = vld [vmem:[%s8451_s18 + $0x10] sm:$0xff]  ;;  %v8488_v22 = vld [vmem:[%s8451_s18 + $0x18] sm:$0xff] }
  0x3f   : > { %5645 = vmatmul.msk.bf16.vlgmr.msra.gmra.mxu3 %vm611_vm1, %v604_v8  ;;  %v8491_v23 = vld [vmem:[%s8451_s18 + $0x30] sm:$0xff]  ;;  %v8494_v24 = vld [vmem:[%s8451_s18 + $0x38] sm:$0xff]  ;;  %v587_v25 = vld [vmem:[%s8457_s24 + $0x8] sm:$0xff]  ;;  %v603_v27 = vpack.c.bf16 %v8488_v22, %v8485_v21  ;;  %1044 = vmatpush.bf16.msra.mxu1 %v5698_v32 }
  0x40   : > { %v588_v26 = vld [vmem:[%s8457_s24 + $0x10] sm:$0xff]  ;;  %v605_v28 = vpack.c.bf16 %v8494_v24, %v8491_v23  ;;  %7594 = vmatpush.bf16.msra.mxu2 %v5698_v32  ;;  %v7219_v36 = vld [vmem:[#allocation5 + $0x54] sm:$0xf0]  ;;  %v5833_v37 = vld [vmem:[#allocation5 + $0x170] sm:$0xf]  ;;  %s8263_s24 = smov 4  }
  0x41   : > { %1131 = vmatpush.bf16.msrb.mxu0 %v5702_v34  ;;  %v5690_v38 = vor.u32 %v7219_v36, %v5689_v35  ;;  %v7255_v39 = vld [vmem:[#allocation5 + $0x174] sm:$0xf0]  ;;  %v7218_v40 = vld [vmem:[#allocation5 + $0x54] sm:$0xf]  ;;  %v5691_v41 = vld [vmem:[#allocation5 + $0x58] sm:$0xf0] }
  0x42   : > { %v5834_v42 = vor.u32 %v7255_v39, %v5833_v37  ;;  %v5694_v43 = vor.u32 %v7218_v40, %v5691_v41  ;;  %v5681_v45 = vld [vmem:[#allocation5 + $0x40] sm:$0xf]  ;;  %v7217_v46 = vld [vmem:[#allocation5 + $0x44] sm:$0xf0]  ;;  %v7216_v50 = vld [vmem:[#allocation5 + $0x44] sm:$0xf] }
  0x43   : > { %1045 = vmatpush.bf16.msra.mxu1 %v5690_v38  ;;  %v5825_v47 = vld [vmem:[#allocation5 + $0x160] sm:$0xf]  ;;  %v5682_v48 = vor.u32 %v7217_v46, %v5681_v45  ;;  %v7253_v49 = vld [vmem:[#allocation5 + $0x164] sm:$0xf0]  ;;  %v5683_v51 = vld [vmem:[#allocation5 + $0x48] sm:$0xf0] }
  0x44   : > { %679 = vperm.xlu0 %7712, %v590_v12   ;;  %7595 = vmatpush.bf16.msra.mxu2 %v5690_v38  ;;  %v5826_v52 = vor.u32 %v7253_v49, %v5825_v47  ;;  %v5686_v53 = vor.u32 %v7216_v50, %v5683_v51  ;;  %v5673_v54 = vld [vmem:[#allocation5 + $0x30] sm:$0xf]  ;;  %v7215_v55 = vld [vmem:[#allocation5 + $0x34] sm:$0xf0]  ;;  %v7214_v59 = vld [vmem:[#allocation5 + $0x34] sm:$0xf] }
  0x45   : > { %659 = vperm.xlu2 %7714, %v586_v20   ;;  %1101 = vmatpush.bf16.msrb.mxu3 %v5834_v42  ;;  %v5817_v56 = vld [vmem:[#allocation5 + $0x150] sm:$0xf]  ;;  %v5674_v57 = vor.u32 %v7215_v55, %v5673_v54  ;;  %v7251_v58 = vld [vmem:[#allocation5 + $0x154] sm:$0xf0]  ;;  %v5675_v60 = vld [vmem:[#allocation5 + $0x38] sm:$0xf0] }
  0x46   : > { %689 = vperm.xlu1 %7713, %v592_v13   ;;  %1132 = vmatpush.bf16.msrb.mxu0 %v5694_v43  ;;  %v5818_v61 = vor.u32 %v7251_v58, %v5817_v56  ;;  %v5678_v62 = vor.u32 %v7214_v59, %v5675_v60  ;;  %v5665_v0 = vld [vmem:[#allocation5 + $0x20] sm:$0xf]  ;;  %v7213_v1 = vld [vmem:[#allocation5 + $0x24] sm:$0xf0]  ;;  %v7212_v10 = vld [vmem:[#allocation5 + $0x24] sm:$0xf] }
  0x47   : > { %1046 = vmatpush.bf16.msra.mxu1 %v5682_v48  ;;  %v5809_v3 = vld [vmem:[#allocation5 + $0x140] sm:$0xf]  ;;  %v5666_v8 = vor.u32 %v7213_v1, %v5665_v0  ;;  %v7249_v9 = vld [vmem:[#allocation5 + $0x144] sm:$0xf0]  ;;  %v5667_v11 = vld [vmem:[#allocation5 + $0x28] sm:$0xf0] }
  0x48   : > { %7596 = vmatpush.bf16.msra.mxu2 %v5682_v48  ;;  %v5810_v12 = vor.u32 %v7249_v9, %v5809_v3  ;;  %v5670_v13 = vor.u32 %v7212_v10, %v5667_v11  ;;  %v5657_v15 = vld [vmem:[#allocation5 + $0x10] sm:$0xf]  ;;  %v7211_v16 = vld [vmem:[#allocation5 + $0x14] sm:$0xf0]  ;;  %v7210_v20 = vld [vmem:[#allocation5 + $0x14] sm:$0xf] }
  0x49   : > { %1102 = vmatpush.bf16.msrb.mxu3 %v5826_v52  ;;  %v5801_v17 = vld [vmem:[#allocation5 + $0x130] sm:$0xf]  ;;  %v5658_v18 = vor.u32 %v7211_v16, %v5657_v15  ;;  %v7247_v19 = vld [vmem:[#allocation5 + $0x134] sm:$0xf0]  ;;  %v5793_v29 = vld [vmem:[#allocation5 + $0x120] sm:$0xf] }
  0x4a   : > { %1133 = vmatpush.bf16.msrb.mxu0 %v5686_v53  ;;  %v7245_v31 = vld [vmem:[#allocation5 + $0x124] sm:$0xf0]  ;;  %v7208_v32 = vld [vmem:[#allocation5 + $0x4] sm:$0xf]  ;;  %v5651_v33 = vld [vmem:[#allocation5 + $0x8] sm:$0xf0] }
  0x4b   : > { %1047 = vmatpush.bf16.msra.mxu1 %v5674_v57  ;;  %v5794_v36 = vor.u32 %v7245_v31, %v5793_v29  ;;  %v5654_v37 = vor.u32 %v7208_v32, %v5651_v33  ;;  %v5785_v39 = vld [vmem:[#allocation5 + $0x110] sm:$0xf]  ;;  %v7243_v40 = vld [vmem:[#allocation5 + $0x114] sm:$0xf0]  ;;  %v7238_v41 = vld [vmem:[#allocation5 + $0xf4] sm:$0xf] }
  0x4c   : > { %664 = vperm.xlu0 %7712, %v587_v25   ;;  %7597 = vmatpush.bf16.msra.mxu2 %v5674_v57  ;;  %v5659_v25 = vld [vmem:[#allocation5 + $0x18] sm:$0xf0]  ;;  %v5786_v42 = vor.u32 %v7243_v40, %v5785_v39  ;;  %v5777_v46 = vld [vmem:[#allocation5 + $0x100] sm:$0xf]  ;;  %v7241_v47 = vld [vmem:[#allocation5 + $0x104] sm:$0xf0] }
  0x4d   : > { %1103 = vmatpush.bf16.msrb.mxu3 %v5818_v61  ;;  %v5771_v43 = vld [vmem:[#allocation5 + $0xf8] sm:$0xf0]  ;;  %v7236_v48 = vld [vmem:[#allocation5 + $0xe4] sm:$0xf]  ;;  %v5778_v49 = vor.u32 %v7241_v47, %v5777_v46  ;;  %v8532_v54 = vld [vmem:[#allocation10] ss:$0 sm:$0xff] }
  0x4e   : > { %669 = vperm.xlu1 %7713, %v588_v26   ;;  %5644 = vmatmul.msk.bf16.gmra.mxu0 %vm611_vm1, %v603_v27  ;;  %v5802_v26 = vor.u32 %v7247_v19, %v5801_v17  ;;  %v5662_v27 = vor.u32 %v7210_v20, %v5659_v25  ;;  %v5774_v45 = vor.u32 %v7238_v41, %v5771_v43  ;;  %v7234_v55 = vld [vmem:[#allocation5 + $0xd4] sm:$0xf]  ;;  %v5755_v56 = vld [vmem:[#allocation5 + $0xd8] sm:$0xf0]  ;;  %v7232_v60 = vld [vmem:[#allocation5 + $0xc4] sm:$0xf] }
  0x4f   : > { %5646 = vmatmul.msk.bf16.gmra.mxu3 %vm611_vm1, %v605_v28  ;;  %1134 = vmatpush.bf16.msrb.mxu0 %v5678_v62  ;;  %v7209_v28 = vld [vmem:[#allocation5 + $0x4] sm:$0xf0]  ;;  %v5758_v57 = vor.u32 %v7234_v55, %v5755_v56  ;;  %v5747_v61 = vld [vmem:[#allocation5 + $0xc8] sm:$0xf0]  ;;  %v7239_v9 = vld [vmem:[#allocation5 + $0xf4] sm:$0xf0] }
  0x50   : > { %1048 = vmatpush.bf16.msra.mxu1 %v5666_v8  ;;  %7598 = vmatpush.bf16.msra.mxu2 %v5666_v8  ;;  %v5750_v62 = vor.u32 %v7232_v60, %v5747_v61  ;;  %v5769_v8 = vld [vmem:[#allocation5 + $0xf0] sm:$0xf]  ;;  %v5761_v16 = vld [vmem:[#allocation5 + $0xe0] sm:$0xf]  ;;  %v7237_v17 = vld [vmem:[#allocation5 + $0xe4] sm:$0xf0] }
  0x51   : > { %1104 = vmatpush.bf16.msrb.mxu3 %v5810_v12  ;;  %v5770_v11 = vor.u32 %v7239_v9, %v5769_v8  ;;  %v7230_v12 = vld [vmem:[#allocation5 + $0xb4] sm:$0xf]  ;;  %v5762_v25 = vor.u32 %v7237_v17, %v5761_v16  ;;  %v5745_v39 = vld [vmem:[#allocation5 + $0xc0] sm:$0xf]  ;;  %v7233_v40 = vld [vmem:[#allocation5 + $0xc4] sm:$0xf0] }
  0x52   : > { %v7224_v41 = vld [vmem:[#allocation5 + $0x84] sm:$0xf]  ;;  %v5746_v43 = vor.u32 %v7233_v40, %v5745_v39  ;;  %v7229_v8 = vld [vmem:[#allocation5 + $0xa4] sm:$0xf0] }
  0x53   : > { %1135 = vmatpush.bf16.msrb.mxu0 %v5670_v13 }
  0x54   : > { %1049 = vmatpush.bf16.msra.mxu1 %v5658_v18  ;;  %7599 = vmatpush.bf16.msra.mxu2 %v5658_v18  ;;  %v7228_v18 = vld [vmem:[#allocation5 + $0xa4] sm:$0xf] }
  0x55   : > { %1105 = vmatpush.bf16.msrb.mxu3 %v5802_v26  ;;  %v5731_v26 = vld [vmem:[#allocation5 + $0xa8] sm:$0xf0] }
  0x57   : > { %1136 = vmatpush.bf16.msrb.mxu0 %v5662_v27  ;;  %v5753_v27 = vld [vmem:[#allocation5 + $0xd0] sm:$0xf] }
  0x59   : > { %1106 = vmatpush.bf16.msrb.mxu3 %v5794_v36 }
  0x5b   : > { %1137 = vmatpush.bf16.msrb.mxu0 %v5654_v37 }
  0x5d   : > { %1107 = vmatpush.bf16.msrb.mxu3 %v5786_v42 }
  0x61   : > { %1108 = vmatpush.bf16.msrb.mxu3 %v5778_v49 }
  0x97   : > { %v8504_v44 = vpop.permute.xlu2 %694 }
  0x98   : > { %v8586_v49 = vmul.f32 %v8504_v44, %v8494_v24 }
  0x9a   : > { %9406 = vst [vmem:[#allocation24_spill] sm:$0xff] %v8586_v49 }
  0x9f   : > { %v8506_v7 = vpop.permute.xlu2 %659 }
  0xa0   : > { %v8510_v14 = vmul.f32 %v8506_v7, %v8460_v2  ;;  %v5649_v2 = vld [vmem:[#allocation5] sm:$0xf] }
  0xa1   : > { %v5650_v30 = vor.u32 %v7209_v28, %v5649_v2  ;;  %v7235_v2 = vld [vmem:[#allocation5 + $0xd4] sm:$0xf0] }
  0xa2   : > { %3010 = vrot.lane.b32.xlu2 %v8510_v14, %s8262_s25  ;;  %v5754_v32 = vor.u32 %v7235_v2, %v5753_v27 }
  0xa3   : > { %1050 = vmatpush.bf16.msra.mxu1 %v5650_v30  ;;  %7600 = vmatpush.bf16.msra.mxu2 %v5650_v30  ;;  %v5734_v30 = vor.u32 %v7228_v18, %v5731_v26  ;;  %v7225_v26 = vld [vmem:[#allocation5 + $0x84] sm:$0xf0] }
  0xa7   : > { %1159 = vmatpush.bf16.msrb.mxu1 %v5774_v45  ;;  %1072 = vmatpush.bf16.msrb.mxu2 %v5770_v11  ;;  %v5715_v45 = vld [vmem:[#allocation5 + $0x88] sm:$0xf0] }
  0xab   : > { %1073 = vmatpush.bf16.msrb.mxu2 %v5762_v25  ;;  %v5713_v25 = vld [vmem:[#allocation5 + $0x80] sm:$0xf] }
  0xac   : > { %v5714_v2 = vor.u32 %v7225_v26, %v5713_v25 }
  0xae   : > { %v8514_v34 = vpop.permute.xlu0 %674 }
  0xaf   : > { %v8520_v38 = vmul.f32 %v8514_v34, %v8488_v22  ;;  %v5763_v22 = vld [vmem:[#allocation5 + $0xe8] sm:$0xf0]  ;;  %1074 = vmatpush.bf16.msrb.mxu2 %v5754_v32 }
  0xb0   : > { %v8516_v35 = vpop.permute.xlu1 %684  ;;  %v5766_v52 = vor.u32 %v7236_v48, %v5763_v22  ;;  %v5718_v48 = vor.u32 %v7224_v41, %v5715_v45  ;;  %v5827_v45 = vld [vmem:[#allocation5 + $0x168] sm:$0xf0] }
  0xb1   : > { %3016 = vrot.lane.b32.xlu2 %v8520_v38, %s8262_s25  ;;  %v8568_v29 = vmul.f32 %v8516_v35, %v8470_v6  ;;  %v5723_v6 = vld [vmem:[#allocation5 + $0x98] sm:$0xf0] }
  0xb2   : > { %1160 = vmatpush.bf16.msrb.mxu1 %v5766_v52 }
  0xb3   : > { %9405 = vst [vmem:[#allocation23_spill] sm:$0xff] %v8568_v29  ;;  %1075 = vmatpush.bf16.msrb.mxu2 %v5746_v43  ;;  %v7252_v43 = vld [vmem:[#allocation5 + $0x164] sm:$0xf] }
  0xb6   : > { %v8524_v50 = vpop.permute.xlu0 %679  ;;  %1161 = vmatpush.bf16.msrb.mxu1 %v5758_v57 }
  0xb7   : > { %v8564_v28 = vmul.f32 %v8524_v50, %v8467_v5  ;;  %v7226_v5 = vld [vmem:[#allocation5 + $0x94] sm:$0xf] }
  0xb8   : > { %v8526_v51 = vpop.permute.xlu1 %689  ;;  %v5726_v37 = vor.u32 %v7226_v5, %v5723_v6 }
  0xb9   : > { %v8530_v53 = vmul.f32 %v8526_v51, %v8491_v23 }
  0xba   : > { %1162 = vmatpush.bf16.msrb.mxu1 %v5750_v62  ;;  %v5729_v62 = vld [vmem:[#allocation5 + $0xa0] sm:$0xf] }
  0xbb   : > { %9404 = vst [vmem:[#allocation22_spill] sm:$0xff] %v8530_v53  ;;  %3022 = vrot.lane.b32.xlu2 %v8530_v53, %s8262_s25  ;;  %v637_v58 = vpop.f32.mrf.mxu0  ;;  %v5730_v11 = vor.u32 %v7229_v8, %v5729_v62  ;;  %v7246_v8 = vld [vmem:[#allocation5 + $0x134] sm:$0xf] }
  0xbc   : > { %v638_v59 = vadd.f32 %v8532_v54, %v637_v58  ;;  %v5737_v58 = vld [vmem:[#allocation5 + $0xb0] sm:$0xf] }
  0xbe   : > { %v8538_v23 = vmul.f32 %v8506_v7, %v638_v59  ;;  %v8540_v63 = vpop.permute.xlu0 %664  ;;  %v7231_v59 = vld [vmem:[#allocation5 + $0xb4] sm:$0xf0] }
  0xbf   : > { %v8546_v1 = vmul.f32 %v8540_v63, %v8464_v4  ;;  %v5739_v4 = vld [vmem:[#allocation5 + $0xb8] sm:$0xf0]  ;;  %v5738_v60 = vor.u32 %v7231_v59, %v5737_v58  ;;  %v7248_v59 = vld [vmem:[#allocation5 + $0x144] sm:$0xf] }
  0xc0   : > { %v8542_v0 = vpop.permute.xlu1 %669  ;;  %705 = vst [vmem:[#allocation2 + $0x8] sm:$0xff] %v8538_v23  ;;  %v5742_v15 = vor.u32 %v7230_v12, %v5739_v4  ;;  %v5721_v12 = vld [vmem:[#allocation5 + $0x90] sm:$0xf]  ;;  %v7227_v4 = vld [vmem:[#allocation5 + $0x94] sm:$0xf0] }
  0xc1   : > { %v8550_v3 = vmul.f32 %v8542_v0, %v8485_v21  ;;  %3012 = vrot.lane.b32.xlu0 %v8546_v1, %s8262_s25  ;;  %1076 = vmatpush.bf16.msrb.mxu2 %v5738_v60  ;;  %v5722_v17 = vor.u32 %v7227_v4, %v5721_v12  ;;  %v5819_v58 = vld [vmem:[#allocation5 + $0x158] sm:$0xf0]  ;;  %v5811_v60 = vld [vmem:[#allocation5 + $0x148] sm:$0xf0] }
  0xc2   : > { %v647_v10 = vpop.f32.mrf.mxu3  ;;  %1163 = vmatpush.bf16.msrb.mxu1 %v5742_v15  ;;  %v5814_v62 = vor.u32 %v7248_v59, %v5811_v60  ;;  %v5899_v60 = vld [vmem:[#allocation7 + $0x78] sm:$0xf0] }
  0xc3   : > { %3014 = vrot.lane.b32.xlu1 %v8550_v3, %s8262_s25  ;;  %v648_v13 = vadd.f32 %v8532_v54, %v647_v10  ;;  %v639_v21 = vpop.f32.mrf.mxu0 }
  0xc4   : > { %v640_v20 = vadd.f32 %v8532_v54, %v639_v21 }
  0xc5   : > { %v8559_v19 = vmul.f32 %v8524_v50, %v648_v13  ;;  %1077 = vmatpush.bf16.msrb.mxu2 %v5730_v11 }
  0xc6   : > { %v8572_v31 = vmul.f32 %v8540_v63, %v640_v20  ;;  %1164 = vmatpush.bf16.msrb.mxu1 %v5734_v30 }
  0xc7   : > { %709 = vst [vmem:[#allocation2 + $0x28] sm:$0xff] %v8559_v19  ;;  %v713_v52 = vld [vmem:[#allocation2 + $0x7] sm:$0xff] }
  0xc8   : > { %706 = vst [vmem:[#allocation2 + $0x10] sm:$0xff] %v8572_v31 }
  0xc9   : > { %3018 = vrot.lane.b32.xlu0 %v8564_v28, %s8262_s25  ;;  %1078 = vmatpush.bf16.msrb.mxu2 %v5722_v17 }
  0xca   : > { %v649_v33 = vpop.f32.mrf.mxu3  ;;  %1165 = vmatpush.bf16.msrb.mxu1 %v5726_v37  ;;  %v5835_v37 = vld [vmem:[#allocation5 + $0x178] sm:$0xf0] }
  0xcb   : > { %3020 = vrot.lane.b32.xlu1 %v8568_v29, %s8262_s25  ;;  %v650_v36 = vadd.f32 %v8532_v54, %v649_v33  ;;  %v642_v42 = vpop.f32.mrf.mxu0 }
  0xcc   : > { %v643_v47 = vadd.f32 %v8532_v54, %v642_v42 }
  0xcd   : > { %v8581_v46 = vmul.f32 %v8516_v35, %v650_v36  ;;  %1079 = vmatpush.bf16.msrb.mxu2 %v5714_v2 }
  0xce   : > { %v8590_v22 = vmul.f32 %v8542_v0, %v643_v47  ;;  %1166 = vmatpush.bf16.msrb.mxu1 %v5718_v48  ;;  %v5830_v47 = vor.u32 %v7252_v43, %v5827_v45  ;;  %v7267_v43 = vld [vmem:[#allocation7 + $0x54] sm:$0xf0] }
  0xcf   : > { %710 = vst [vmem:[#allocation2 + $0x30] sm:$0xff] %v8581_v46  ;;  %v714_v55 = vld [vmem:[#allocation2 + $0xf] sm:$0xff] }
  0xd0   : > { %707 = vst [vmem:[#allocation2 + $0x18] sm:$0xff] %v8590_v22  ;;  %v737_v56 = vpack.c.bf16 %v714_v55, %v713_v52  ;;  %v729_v15 = vld [vmem:[#allocation2 + $0x9] sm:$0xff] }
  0xd1   : > { %3024 = vrot.lane.b32.xlu0 %v8586_v49, %s8262_s25  ;;  %s9324_s25 = scalar_lea.vmem %s9380_s12, %s8445_s3 }
  0xd2   : > { %v652_v57 = vpop.f32.mrf.mxu3  ;;  %1051 = vmatmul.bf16.vlgmr.msra.gmra.mxu1 %v737_v56  ;;  %1138 = vmatmul.bf16.vlgmr.msrb.gmra.mxu0 %v737_v56  ;;  %v738_v56 = vpack.c.bf16 %v8572_v31, %v8538_v23  ;;  %v7244_v31 = vld [vmem:[#allocation5 + $0x124] sm:$0xf] }
  0xd3   : > { %v653_v24 = vadd.f32 %v8532_v54, %v652_v57  ;;  %v644_v61 = vpop.f32.mrf.mxu0  ;;  %v7250_v57 = vld [vmem:[#allocation5 + $0x154] sm:$0xf] }
  0xd4   : > { %v645_v10 = vadd.f32 %v8532_v54, %v644_v61 }
  0xd5   : > { %v8597_v9 = vmul.f32 %v8526_v51, %v653_v24  ;;  %v5822_v24 = vor.u32 %v7250_v57, %v5819_v58  ;;  %v797_v58 = vld [vmem:[#allocation11] sm:$0x3] }
  0xd6   : > { %v700_v13 = vmul.f32 %v8514_v34, %v645_v10  ;;  %v718_v30 = vld [vmem:[#allocation2 + $0x2f] sm:$0xff] }
  0xd7   : > { %711 = vst [vmem:[#allocation2 + $0x38] sm:$0xff] %v8597_v9  ;;  %v730_v21 = vld [vmem:[#allocation2 + $0x11] sm:$0xff]  ;;  %v733_v11 = vld [vmem:[#allocation2 + $0x29] sm:$0xff] }
  0xd8   : > { %708 = vst [vmem:[#allocation2 + $0x20] sm:$0xff] %v700_v13  ;;  %v8602_v16 = vpack.c.bf16 %v730_v21, %v729_v15  ;;  %v715_v32 = vld [vmem:[#allocation2 + $0x17] sm:$0xff]  ;;  %v5803_v10 = vld [vmem:[#allocation5 + $0x138] sm:$0xf0]  ;;  %v741_v23 = vpack.c.bf16 %v700_v13, %v8590_v22  ;;  %v5795_v15 = vld [vmem:[#allocation5 + $0x128] sm:$0xf0] }
  0xd9   : > { %v5806_v4 = vor.u32 %v7246_v8, %v5803_v10  ;;  %v7242_v21 = vld [vmem:[#allocation5 + $0x114] sm:$0xf]  ;;  %v5798_v17 = vor.u32 %v7244_v31, %v5795_v15  ;;  %v7240_v22 = vld [vmem:[#allocation5 + $0x104] sm:$0xf]  ;;  %v5779_v13 = vld [vmem:[#allocation5 + $0x108] sm:$0xf0] }
  0xda   : > { %v654_v18 = vpop.f32.mrf.mxu3  ;;  %1109 = vmatmul.bf16.vlgmr.msrb.gmra.mxu3 %v8602_v16  ;;  %v5865_v8 = vld [vmem:[#allocation7 + $0x30] sm:$0xf]  ;;  %v7263_v10 = vld [vmem:[#allocation7 + $0x34] sm:$0xf0] }
  0xdb   : > { %v655_v20 = vadd.f32 %v8532_v54, %v654_v18  ;;  %v7254_v54 = vld [vmem:[#allocation5 + $0x174] sm:$0xf]  ;;  %v5787_v18 = vld [vmem:[#allocation5 + $0x118] sm:$0xf0] }
  0xdc   : > { %v5838_v39 = vor.u32 %v7254_v54, %v5835_v37  ;;  %v5790_v26 = vor.u32 %v7242_v21, %v5787_v18  ;;  %v7271_v54 = vld [vmem:[#allocation7 + $0x74] sm:$0xf0]  ;;  %v5883_v18 = vld [vmem:[#allocation7 + $0x58] sm:$0xf0] }
  0xdd   : > { %v8607_v27 = vmul.f32 %v8504_v44, %v655_v20 }
  0xde   : > { %v719_v52 = vld [vmem:[#allocation2 + $0x37] sm:$0xff] }
  0xdf   : > { %712 = vst [vmem:[#allocation2 + $0x40] sm:$0xff] %v8607_v27  ;;  %v716_v33 = vld [vmem:[#allocation2 + $0x1f] sm:$0xff]  ;;  %v717_v5 = vld [vmem:[#allocation2 + $0x27] sm:$0xff]  ;;  %v734_v61 = vld [vmem:[#allocation2 + $0x31] sm:$0xff] }
  0xe0   : > { %v740_v6 = vpack.c.bf16 %v716_v33, %v715_v32  ;;  %v743_v36 = vpack.c.bf16 %v718_v30, %v717_v5  ;;  %v731_v40 = vld [vmem:[#allocation2 + $0x19] sm:$0xff]  ;;  %v732_v41 = vld [vmem:[#allocation2 + $0x21] sm:$0xff]  ;;  %v745_v12 = vpack.c.bf16 %v734_v61, %v733_v11  ;;  %v744_v30 = vpack.c.bf16 %v8581_v46, %v8559_v19 }
  0xe1   : > { %v742_v42 = vpack.c.bf16 %v732_v41, %v731_v40  ;;  %v5782_v32 = vor.u32 %v7240_v22, %v5779_v13  ;;  %v747_v33 = vpack.c.bf16 %v8607_v27, %v8597_v9  ;;  %v5889_v9 = vld [vmem:[#allocation7 + $0x60] sm:$0xf]  ;;  %v7269_v27 = vld [vmem:[#allocation7 + $0x64] sm:$0xf0]  ;;  %v5866_v11 = vor.u32 %v7263_v10, %v5865_v8 }
  0xe2   : > { %1056 = vmatmul.bf16.gmra.mxu1 %v740_v6  ;;  %1061 = vmatmul.bf16.vlgmr.msra.gmra.mxu2 %v743_v36 }
  0xe3   : > { %1143 = vmatmul.bf16.gmra.mxu0 %v740_v6  ;;  %1188 = vmatpush.bf16.msra.mxu2 %v5838_v39 }
  0xe6   : > { %v720_v48 = vld [vmem:[#allocation2 + $0x3f] sm:$0xff] }
  0xe7   : > { %1189 = vmatpush.bf16.msra.mxu2 %v5830_v47  ;;  %v746_v55 = vpack.c.bf16 %v720_v48, %v719_v52  ;;  %v735_v20 = vld [vmem:[#allocation2 + $0x39] sm:$0xff]  ;;  %v736_v25 = vld [vmem:[#allocation2 + $0x41] sm:$0xff]  ;;  %v5873_v52 = vld [vmem:[#allocation7 + $0x40] sm:$0xf] }
  0xe8   : > { %v748_v2 = vpack.c.bf16 %v736_v25, %v735_v20 }
  0xea   : > { %1114 = vmatmul.bf16.gmra.mxu3 %v742_v42 }
  0xeb   : > { %1190 = vmatpush.bf16.msra.mxu2 %v5822_v24  ;;  %v7270_v24 = vld [vmem:[#allocation7 + $0x74] sm:$0xf] }
  0xec   : > { %v5902_v61 = vor.u32 %v7270_v24, %v5899_v60  ;;  %v7258_v24 = vld [vmem:[#allocation7 + $0x14] sm:$0xf] }
  0xee   : > { %1400 = vmatpush.bf16.msra.mxu0 %v5902_v61  ;;  %v5851_v61 = vld [vmem:[#allocation7 + $0x18] sm:$0xf0] }
  0xef   : > { %1191 = vmatpush.bf16.msra.mxu2 %v5814_v62  ;;  %v8636_v62 = vperm.slane %v797_v58, 0  ;;  %v5854_v10 = vor.u32 %v7258_v24, %v5851_v61 }
  0xf2   : > { %1066 = vmatmul.bf16.gmra.mxu2 %v746_v55  ;;  %1167 = vmatmul.bf16.vlgmr.msrb.gmra.mxu1 %v738_v56 }
  0xf3   : > { %1148 = vmatmul.bf16.gmra.mxu0 %v743_v36  ;;  %1192 = vmatpush.bf16.msra.mxu2 %v5806_v4  ;;  %v5897_v36 = vld [vmem:[#allocation7 + $0x70] sm:$0xf]  ;;  %v7268_v4 = vld [vmem:[#allocation7 + $0x64] sm:$0xf] }
  0xf4   : > { %v5898_v37 = vor.u32 %v7271_v54, %v5897_v36 }
  0xf6   : > { %1371 = vmatpush.bf16.msra.mxu3 %v5898_v37  ;;  %v5857_v37 = vld [vmem:[#allocation7 + $0x20] sm:$0xf] }
  0xf7   : > { %1193 = vmatpush.bf16.msra.mxu2 %v5798_v17  ;;  %v7266_v17 = vld [vmem:[#allocation7 + $0x54] sm:$0xf] }
  0xf8   : > { %v5886_v25 = vor.u32 %v7266_v17, %v5883_v18  ;;  %v5843_v17 = vld [vmem:[#allocation7 + $0x8] sm:$0xf0]  ;;  %v8650_v18 = vperm.slane %v797_v58, 1 }
  0xfa   : > { %1119 = vmatmul.bf16.gmra.mxu3 %v745_v12 }
  0xfb   : > { %1194 = vmatpush.bf16.msra.mxu2 %v5790_v26  ;;  %v7264_v26 = vld [vmem:[#allocation7 + $0x44] sm:$0xf] }
  0xff   : > { %1195 = vmatpush.bf16.msra.mxu2 %v5782_v32  ;;  %v7262_v32 = vld [vmem:[#allocation7 + $0x34] sm:$0xf] }
 0x102   : > { %1080 = vmatmul.bf16.vlgmr.msrb.gmra.mxu2 %v738_v56  ;;  %1172 = vmatmul.bf16.gmra.mxu1 %v741_v23 }
 0x103   : > { %1153 = vmatmul.bf16.gmra.mxu0 %v746_v55  ;;  %v7265_v55 = vld [vmem:[#allocation7 + $0x44] sm:$0xf0] }
 0x104   : > { %v5874_v56 = vor.u32 %v7265_v55, %v5873_v52  ;;  %v5849_v55 = vld [vmem:[#allocation7 + $0x10] sm:$0xf] }
 0x10a   : > { %1124 = vmatmul.bf16.gmra.mxu3 %v748_v2 }
 0x112   : > { %1085 = vmatmul.bf16.gmra.mxu2 %v741_v23  ;;  %1177 = vmatmul.bf16.gmra.mxu1 %v744_v30  ;;  %v5891_v23 = vld [vmem:[#allocation7 + $0x68] sm:$0xf0] }
 0x113   : > { %v5894_v15 = vor.u32 %v7268_v4, %v5891_v23  ;;  %v7256_v4 = vld [vmem:[#allocation7 + $0x4] sm:$0xf] }
 0x115   : > { %1401 = vmatpush.bf16.msra.mxu0 %v5894_v15 }
 0x119   : > { %1402 = vmatpush.bf16.msra.mxu0 %v5886_v25  ;;  %v5846_v25 = vor.u32 %v7256_v4, %v5843_v17 }
 0x122   : > { %1090 = vmatmul.bf16.gmra.mxu2 %v744_v30  ;;  %1182 = vmatmul.bf16.gmra.mxu1 %v747_v33 }
 0x132   : > { %1095 = vmatmul.bf16.gmra.mxu2 %v747_v33  ;;  %v5867_v33 = vld [vmem:[#allocation7 + $0x38] sm:$0xf0] }
 0x142   : > { %1196 = vmatmul.bf16.vlgmr.msra.gmra.mxu2 %v8602_v16  ;;  %v5890_v16 = vor.u32 %v7269_v27, %v5889_v9  ;;  %v7261_v9 = vld [vmem:[#allocation7 + $0x24] sm:$0xf0]  ;;  %v7260_v27 = vld [vmem:[#allocation7 + $0x24] sm:$0xf] }
 0x144   : > { %1372 = vmatpush.bf16.msra.mxu3 %v5890_v16 }
 0x14f   : > { %v8624_v40 = vpop.f32.mrf.mxu1  ;;  %v1139_v13 = vpop.f32.mrf.mxu0 }
 0x152   : > { %1201 = vmatmul.bf16.gmra.mxu2 %v742_v42  ;;  %v5881_v42 = vld [vmem:[#allocation7 + $0x50] sm:$0xf] }
 0x153   : > { %v5882_v45 = vor.u32 %v7267_v43, %v5881_v42  ;;  %v5858_v42 = vor.u32 %v7261_v9, %v5857_v37  ;;  %v5859_v43 = vld [vmem:[#allocation7 + $0x28] sm:$0xf0] }
 0x154   : > { %v5862_v52 = vor.u32 %v7260_v27, %v5859_v43  ;;  %v1053_v27 = vadd.f32 %v8624_v40, %v8636_v62 }
 0x155   : > { %1373 = vmatpush.bf16.msra.mxu3 %v5882_v45 }
 0x157   : > { %v8628_v47 = vpop.f32.mrf.mxu1  ;;  %v1141_v8 = vpop.f32.mrf.mxu0 }
 0x158   : > { %v1142_v9 = vadd.f32 %v1141_v8, %v8650_v18  ;;  %v1055_v58 = vadd.f32 %v8628_v47, %v8636_v62 }
 0x159   : > { %1374 = vmatpush.bf16.msra.mxu3 %v5874_v56  ;;  %v7259_v56 = vld [vmem:[#allocation7 + $0x14] sm:$0xf0] }
 0x15a   : > { %v5850_v60 = vor.u32 %v7259_v56, %v5849_v55 }
 0x15d   : > { %1375 = vmatpush.bf16.msra.mxu3 %v5866_v11  ;;  %v1110_v11 = vpop.f32.mrf.mxu3 }
 0x15f   : > { %v8634_v59 = vpop.f32.mrf.mxu1 }
 0x161   : > { %1376 = vmatpush.bf16.msra.mxu3 %v5858_v42 }
 0x162   : > { %1206 = vmatmul.bf16.gmra.mxu2 %v745_v12 }
 0x165   : > { %v1062_v5 = vpop.f32.mrf.mxu2  ;;  %1377 = vmatpush.bf16.msra.mxu3 %v5850_v60 }
 0x166   : > { %v1063_v12 = vadd.f32 %v1062_v5, %v8636_v62  ;;  %v5870_v5 = vor.u32 %v7262_v32, %v5867_v33  ;;  %v1112_v32 = vpop.f32.mrf.mxu3 }
 0x167   : > { %v8641_v20 = vpop.f32.mrf.mxu1 }
 0x16d   : > { %v8618_v6 = vpop.f32.mrf.mxu2 }
 0x16e   : > { %v1115_v55 = vpop.f32.mrf.mxu3 }
 0x16f   : > { %v1168_v36 = vpop.f32.mrf.mxu1 }
 0x172   : > { %1211 = vmatmul.bf16.gmra.mxu2 %v748_v2  ;;  %v5875_v2 = vld [vmem:[#allocation7 + $0x48] sm:$0xf0] }
 0x173   : > { %v5878_v22 = vor.u32 %v7264_v26, %v5875_v2  ;;  %v1140_v26 = vadd.f32 %v1139_v13, %v8650_v18  ;;  %v1144_v2 = vpop.f32.mrf.mxu0 }
 0x174   : > { %v1145_v8 = vadd.f32 %v1144_v2, %v8650_v18 }
 0x175   : > { %v1067_v19 = vpop.f32.mrf.mxu2  ;;  %1403 = vmatpush.bf16.msra.mxu0 %v5878_v22  ;;  %v1169_v22 = vadd.f32 %v1168_v36, %v1140_v26  ;;  %v1058_v26 = vadd.f32 %v8634_v59, %v8636_v62 }
 0x176   : > { %v1068_v54 = vadd.f32 %v1067_v19, %v8636_v62  ;;  %v5841_v19 = vld [vmem:[#allocation7] sm:$0xf] }
 0x177   : > { %v1170_v23 = vpop.f32.mrf.mxu1 }
 0x179   : > { %1404 = vmatpush.bf16.msra.mxu0 %v5870_v5 }
 0x17b   : > { %v1146_v43 = vpop.f32.mrf.mxu0 }
 0x17d   : > { %v8620_v46 = vpop.f32.mrf.mxu2  ;;  %1405 = vmatpush.bf16.msra.mxu0 %v5862_v52 }
 0x181   : > { %1406 = vmatpush.bf16.msra.mxu0 %v5854_v10 }
 0x183   : > { %v1149_v4 = vpop.f32.mrf.mxu0 }
 0x185   : > { %v8622_v39 = vpop.f32.mrf.mxu2  ;;  %1407 = vmatpush.bf16.msra.mxu0 %v5846_v25 }
 0x186   : > { %v1082_v42 = vadd.f32 %v8622_v39, %v1053_v27 }
 0x188   : > { %v1111_v24 = vadd.f32 %v1110_v11, %v1082_v42  ;;  %v1147_v11 = vadd.f32 %v1146_v43, %v8650_v18 }
 0x18d   : > { %v8626_v41 = vpop.f32.mrf.mxu2 }
 0x18e   : > { %v1084_v36 = vadd.f32 %v8626_v41, %v1055_v58  ;;  %v1117_v41 = vpop.f32.mrf.mxu3 }
 0x190   : > { %v1113_v40 = vadd.f32 %v1112_v32, %v1084_v36  ;;  %v1150_v36 = vadd.f32 %v1149_v4, %v8650_v18  ;;  %v1065_v4 = vadd.f32 %v8618_v6, %v8636_v62 }
 0x195   : > { %v8630_v48 = vpop.f32.mrf.mxu2 }
 0x19d   : > { %v8632_v57 = vpop.f32.mrf.mxu2 }
 0x1a5   : > { %v1091_v31 = vpop.f32.mrf.mxu2 }
 0x1a6   : > { %v8639_v21 = vadd.f32 %v1091_v31, %v1063_v12  ;;  %v7257_v12 = vld [vmem:[#allocation7 + $0x4] sm:$0xf0] }
 0x1a7   : > { %v5842_v15 = vor.u32 %v7257_v12, %v5841_v19 }
 0x1a9   : > { %1378 = vmatpush.bf16.msra.mxu3 %v5842_v15 }
 0x1ad   : > { %v8643_v30 = vpop.f32.mrf.mxu2 }
 0x1b5   : > { %v1096_v16 = vpop.f32.mrf.mxu2 }
 0x1b6   : > { %v8646_v45 = vadd.f32 %v1096_v16, %v1068_v54  ;;  %v1173_v54 = vpop.f32.mrf.mxu1  ;;  %v1171_v16 = vadd.f32 %v1170_v23, %v1142_v9 }
 0x1b7   : > { %v1174_v10 = vadd.f32 %v1173_v54, %v1145_v8  ;;  %v1087_v54 = vadd.f32 %v8630_v48, %v1058_v26  ;;  %v1094_v26 = vadd.f32 %v8643_v30, %v1065_v4 }
 0x1b9   : > { %v1116_v43 = vadd.f32 %v1115_v55, %v1087_v54  ;;  %v6025_v54 = vld [vmem:[#allocation5 + $0x270] sm:$0xf] }
 0x1bd   : > { %v8648_v31 = vpop.f32.mrf.mxu2 }
 0x1be   : > { %v1175_v60 = vpop.f32.mrf.mxu1 }
 0x1c5   : > { %v1197_v33 = vpop.f32.mrf.mxu2 }
 0x1c6   : > { %v1198_v5 = vadd.f32 %v1197_v33, %v1169_v22  ;;  %v1178_v2 = vpop.f32.mrf.mxu1  ;;  %v1060_v33 = vadd.f32 %v8641_v20, %v8636_v62 }
 0x1c8   : > { %v1225_v37 = vmul.f32 0.5, %v1198_v5  ;;  %v1176_v5 = vadd.f32 %v1175_v60, %v1147_v11  ;;  %v1089_v58 = vadd.f32 %v8632_v57, %v1060_v33 }
 0x1ca   : > { %7721 = vtanh.f32 %v1225_v37  ;;  %v1118_v20 = vadd.f32 %v1117_v41, %v1089_v58 }
 0x1cd   : > { %v1199_v13 = vpop.f32.mrf.mxu2 }
 0x1ce   : > { %v1200_v52 = vadd.f32 %v1199_v13, %v1171_v16  ;;  %v1180_v48 = vpop.f32.mrf.mxu1 }
 0x1d0   : > { %v1226_v56 = vmul.f32 0.5, %v1200_v52  ;;  %v7722_v61 = vpop.eup %7721  ;;  %v1151_v52 = vpop.f32.mrf.mxu0 }
 0x1d1   : > { %v1241_v47 = vmul.f32 0.5, %v7722_v61 }
 0x1d2   : > { %7723 = vtanh.f32 %v1226_v56  ;;  %v1120_v56 = vpop.f32.mrf.mxu3 }
 0x1d3   : > { %7725 = vtanh.f32 %v1111_v24  ;;  %v1249_v15 = vadd.f32 0.5, %v1241_v47  ;;  %v1179_v24 = vadd.f32 %v1178_v2, %v1150_v36  ;;  %v1152_v47 = vadd.f32 %v1151_v52, %v8650_v18 }
 0x1d4   : > { %7727 = vtanh.f32 %v1113_v40 }
 0x1d5   : > { %v1202_v19 = vpop.f32.mrf.mxu2  ;;  %v1181_v41 = vadd.f32 %v1180_v48, %v1152_v47  ;;  %v6009_v48 = vld [vmem:[#allocation5 + $0x250] sm:$0xf] }
 0x1d6   : > { %v1203_v39 = vadd.f32 %v1202_v19, %v1174_v10 }
 0x1d8   : > { %v7724_v12 = vpop.eup %7723  ;;  %v1227_v23 = vmul.f32 0.5, %v1203_v39 }
 0x1d9   : > { %v1242_v17 = vmul.f32 0.5, %v7724_v12  ;;  %v7726_v25 = vpop.eup %7725 }
 0x1da   : > { %v7728_v32 = vpop.eup %7727  ;;  %7729 = vtanh.f32 %v1227_v23  ;;  %v1257_v37 = vmul.f32 %v7726_v25, %v1249_v15  ;;  %v1154_v23 = vpop.f32.mrf.mxu0 }
 0x1db   : > { %v1250_v22 = vadd.f32 0.5, %v1242_v17  ;;  %v1122_v15 = vpop.f32.mrf.mxu3 }
 0x1dd   : > { %v1258_v9 = vmul.f32 %v7728_v32, %v1250_v22  ;;  %v1204_v27 = vpop.f32.mrf.mxu2  ;;  %v1183_v22 = vpop.f32.mrf.mxu1 }
 0x1de   : > { %v1205_v16 = vadd.f32 %v1204_v27, %v1176_v5  ;;  %v1121_v5 = vadd.f32 %v1120_v56, %v8639_v21  ;;  %v1123_v27 = vadd.f32 %v1122_v15, %v1094_v26  ;;  %v7285_v21 = vld [vmem:[#allocation5 + $0x1e4] sm:$0xf0]  ;;  %v5937_v26 = vld [vmem:[#allocation5 + $0x1c0] sm:$0xf] }
 0x1df   : > { %v1265_v42 = vpack.c.bf16 %v1258_v9, %v1257_v37  ;;  %v7303_v37 = vld [vmem:[#allocation5 + $0x274] sm:$0xf0]  ;;  %v1155_v9 = vadd.f32 %v1154_v23, %v8650_v18  ;;  %v7297_v15 = vld [vmem:[#allocation5 + $0x244] sm:$0xf0] }
 0x1e0   : > { %v1228_v13 = vmul.f32 0.5, %v1205_v16  ;;  %v7730_v59 = vpop.eup %7729  ;;  %v6026_v58 = vor.u32 %v7303_v37, %v6025_v54  ;;  %v5961_v16 = vld [vmem:[#allocation5 + $0x1f0] sm:$0xf] }
 0x1e1   : > { %1379 = vmatmul.bf16.vlgmr.msra.gmra.mxu3 %v1265_v42  ;;  %1408 = vmatmul.bf16.vlgmr.msra.gmra.mxu0 %v1265_v42  ;;  %v1243_v60 = vmul.f32 0.5, %v7730_v59  ;;  %v7287_v42 = vld [vmem:[#allocation5 + $0x1f4] sm:$0xf0]  ;;  %v5953_v59 = vld [vmem:[#allocation5 + $0x1e0] sm:$0xf]  ;;  %v1184_v36 = vadd.f32 %v1183_v22, %v1155_v9 }
 0x1e2   : > { %7731 = vtanh.f32 %v1228_v13  ;;  %v6017_v13 = vld [vmem:[#allocation5 + $0x260] sm:$0xf]  ;;  %v5962_v30 = vor.u32 %v7287_v42, %v5961_v16  ;;  %1822 = vmatpush.bf16.msrb.mxu2 %v6026_v58  ;;  %v5993_v9 = vld [vmem:[#allocation5 + $0x230] sm:$0xf] }
 0x1e3   : > { %7733 = vtanh.f32 %v1116_v43  ;;  %v1251_v10 = vadd.f32 0.5, %v1243_v60  ;;  %v7301_v43 = vld [vmem:[#allocation5 + $0x264] sm:$0xf0]  ;;  %v7299_v60 = vld [vmem:[#allocation5 + $0x254] sm:$0xf0] }
 0x1e4   : > { %7735 = vtanh.f32 %v1118_v20  ;;  %v6018_v52 = vor.u32 %v7301_v43, %v6017_v13  ;;  %1793 = vmatpush.bf16.msra.mxu1 %v5962_v30 }
 0x1e5   : > { %v1207_v61 = vpop.f32.mrf.mxu2 }
 0x1e6   : > { %v1208_v57 = vadd.f32 %v1207_v61, %v1179_v24  ;;  %v5954_v24 = vor.u32 %v7285_v21, %v5953_v59  ;;  %1823 = vmatpush.bf16.msrb.mxu2 %v6018_v52 }
 0x1e8   : > { %v7732_v8 = vpop.eup %7731  ;;  %v1229_v40 = vmul.f32 0.5, %v1208_v57  ;;  %v5945_v57 = vld [vmem:[#allocation5 + $0x1d0] sm:$0xf]  ;;  %1794 = vmatpush.bf16.msra.mxu1 %v5954_v24 }
 0x1e9   : > { %v1244_v55 = vmul.f32 0.5, %v7732_v8  ;;  %v7734_v19 = vpop.eup %7733  ;;  %v7283_v8 = vld [vmem:[#allocation5 + $0x1d4] sm:$0xf0] }
 0x1ea   : > { %v7736_v12 = vpop.eup %7735  ;;  %7737 = vtanh.f32 %v1229_v40  ;;  %v1259_v11 = vmul.f32 %v7734_v19, %v1251_v10  ;;  %v1156_v40 = vpop.f32.mrf.mxu0  ;;  %v6010_v19 = vor.u32 %v7299_v60, %v6009_v48  ;;  %v5946_v23 = vor.u32 %v7283_v8, %v5945_v57  ;;  %v5963_v57 = vld [vmem:[#allocation5 + $0x1f8] sm:$0xf0] }
 0x1eb   : > { %v1252_v39 = vadd.f32 0.5, %v1244_v55  ;;  %v1125_v10 = vpop.f32.mrf.mxu3 }
 0x1ec   : > { %1824 = vmatpush.bf16.msrb.mxu2 %v6010_v19  ;;  %1795 = vmatpush.bf16.msra.mxu1 %v5946_v23  ;;  %v5955_v19 = vld [vmem:[#allocation5 + $0x1e8] sm:$0xf0]  ;;  %v7282_v23 = vld [vmem:[#allocation5 + $0x1d4] sm:$0xf] }
 0x1ed   : > { %v1209_v17 = vpop.f32.mrf.mxu2  ;;  %v1260_v25 = vmul.f32 %v7736_v12, %v1252_v39  ;;  %v1185_v39 = vpop.f32.mrf.mxu1 }
 0x1ee   : > { %v1210_v2 = vadd.f32 %v1209_v17, %v1181_v41  ;;  %v6001_v41 = vld [vmem:[#allocation5 + $0x240] sm:$0xf]  ;;  %v1157_v17 = vadd.f32 %v1156_v40, %v8650_v18  ;;  %v5929_v40 = vld [vmem:[#allocation5 + $0x1b0] sm:$0xf] }
 0x1ef   : > { %v1266_v32 = vpack.c.bf16 %v1260_v25, %v1259_v11 }
 0x1f0   : > { %v1230_v33 = vmul.f32 0.5, %v1210_v2  ;;  %v7738_v6 = vpop.eup %7737  ;;  %v7281_v2 = vld [vmem:[#allocation5 + $0x1c4] sm:$0xf0] }
 0x1f1   : > { %1384 = vmatmul.bf16.gmra.mxu3 %v1266_v32  ;;  %1413 = vmatmul.bf16.gmra.mxu0 %v1266_v32  ;;  %v1245_v20 = vmul.f32 0.5, %v7738_v6  ;;  %v1070_v32 = vadd.f32 %v8620_v46, %v8636_v62  ;;  %v5938_v16 = vor.u32 %v7281_v2, %v5937_v26  ;;  %v1126_v46 = vadd.f32 %v1125_v10, %v8646_v45  ;;  %v7286_v45 = vld [vmem:[#allocation5 + $0x1f4] sm:$0xf]  ;;  %v7279_v10 = vld [vmem:[#allocation5 + $0x1b4] sm:$0xf0] }
 0x1f2   : > { %7739 = vtanh.f32 %v1230_v33  ;;  %v1186_v33 = vadd.f32 %v1185_v39, %v1157_v17  ;;  %v5966_v8 = vor.u32 %v7286_v45, %v5963_v57  ;;  %v6081_v26 = vld [vmem:[#allocation5 + $0x2e0] sm:$0xf]  ;;  %v6057_v45 = vld [vmem:[#allocation5 + $0x2b0] sm:$0xf]  ;;  %v7311_v57 = vld [vmem:[#allocation5 + $0x2b4] sm:$0xf0] }
 0x1f3   : > { %7741 = vtanh.f32 %v1121_v5  ;;  %v1253_v12 = vadd.f32 0.5, %v1245_v20  ;;  %v6002_v5 = vor.u32 %v7297_v15, %v6001_v41  ;;  %v1099_v18 = vadd.f32 %v8648_v31, %v1070_v32  ;;  %v1127_v43 = vpop.f32.mrf.mxu3  ;;  %1796 = vmatpush.bf16.msra.mxu1 %v5938_v16  ;;  %v5947_v15 = vld [vmem:[#allocation5 + $0x1d8] sm:$0xf0]  ;;  %v7280_v32 = vld [vmem:[#allocation5 + $0x1c4] sm:$0xf] }
 0x1f4   : > { %7743 = vtanh.f32 %v1123_v27  ;;  %v7295_v27 = vld [vmem:[#allocation5 + $0x234] sm:$0xf0]  ;;  %1880 = vmatpush.bf16.msrb.mxu0 %v5966_v8  ;;  %v5950_v17 = vor.u32 %v7282_v23, %v5947_v15  ;;  %v7274_v8 = vld [vmem:[#allocation5 + $0x194] sm:$0xf]  ;;  %v7272_v23 = vld [vmem:[#allocation5 + $0x184] sm:$0xf] }
 0x1f5   : > { %v1212_v56 = vpop.f32.mrf.mxu2  ;;  %1825 = vmatpush.bf16.msrb.mxu2 %v6002_v5  ;;  %v5994_v30 = vor.u32 %v7295_v27, %v5993_v9  ;;  %v1128_v59 = vadd.f32 %v1127_v43, %v1099_v18  ;;  %v5977_v27 = vld [vmem:[#allocation5 + $0x210] sm:$0xf]  ;;  %v7291_v18 = vld [vmem:[#allocation5 + $0x214] sm:$0xf0] }
 0x1f6   : > { %v1213_v61 = vadd.f32 %v1212_v56, %v1184_v36  ;;  %v5978_v16 = vor.u32 %v7291_v18, %v5977_v27  ;;  %v6027_v18 = vld [vmem:[#allocation5 + $0x278] sm:$0xf0] }
 0x1f8   : > { %v7740_v55 = vpop.eup %7739  ;;  %v1231_v47 = vmul.f32 0.5, %v1213_v61 }
 0x1f9   : > { %v1246_v4 = vmul.f32 0.5, %v7740_v55  ;;  %v7742_v11 = vpop.eup %7741  ;;  %1826 = vmatpush.bf16.msrb.mxu2 %v5994_v30  ;;  %v7284_v55 = vld [vmem:[#allocation5 + $0x1e4] sm:$0xf]  ;;  %v5931_v30 = vld [vmem:[#allocation5 + $0x1b8] sm:$0xf0] }
 0x1fa   : > { %v7744_v22 = vpop.eup %7743  ;;  %7745 = vtanh.f32 %v1231_v47  ;;  %v1261_v37 = vmul.f32 %v7742_v11, %v1253_v12  ;;  %v5930_v47 = vor.u32 %v7279_v10, %v5929_v40  ;;  %v5958_v39 = vor.u32 %v7284_v55, %v5955_v19  ;;  %v6089_v12 = vld [vmem:[#allocation5 + $0x2f0] sm:$0xf]  ;;  %v5985_v11 = vld [vmem:[#allocation5 + $0x220] sm:$0xf]  ;;  %v5915_v10 = vld [vmem:[#allocation5 + $0x198] sm:$0xf0] }
 0x1fb   : > { %v1254_v25 = vadd.f32 0.5, %v1246_v4  ;;  %v7319_v4 = vld [vmem:[#allocation5 + $0x2f4] sm:$0xf0]  ;;  %v6058_v40 = vor.u32 %v7311_v57, %v6057_v45  ;;  %v5918_v55 = vor.u32 %v7274_v8, %v5915_v10  ;;  %v7273_v19 = vld [vmem:[#allocation5 + $0x184] sm:$0xf0] }
 0x1fc   : > { %1797 = vmatpush.bf16.msra.mxu1 %v5930_v47  ;;  %1881 = vmatpush.bf16.msrb.mxu0 %v5958_v39  ;;  %v6090_v41 = vor.u32 %v7319_v4, %v6089_v12  ;;  %v5905_v47 = vld [vmem:[#allocation5 + $0x180] sm:$0xf]  ;;  %v7309_v4 = vld [vmem:[#allocation5 + $0x2a4] sm:$0xf0]  ;;  %v7298_v8 = vld [vmem:[#allocation5 + $0x254] sm:$0xf] }
 0x1fd   : > { %v1214_v54 = vpop.f32.mrf.mxu2  ;;  %v1262_v6 = vmul.f32 %v7744_v22, %v1254_v25  ;;  %v7293_v25 = vld [vmem:[#allocation5 + $0x224] sm:$0xf0]  ;;  %v6049_v39 = vld [vmem:[#allocation5 + $0x2a0] sm:$0xf]  ;;  %v5906_v12 = vor.u32 %v7273_v19, %v5905_v47 }
 0x1fe   : > { %v1215_v58 = vadd.f32 %v1214_v54, %v1186_v33  ;;  %1851 = vmatpush.bf16.msrb.mxu3 %v6090_v41  ;;  %v5986_v2 = vor.u32 %v7293_v25, %v5985_v11  ;;  %v7317_v22 = vld [vmem:[#allocation5 + $0x2e4] sm:$0xf0]  ;;  %v5939_v33 = vld [vmem:[#allocation5 + $0x1c8] sm:$0xf0]  ;;  %v6050_v15 = vor.u32 %v7309_v4, %v6049_v39  ;;  %v6041_v11 = vld [vmem:[#allocation5 + $0x290] sm:$0xf] }
 0x1ff   : > { %v1267_v42 = vpack.c.bf16 %v1262_v6, %v1261_v37  ;;  %v6082_v5 = vor.u32 %v7317_v22, %v6081_v26  ;;  %v5942_v54 = vor.u32 %v7280_v32, %v5939_v33  ;;  %v5921_v37 = vld [vmem:[#allocation5 + $0x1a0] sm:$0xf]  ;;  %v7277_v6 = vld [vmem:[#allocation5 + $0x1a4] sm:$0xf0]  ;;  %v5907_v41 = vld [vmem:[#allocation5 + $0x188] sm:$0xf0] }
 0x200   : > { %v1232_v13 = vmul.f32 0.5, %v1215_v58  ;;  %v7746_v62 = vpop.eup %7745  ;;  %1882 = vmatpush.bf16.msrb.mxu0 %v5950_v17  ;;  %1827 = vmatpush.bf16.msrb.mxu2 %v5986_v2  ;;  %v5922_v9 = vor.u32 %v7277_v6, %v5921_v37  ;;  %v6073_v58 = vld [vmem:[#allocation5 + $0x2d0] sm:$0xf]  ;;  %v5910_v17 = vor.u32 %v7272_v23, %v5907_v41  ;;  %v7307_v25 = vld [vmem:[#allocation5 + $0x294] sm:$0xf0]  ;;  %v7915_v47 = vld [vmem:[#allocation2 + $0x18] sm:$0xff] }
 0x201   : > { %1389 = vmatmul.bf16.gmra.mxu3 %v1267_v42  ;;  %1418 = vmatmul.bf16.gmra.mxu0 %v1267_v42  ;;  %v1247_v36 = vmul.f32 0.5, %v7746_v62  ;;  %v7315_v42 = vld [vmem:[#allocation5 + $0x2d4] sm:$0xf0]  ;;  %v6065_v62 = vld [vmem:[#allocation5 + $0x2c0] sm:$0xf]  ;;  %v6042_v26 = vor.u32 %v7307_v25, %v6041_v11 }
 0x202   : > { %7747 = vtanh.f32 %v1232_v13  ;;  %1852 = vmatpush.bf16.msrb.mxu3 %v6082_v5  ;;  %v7278_v13 = vld [vmem:[#allocation5 + $0x1b4] sm:$0xf]  ;;  %1798 = vmatpush.bf16.msra.mxu1 %v5922_v9  ;;  %v6074_v43 = vor.u32 %v7315_v42, %v6073_v58  ;;  %v1285_v2 = vld [vmem:[#allocation13] sm:$0x3]  ;;  %v6033_v22 = vld [vmem:[#allocation5 + $0x280] sm:$0xf] }
 0x203   : > { %7749 = vtanh.f32 %v1126_v46  ;;  %v1255_v52 = vadd.f32 0.5, %v1247_v36  ;;  %v5934_v46 = vor.u32 %v7278_v13, %v5931_v30  ;;  %v7276_v36 = vld [vmem:[#allocation5 + $0x1a4] sm:$0xf]  ;;  %v7305_v32 = vld [vmem:[#allocation5 + $0x284] sm:$0xf0]  ;;  %v8680_v33 = vperm.slane %v1285_v2, 0 }
 0x204   : > { %7751 = vtanh.f32 %v1128_v59  ;;  %1883 = vmatpush.bf16.msrb.mxu0 %v5942_v54  ;;  %1828 = vmatpush.bf16.msrb.mxu2 %v5978_v16  ;;  %v7313_v59 = vld [vmem:[#allocation5 + $0x2c4] sm:$0xf0]  ;;  %v6034_v5 = vor.u32 %v7305_v32, %v6033_v22  ;;  %v7318_v54 = vld [vmem:[#allocation5 + $0x2f4] sm:$0xf]  ;;  %v6091_v37 = vld [vmem:[#allocation5 + $0x2f8] sm:$0xf0] }
 0x205   : > { %v7302_v6 = vld [vmem:[#allocation5 + $0x274] sm:$0xf]  ;;  %v6094_v27 = vor.u32 %v7318_v54, %v6091_v37  ;;  %v7312_v41 = vld [vmem:[#allocation5 + $0x2c4] sm:$0xf]  ;;  %v7916_v32 = vld [vmem:[#allocation2 + $0x20] sm:$0xff] }
 0x206   : > { %1853 = vmatpush.bf16.msrb.mxu3 %v6074_v43  ;;  %v6030_v16 = vor.u32 %v7302_v6, %v6027_v18  ;;  %v7913_v42 = vld [vmem:[#allocation2 + $0x8] sm:$0xff]  ;;  %v7316_v43 = vld [vmem:[#allocation5 + $0x2e4] sm:$0xf] }
 0x207   : > { %v7296_v25 = vld [vmem:[#allocation5 + $0x244] sm:$0xf]  ;;  %v7310_v18 = vld [vmem:[#allocation5 + $0x2b4] sm:$0xf] }
 0x208   : > { %v7748_v31 = vpop.eup %7747  ;;  %1884 = vmatpush.bf16.msrb.mxu0 %v5934_v46  ;;  %v6083_v46 = vld [vmem:[#allocation5 + $0x2e8] sm:$0xf0] }
 0x209   : > { %v1248_v21 = vmul.f32 0.5, %v7748_v31  ;;  %v7750_v20 = vpop.eup %7749  ;;  %v6066_v31 = vor.u32 %v7313_v59, %v6065_v62  ;;  %v6086_v59 = vor.u32 %v7316_v43, %v6083_v46 }
 0x20a   : > { %v7752_v24 = vpop.eup %7751  ;;  %v1263_v48 = vmul.f32 %v7750_v20, %v1255_v52  ;;  %v5923_v52 = vld [vmem:[#allocation5 + $0x1a8] sm:$0xf0]  ;;  %v7289_v20 = vld [vmem:[#allocation5 + $0x204] sm:$0xf0] }
 0x20b   : > { %v1256_v56 = vadd.f32 0.5, %v1248_v21  ;;  %v5969_v21 = vld [vmem:[#allocation5 + $0x200] sm:$0xf]  ;;  %1854 = vmatpush.bf16.msrb.mxu3 %v6066_v31  ;;  %v6019_v31 = vld [vmem:[#allocation5 + $0x268] sm:$0xf0] }
 0x20d   : > { %v1264_v60 = vmul.f32 %v7752_v24, %v1256_v56  ;;  %v5926_v56 = vor.u32 %v7276_v36, %v5923_v52  ;;  %v5970_v24 = vor.u32 %v7289_v20, %v5969_v21  ;;  %v7300_v36 = vld [vmem:[#allocation5 + $0x264] sm:$0xf]  ;;  %v7914_v20 = vld [vmem:[#allocation2 + $0x10] sm:$0xff] }
 0x20e   : > { %v6022_v21 = vor.u32 %v7300_v36, %v6019_v31  ;;  %v7292_v36 = vld [vmem:[#allocation5 + $0x224] sm:$0xf] }
 0x20f   : > { %v1268_v61 = vpack.c.bf16 %v1264_v60, %v1263_v48  ;;  %v5913_v48 = vld [vmem:[#allocation5 + $0x190] sm:$0xf]  ;;  %v7275_v60 = vld [vmem:[#allocation5 + $0x194] sm:$0xf0]  ;;  %1885 = vmatpush.bf16.msrb.mxu0 %v5926_v56  ;;  %1829 = vmatpush.bf16.msrb.mxu2 %v5970_v24 }
 0x210   : > { %1855 = vmatpush.bf16.msrb.mxu3 %v6058_v40  ;;  %v6011_v40 = vld [vmem:[#allocation5 + $0x258] sm:$0xf0] }
 0x211   : > { %1394 = vmatmul.bf16.gmra.mxu3 %v1268_v61  ;;  %1423 = vmatmul.bf16.gmra.mxu0 %v1268_v61  ;;  %v5914_v61 = vor.u32 %v7275_v60, %v5913_v48  ;;  %v7314_v60 = vld [vmem:[#allocation5 + $0x2d4] sm:$0xf] }
 0x213   : > { %1799 = vmatpush.bf16.msra.mxu1 %v5914_v61  ;;  %1886 = vmatpush.bf16.msrb.mxu0 %v5918_v55  ;;  %v6075_v61 = vld [vmem:[#allocation5 + $0x2d8] sm:$0xf0]  ;;  %v6014_v55 = vor.u32 %v7298_v8, %v6011_v40  ;;  %v7306_v8 = vld [vmem:[#allocation5 + $0x294] sm:$0xf] }
 0x214   : > { %1856 = vmatpush.bf16.msrb.mxu3 %v6050_v15  ;;  %1938 = vmatpush.bf16.msra.mxu2 %v6094_v27  ;;  %v6078_v57 = vor.u32 %v7314_v60, %v6075_v61  ;;  %v6067_v15 = vld [vmem:[#allocation5 + $0x2c8] sm:$0xf0]  ;;  %v6043_v40 = vld [vmem:[#allocation5 + $0x298] sm:$0xf0] }
 0x215   : > { %v6070_v11 = vor.u32 %v7312_v41, %v6067_v15  ;;  %v6035_v41 = vld [vmem:[#allocation5 + $0x288] sm:$0xf0] }
 0x217   : > { %1800 = vmatpush.bf16.msra.mxu1 %v5906_v12  ;;  %1887 = vmatpush.bf16.msrb.mxu0 %v5910_v17 }
 0x218   : > { %1857 = vmatpush.bf16.msrb.mxu3 %v6042_v26  ;;  %1939 = vmatpush.bf16.msra.mxu2 %v6086_v59  ;;  %v6003_v26 = vld [vmem:[#allocation5 + $0x248] sm:$0xf0] }
 0x219   : > { %v6006_v22 = vor.u32 %v7296_v25, %v6003_v26  ;;  %v6051_v59 = vld [vmem:[#allocation5 + $0x2a8] sm:$0xf0] }
 0x21b   : > { %1909 = vmatpush.bf16.msrb.mxu1 %v6030_v16 }
 0x21c   : > { %1858 = vmatpush.bf16.msrb.mxu3 %v6034_v5  ;;  %1940 = vmatpush.bf16.msra.mxu2 %v6078_v57 }
 0x21f   : > { %1910 = vmatpush.bf16.msrb.mxu1 %v6022_v21  ;;  %v7917_v21 = vld [vmem:[#allocation2 + $0x28] sm:$0xff] }
 0x220   : > { %1941 = vmatpush.bf16.msra.mxu2 %v6070_v11 }
 0x223   : > { %1911 = vmatpush.bf16.msrb.mxu1 %v6014_v55  ;;  %v6046_v55 = vor.u32 %v7306_v8, %v6043_v40  ;;  %v8716_v40 = vld [vmem:[#allocation11 + $0x2] sm:$0x3] }
 0x227   : > { %1912 = vmatpush.bf16.msrb.mxu1 %v6006_v22 }
 0x264   : > { %v1380_v9 = vpop.f32.mrf.mxu3 }
 0x265   : > { %v1381_v58 = vadd.f32 %v1380_v9, %v8680_v33 }
 0x267   : > { %v1429_v13 = vadd.f32 %v7913_v42, %v1381_v58  ;;  %v6059_v58 = vld [vmem:[#allocation5 + $0x2b8] sm:$0xf0] }
 0x268   : > { %v6062_v42 = vor.u32 %v7310_v18, %v6059_v58 }
 0x269   : > { %v1437_v30 = vmul.f32 %v1429_v13, %v8506_v7  ;;  %v7294_v13 = vld [vmem:[#allocation5 + $0x234] sm:$0xf] }
 0x26a   : > { %1942 = vmatpush.bf16.msra.mxu2 %v6062_v42 }
 0x26b   : > { %1453 = vst [vmem:[#allocation2 + $0x8] sm:$0xff] %v1437_v30 }
 0x26c   : > { %v1382_v62 = vpop.f32.mrf.mxu3 }
 0x26d   : > { %v1383_v52 = vadd.f32 %v1382_v62, %v8680_v33  ;;  %v7308_v62 = vld [vmem:[#allocation5 + $0x2a4] sm:$0xf] }
 0x26e   : > { %v6054_v31 = vor.u32 %v7308_v62, %v6051_v59 }
 0x26f   : > { %v1430_v56 = vadd.f32 %v7914_v20, %v1383_v52  ;;  %v5987_v52 = vld [vmem:[#allocation5 + $0x228] sm:$0xf0] }
 0x270   : > { %1943 = vmatpush.bf16.msra.mxu2 %v6054_v31 }
 0x271   : > { %v1438_v24 = vmul.f32 %v1430_v56, %v8540_v63  ;;  %v5990_v56 = vor.u32 %v7292_v36, %v5987_v52 }
 0x272   : > { %v1461_v12 = vld [vmem:[#allocation2 + $0x6] sm:$0xff] }
 0x273   : > { %1454 = vst [vmem:[#allocation2 + $0x10] sm:$0xff] %v1438_v24  ;;  %v8686_v48 = vpack.c.bf16 %v1438_v24, %v1437_v30  ;;  %v5995_v30 = vld [vmem:[#allocation5 + $0x238] sm:$0xf0] }
 0x274   : > { %v1385_v45 = vpop.f32.mrf.mxu3  ;;  %v5998_v46 = vor.u32 %v7294_v13, %v5995_v30  ;;  %1944 = vmatpush.bf16.msra.mxu2 %v6046_v55 }
 0x275   : > { %v1386_v10 = vadd.f32 %v1385_v45, %v8680_v33  ;;  %1830 = vmatmul.bf16.vlgmr.msrb.gmra.mxu2 %v8686_v48 }
 0x276   : > { %1913 = vmatpush.bf16.msrb.mxu1 %v5998_v46  ;;  %v7920_v46 = vld [vmem:[#allocation2 + $0x40] sm:$0xff] }
 0x277   : > { %v1431_v19 = vadd.f32 %v7915_v47, %v1386_v10  ;;  %v7290_v47 = vld [vmem:[#allocation5 + $0x214] sm:$0xf] }
 0x279   : > { %v1439_v39 = vmul.f32 %v1431_v19, %v8542_v0  ;;  %v5979_v19 = vld [vmem:[#allocation5 + $0x218] sm:$0xf0] }
 0x27a   : > { %v1462_v4 = vld [vmem:[#allocation2 + $0xe] sm:$0xff]  ;;  %1914 = vmatpush.bf16.msrb.mxu1 %v5990_v56 }
 0x27b   : > { %1455 = vst [vmem:[#allocation2 + $0x18] sm:$0xff] %v1439_v39  ;;  %v1485_v23 = vpack.c.bf16 %v1462_v4, %v1461_v12  ;;  %v1477_v37 = vld [vmem:[#allocation2 + $0xa] sm:$0xff] }
 0x27c   : > { %v1387_v17 = vpop.f32.mrf.mxu3  ;;  %v7918_v12 = vld [vmem:[#allocation2 + $0x30] sm:$0xff] }
 0x27d   : > { %v1388_v2 = vadd.f32 %v1387_v17, %v8680_v33  ;;  %1801 = vmatmul.bf16.vlgmr.msra.gmra.mxu1 %v1485_v23  ;;  %1888 = vmatmul.bf16.vlgmr.msrb.gmra.mxu0 %v1485_v23  ;;  %v7304_v23 = vld [vmem:[#allocation5 + $0x284] sm:$0xf] }
 0x27e   : > { %v6038_v17 = vor.u32 %v7304_v23, %v6035_v41 }
 0x27f   : > { %v1432_v5 = vadd.f32 %v7916_v32, %v1388_v2 }
 0x280   : > { %1945 = vmatpush.bf16.msra.mxu2 %v6038_v17  ;;  %v7333_v17 = vld [vmem:[#allocation7 + $0xe4] sm:$0xf0] }
 0x281   : > { %v1440_v54 = vmul.f32 %v1432_v5, %v8514_v34  ;;  %v7288_v5 = vld [vmem:[#allocation5 + $0x204] sm:$0xf] }
 0x282   : > { %v1478_v6 = vld [vmem:[#allocation2 + $0x12] sm:$0xff] }
 0x283   : > { %1456 = vst [vmem:[#allocation2 + $0x20] sm:$0xff] %v1440_v54  ;;  %v8693_v9 = vpack.c.bf16 %v1478_v6, %v1477_v37  ;;  %v8695_v27 = vpack.c.bf16 %v1440_v54, %v1439_v39  ;;  %v1463_v60 = vld [vmem:[#allocation2 + $0x16] sm:$0xff]  ;;  %v5982_v39 = vor.u32 %v7290_v47, %v5979_v19  ;;  %v5971_v54 = vld [vmem:[#allocation5 + $0x208] sm:$0xf0]  ;;  %v6153_v47 = vld [vmem:[#allocation7 + $0xf0] sm:$0xf] }
 0x284   : > { %v1390_v16 = vpop.f32.mrf.mxu3  ;;  %v5974_v37 = vor.u32 %v7288_v5, %v5971_v54  ;;  %v7919_v6 = vld [vmem:[#allocation2 + $0x38] sm:$0xff]  ;;  %v7335_v19 = vld [vmem:[#allocation7 + $0xf4] sm:$0xf0] }
 0x285   : > { %v1391_v43 = vadd.f32 %v1390_v16, %v8680_v33  ;;  %1859 = vmatmul.bf16.vlgmr.msrb.gmra.mxu3 %v8693_v9  ;;  %1835 = vmatmul.bf16.gmra.mxu2 %v8695_v27 }
 0x286   : > { %1915 = vmatpush.bf16.msrb.mxu1 %v5982_v39  ;;  %v6154_v39 = vor.u32 %v7335_v19, %v6153_v47  ;;  %v7328_v19 = vld [vmem:[#allocation7 + $0xc4] sm:$0xf] }
 0x287   : > { %v1433_v20 = vadd.f32 %v7917_v21, %v1391_v43 }
 0x288   : > { %2123 = vmatpush.bf16.msra.mxu3 %v6154_v39  ;;  %v6131_v39 = vld [vmem:[#allocation7 + $0xc8] sm:$0xf0] }
 0x289   : > { %v1441_v24 = vmul.f32 %v1433_v20, %v8524_v50 }
 0x28a   : > { %v1464_v61 = vld [vmem:[#allocation2 + $0x1e] sm:$0xff]  ;;  %1916 = vmatpush.bf16.msrb.mxu1 %v5974_v37 }
 0x28b   : > { %1457 = vst [vmem:[#allocation2 + $0x28] sm:$0xff] %v1441_v24  ;;  %v1488_v45 = vpack.c.bf16 %v1464_v61, %v1463_v60  ;;  %v1479_v11 = vld [vmem:[#allocation2 + $0x1a] sm:$0xff] }
 0x28c   : > { %v1392_v57 = vpop.f32.mrf.mxu3 }
 0x28d   : > { %v1393_v10 = vadd.f32 %v1392_v57, %v8680_v33  ;;  %1806 = vmatmul.bf16.gmra.mxu1 %v1488_v45  ;;  %1893 = vmatmul.bf16.gmra.mxu0 %v1488_v45  ;;  %v8710_v45 = vpop.f32.mrf.mxu0 }
 0x28f   : > { %v1434_v4 = vadd.f32 %v7918_v12, %v1393_v10  ;;  %v8719_v10 = vperm.slane %v8716_v40, 0 }
 0x291   : > { %v1442_v15 = vmul.f32 %v1434_v4, %v8516_v35 }
 0x292   : > { %v1480_v25 = vld [vmem:[#allocation2 + $0x22] sm:$0xff] }
 0x293   : > { %1458 = vst [vmem:[#allocation2 + $0x30] sm:$0xff] %v1442_v15  ;;  %v1490_v26 = vpack.c.bf16 %v1480_v25, %v1479_v11  ;;  %v1492_v2 = vpack.c.bf16 %v1442_v15, %v1441_v24  ;;  %v1465_v16 = vld [vmem:[#allocation2 + $0x26] sm:$0xff]  ;;  %v6145_v15 = vld [vmem:[#allocation7 + $0xe0] sm:$0xf] }
 0x294   : > { %v1395_v22 = vpop.f32.mrf.mxu3  ;;  %v6146_v11 = vor.u32 %v7333_v17, %v6145_v15  ;;  %v6134_v15 = vor.u32 %v7328_v19, %v6131_v39  ;;  %v7326_v17 = vld [vmem:[#allocation7 + $0xb4] sm:$0xf]  ;;  %v7320_v19 = vld [vmem:[#allocation7 + $0x84] sm:$0xf] }
 0x295   : > { %v1396_v32 = vadd.f32 %v1395_v22, %v8680_v33  ;;  %1864 = vmatmul.bf16.gmra.mxu3 %v1490_v26  ;;  %1840 = vmatmul.bf16.gmra.mxu2 %v1492_v2  ;;  %v8712_v57 = vpop.f32.mrf.mxu0  ;;  %v6137_v22 = vld [vmem:[#allocation7 + $0xd0] sm:$0xf] }
 0x296   : > { %2124 = vmatpush.bf16.msra.mxu3 %v6146_v11  ;;  %v6123_v11 = vld [vmem:[#allocation7 + $0xb8] sm:$0xf0] }
 0x297   : > { %v1435_v18 = vadd.f32 %v7919_v6, %v1396_v32  ;;  %v7331_v32 = vld [vmem:[#allocation7 + $0xd4] sm:$0xf0] }
 0x298   : > { %v6138_v54 = vor.u32 %v7331_v32, %v6137_v22 }
 0x299   : > { %v1443_v58 = vmul.f32 %v1435_v18, %v8526_v51 }
 0x29a   : > { %v1466_v42 = vld [vmem:[#allocation2 + $0x2e] sm:$0xff]  ;;  %2125 = vmatpush.bf16.msra.mxu3 %v6138_v54 }
 0x29b   : > { %1459 = vst [vmem:[#allocation2 + $0x38] sm:$0xff] %v1443_v58  ;;  %v1491_v13 = vpack.c.bf16 %v1466_v42, %v1465_v16  ;;  %v1481_v36 = vld [vmem:[#allocation2 + $0x2a] sm:$0xff]  ;;  %v7329_v16 = vld [vmem:[#allocation7 + $0xc4] sm:$0xf0]  ;;  %v6113_v54 = vld [vmem:[#allocation7 + $0xa0] sm:$0xf] }
 0x29c   : > { %v1397_v30 = vpop.f32.mrf.mxu3 }
 0x29d   : > { %v1398_v43 = vadd.f32 %v1397_v30, %v8680_v33  ;;  %1811 = vmatmul.bf16.gmra.mxu1 %v1491_v13  ;;  %1898 = vmatmul.bf16.gmra.mxu0 %v1491_v13  ;;  %v8714_v8 = vpop.f32.mrf.mxu0  ;;  %v7334_v30 = vld [vmem:[#allocation7 + $0xf4] sm:$0xf] }
 0x29f   : > { %v1436_v62 = vadd.f32 %v7920_v46, %v1398_v43  ;;  %v6155_v43 = vld [vmem:[#allocation7 + $0xf8] sm:$0xf0] }
 0x2a1   : > { %v1444_v59 = vmul.f32 %v1436_v62, %v8504_v44  ;;  %v6158_v62 = vor.u32 %v7334_v30, %v6155_v43  ;;  %v6115_v30 = vld [vmem:[#allocation7 + $0xa8] sm:$0xf0] }
 0x2a2   : > { %v1482_v31 = vld [vmem:[#allocation2 + $0x32] sm:$0xff] }
 0x2a3   : > { %1460 = vst [vmem:[#allocation2 + $0x40] sm:$0xff] %v1444_v59  ;;  %v1493_v52 = vpack.c.bf16 %v1482_v31, %v1481_v36  ;;  %v1495_v21 = vpack.c.bf16 %v1444_v59, %v1443_v58  ;;  %v1467_v20 = vld [vmem:[#allocation2 + $0x36] sm:$0xff]  ;;  %2152 = vmatpush.bf16.msra.mxu0 %v6158_v62  ;;  %v6121_v31 = vld [vmem:[#allocation7 + $0xb0] sm:$0xf] }
 0x2a4   : > { %v6129_v58 = vld [vmem:[#allocation7 + $0xc0] sm:$0xf]  ;;  %v6105_v62 = vld [vmem:[#allocation7 + $0x90] sm:$0xf] }
 0x2a5   : > { %1869 = vmatmul.bf16.gmra.mxu3 %v1493_v52  ;;  %1845 = vmatmul.bf16.gmra.mxu2 %v1495_v21  ;;  %v6130_v42 = vor.u32 %v7329_v16, %v6129_v58  ;;  %v7325_v58 = vld [vmem:[#allocation7 + $0xa4] sm:$0xf0]  ;;  %v7324_v16 = vld [vmem:[#allocation7 + $0xa4] sm:$0xf] }
 0x2a7   : > { %2126 = vmatpush.bf16.msra.mxu3 %v6130_v42  ;;  %v6114_v42 = vor.u32 %v7325_v58, %v6113_v54 }
 0x2aa   : > { %v1468_v56 = vld [vmem:[#allocation2 + $0x3e] sm:$0xff] }
 0x2ab   : > { %v1494_v24 = vpack.c.bf16 %v1468_v56, %v1467_v20  ;;  %v1483_v60 = vld [vmem:[#allocation2 + $0x3a] sm:$0xff]  ;;  %v1484_v33 = vld [vmem:[#allocation2 + $0x42] sm:$0xff] }
 0x2ac   : > { %v1496_v61 = vpack.c.bf16 %v1484_v33, %v1483_v60  ;;  %v6147_v56 = vld [vmem:[#allocation7 + $0xe8] sm:$0xf0]  ;;  %v7330_v33 = vld [vmem:[#allocation7 + $0xd4] sm:$0xf] }
 0x2ad   : > { %1816 = vmatmul.bf16.gmra.mxu1 %v1494_v24  ;;  %1903 = vmatmul.bf16.gmra.mxu0 %v1494_v24 }
 0x2b5   : > { %1874 = vmatmul.bf16.gmra.mxu3 %v1496_v61  ;;  %1946 = vmatmul.bf16.vlgmr.msra.gmra.mxu2 %v8693_v9  ;;  %v8721_v9 = vpop.f32.mrf.mxu0 }
 0x2bd   : > { %1917 = vmatmul.bf16.vlgmr.msrb.gmra.mxu1 %v8686_v48  ;;  %v8728_v23 = vpop.f32.mrf.mxu0 }
 0x2c5   : > { %1951 = vmatmul.bf16.gmra.mxu2 %v1490_v26  ;;  %v8733_v5 = vpop.f32.mrf.mxu0 }
 0x2cd   : > { %1922 = vmatmul.bf16.gmra.mxu1 %v8695_v27  ;;  %v8741_v13 = vpop.f32.mrf.mxu0 }
 0x2d5   : > { %1956 = vmatmul.bf16.gmra.mxu2 %v1493_v52  ;;  %v7327_v52 = vld [vmem:[#allocation7 + $0xb4] sm:$0xf0] }
 0x2d6   : > { %v6122_v20 = vor.u32 %v7327_v52, %v6121_v31 }
 0x2d8   : > { %2127 = vmatpush.bf16.msra.mxu3 %v6122_v20  ;;  %v6107_v20 = vld [vmem:[#allocation7 + $0x98] sm:$0xf0] }
 0x2dc   : > { %2128 = vmatpush.bf16.msra.mxu3 %v6114_v42 }
 0x2dd   : > { %1927 = vmatmul.bf16.gmra.mxu1 %v1492_v2 }
 0x2e5   : > { %1961 = vmatmul.bf16.gmra.mxu2 %v1496_v61  ;;  %v6139_v61 = vld [vmem:[#allocation7 + $0xd8] sm:$0xf0] }
 0x2ed   : > { %1932 = vmatmul.bf16.gmra.mxu1 %v1495_v21  ;;  %v7332_v21 = vld [vmem:[#allocation7 + $0xe4] sm:$0xf] }
 0x2ee   : > { %v6150_v60 = vor.u32 %v7332_v21, %v6147_v56 }
 0x2f0   : > { %2153 = vmatpush.bf16.msra.mxu0 %v6150_v60 }
 0x2f8   : > { %v1831_v48 = vpop.f32.mrf.mxu2 }
 0x2fa   : > { %v1802_v55 = vpop.f32.mrf.mxu1 }
 0x2fb   : > { %v1803_v27 = vadd.f32 %v1802_v55, %v8719_v10 }
 0x2fd   : > { %v8724_v12 = vadd.f32 %v1831_v48, %v1803_v27  ;;  %v8746_v48 = vpop.f32.mrf.mxu0  ;;  %v6142_v27 = vor.u32 %v7330_v33, %v6139_v61  ;;  %v6097_v61 = vld [vmem:[#allocation7 + $0x80] sm:$0xf] }
 0x2ff   : > { %2154 = vmatpush.bf16.msra.mxu0 %v6142_v27  ;;  %v7321_v27 = vld [vmem:[#allocation7 + $0x84] sm:$0xf0] }
 0x300   : > { %v8726_v4 = vpop.f32.mrf.mxu2  ;;  %v6098_v39 = vor.u32 %v7321_v27, %v6097_v61 }
 0x302   : > { %v8730_v41 = vpop.f32.mrf.mxu1 }
 0x303   : > { %2155 = vmatpush.bf16.msra.mxu0 %v6134_v15  ;;  %v6099_v15 = vld [vmem:[#allocation7 + $0x88] sm:$0xf0] }
 0x308   : > { %v1836_v25 = vpop.f32.mrf.mxu2  ;;  %v1860_v31 = vpop.f32.mrf.mxu3 }
 0x309   : > { %v1861_v61 = vadd.f32 %v1860_v31, %v8724_v12 }
 0x30a   : > { %v1807_v26 = vpop.f32.mrf.mxu1 }
 0x30b   : > { %v1808_v2 = vadd.f32 %v1807_v26, %v8719_v10 }
 0x30d   : > { %v8735_v37 = vadd.f32 %v1836_v25, %v1808_v2  ;;  %v1889_v25 = vpop.f32.mrf.mxu0  ;;  %v6126_v2 = vor.u32 %v7326_v17, %v6123_v11  ;;  %v8760_v17 = vperm.slane %v8716_v40, 1  ;;  %v6102_v11 = vor.u32 %v7320_v19, %v6099_v15 }
 0x30e   : > { %v1805_v40 = vadd.f32 %v8730_v41, %v8719_v10 }
 0x30f   : > { %2156 = vmatpush.bf16.msra.mxu0 %v6126_v2  ;;  %v1890_v2 = vadd.f32 %v1889_v25, %v8760_v17 }
 0x310   : > { %v8737_v6 = vpop.f32.mrf.mxu2  ;;  %v1834_v25 = vadd.f32 %v8726_v4, %v1805_v40 }
 0x312   : > { %v8739_v18 = vpop.f32.mrf.mxu1 }
 0x315   : > { %v1891_v60 = vpop.f32.mrf.mxu0 }
 0x318   : > { %v1841_v46 = vpop.f32.mrf.mxu2 }
 0x31a   : > { %v1812_v59 = vpop.f32.mrf.mxu1 }
 0x31b   : > { %v1813_v36 = vadd.f32 %v1812_v59, %v8719_v10  ;;  %v7323_v59 = vld [vmem:[#allocation7 + $0x94] sm:$0xf0] }
 0x31c   : > { %v6106_v21 = vor.u32 %v7323_v59, %v6105_v62 }
 0x31d   : > { %v8744_v24 = vadd.f32 %v1841_v46, %v1813_v36  ;;  %v6118_v46 = vor.u32 %v7324_v16, %v6115_v30  ;;  %v7322_v36 = vld [vmem:[#allocation7 + $0x94] sm:$0xf]  ;;  %v1894_v58 = vpop.f32.mrf.mxu0 }
 0x31e   : > { %v6110_v56 = vor.u32 %v7322_v36, %v6107_v20  ;;  %2129 = vmatpush.bf16.msra.mxu3 %v6106_v21 }
 0x31f   : > { %2157 = vmatpush.bf16.msra.mxu0 %v6118_v46  ;;  %v1892_v46 = vadd.f32 %v1891_v60, %v8760_v17 }
 0x320   : > { %v8748_v55 = vpop.f32.mrf.mxu2 }
 0x322   : > { %v8750_v47 = vpop.f32.mrf.mxu1  ;;  %2130 = vmatpush.bf16.msra.mxu3 %v6098_v39  ;;  %v1895_v39 = vadd.f32 %v1894_v58, %v8760_v17 }
 0x323   : > { %2158 = vmatpush.bf16.msra.mxu0 %v6110_v56 }
 0x325   : > { %v1896_v20 = vpop.f32.mrf.mxu0 }
 0x326   : > { %v1897_v12 = vadd.f32 %v1896_v20, %v8760_v17 }
 0x327   : > { %2159 = vmatpush.bf16.msra.mxu0 %v6102_v11 }
 0x328   : > { %v1846_v26 = vpop.f32.mrf.mxu2 }
 0x32a   : > { %v1817_v22 = vpop.f32.mrf.mxu1 }
 0x32b   : > { %v1818_v32 = vadd.f32 %v1817_v22, %v8719_v10  ;;  %v1862_v22 = vpop.f32.mrf.mxu3 }
 0x32c   : > { %v1863_v15 = vadd.f32 %v1862_v22, %v1834_v25 }
 0x32d   : > { %v8753_v43 = vadd.f32 %v1846_v26, %v1818_v32 }
 0x330   : > { %v8755_v52 = vpop.f32.mrf.mxu2 }
 0x332   : > { %v8757_v33 = vpop.f32.mrf.mxu1 }
 0x333   : > { %v1865_v36 = vpop.f32.mrf.mxu3 }
 0x338   : > { %v1947_v26 = vpop.f32.mrf.mxu2 }
 0x33a   : > { %v1918_v32 = vpop.f32.mrf.mxu1 }
 0x33b   : > { %v1919_v54 = vadd.f32 %v1918_v32, %v1890_v2  ;;  %v1867_v2 = vpop.f32.mrf.mxu3 }
 0x33d   : > { %v1948_v16 = vadd.f32 %v1947_v26, %v1919_v54 }
 0x33f   : > { %v1975_v42 = vmul.f32 0.5, %v1948_v16  ;;  %v1899_v16 = vpop.f32.mrf.mxu0 }
 0x340   : > { %v1949_v30 = vpop.f32.mrf.mxu2 }
 0x341   : > { %7753 = vtanh.f32 %v1975_v42 }
 0x342   : > { %v1920_v62 = vpop.f32.mrf.mxu1 }
 0x343   : > { %v1921_v59 = vadd.f32 %v1920_v62, %v1892_v46  ;;  %v1810_v62 = vadd.f32 %v8739_v18, %v8719_v10 }
 0x345   : > { %v1950_v21 = vadd.f32 %v1949_v30, %v1921_v59 }
 0x347   : > { %v1976_v56 = vmul.f32 0.5, %v1950_v21  ;;  %v7754_v19 = vpop.eup %7753  ;;  %v1901_v18 = vpop.f32.mrf.mxu0 }
 0x348   : > { %v1952_v27 = vpop.f32.mrf.mxu2  ;;  %v1991_v41 = vmul.f32 0.5, %v7754_v19  ;;  %v1866_v19 = vadd.f32 %v1865_v36, %v8735_v37 }
 0x349   : > { %7755 = vtanh.f32 %v1976_v56 }
 0x34a   : > { %v1923_v60 = vpop.f32.mrf.mxu1  ;;  %7757 = vtanh.f32 %v1861_v61  ;;  %v1999_v4 = vadd.f32 0.5, %v1991_v41  ;;  %v1839_v61 = vadd.f32 %v8737_v6, %v1810_v62 }
 0x34b   : > { %v1924_v11 = vadd.f32 %v1923_v60, %v1895_v39  ;;  %7759 = vtanh.f32 %v1863_v15  ;;  %v1870_v39 = vpop.f32.mrf.mxu3  ;;  %v1900_v60 = vadd.f32 %v1899_v16, %v8760_v17 }
 0x34d   : > { %v1953_v26 = vadd.f32 %v1952_v27, %v1924_v11  ;;  %v1868_v11 = vadd.f32 %v1867_v2, %v1839_v61 }
 0x34f   : > { %v7756_v32 = vpop.eup %7755  ;;  %v1977_v54 = vmul.f32 0.5, %v1953_v26  ;;  %v1904_v62 = vpop.f32.mrf.mxu0 }
 0x350   : > { %v1992_v42 = vmul.f32 0.5, %v7756_v32  ;;  %v1954_v30 = vpop.f32.mrf.mxu2  ;;  %v7758_v31 = vpop.eup %7757 }
 0x351   : > { %v7760_v22 = vpop.eup %7759  ;;  %7761 = vtanh.f32 %v1977_v54  ;;  %v2007_v59 = vmul.f32 %v7758_v31, %v1999_v4 }
 0x352   : > { %v2000_v46 = vadd.f32 0.5, %v1992_v42  ;;  %v1925_v58 = vpop.f32.mrf.mxu1 }
 0x353   : > { %v1926_v40 = vadd.f32 %v1925_v58, %v1897_v12  ;;  %v1872_v31 = vpop.f32.mrf.mxu3  ;;  %v1815_v58 = vadd.f32 %v8750_v47, %v8719_v10 }
 0x354   : > { %v2008_v21 = vmul.f32 %v7760_v22, %v2000_v46 }
 0x355   : > { %v1955_v25 = vadd.f32 %v1954_v30, %v1926_v40  ;;  %v1902_v30 = vadd.f32 %v1901_v18, %v8760_v17  ;;  %v6217_v18 = vld [vmem:[#allocation5 + $0x370] sm:$0xf] }
 0x356   : > { %v2015_v56 = vpack.c.bf16 %v2008_v21, %v2007_v59 }
 0x357   : > { %v1978_v27 = vmul.f32 0.5, %v1955_v25  ;;  %v7762_v15 = vpop.eup %7761 }
 0x358   : > { %2131 = vmatmul.bf16.vlgmr.msra.gmra.mxu3 %v2015_v56  ;;  %2160 = vmatmul.bf16.vlgmr.msra.gmra.mxu0 %v2015_v56  ;;  %v1957_v20 = vpop.f32.mrf.mxu2  ;;  %v1993_v32 = vmul.f32 0.5, %v7762_v15  ;;  %v1844_v56 = vadd.f32 %v8748_v55, %v1815_v58  ;;  %v7365_v55 = vld [vmem:[#allocation5 + $0x3e4] sm:$0xf0]  ;;  %v1906_v58 = vpop.f32.mrf.mxu0 }
 0x359   : > { %7763 = vtanh.f32 %v1978_v27  ;;  %v1871_v27 = vadd.f32 %v1870_v39, %v8744_v24  ;;  %v7349_v39 = vld [vmem:[#allocation5 + $0x364] sm:$0xf0] }
 0x35a   : > { %v1928_v41 = vpop.f32.mrf.mxu1  ;;  %7765 = vtanh.f32 %v1866_v19  ;;  %v2001_v42 = vadd.f32 0.5, %v1993_v32  ;;  %v6281_v19 = vld [vmem:[#allocation5 + $0x3f0] sm:$0xf]  ;;  %v1873_v47 = vadd.f32 %v1872_v31, %v1844_v56  ;;  %v7363_v31 = vld [vmem:[#allocation5 + $0x3d4] sm:$0xf0] }
 0x35b   : > { %v1929_v26 = vadd.f32 %v1928_v41, %v1900_v60  ;;  %7767 = vtanh.f32 %v1868_v11  ;;  %v1905_v60 = vadd.f32 %v1904_v62, %v8760_v17  ;;  %v7351_v41 = vld [vmem:[#allocation5 + $0x374] sm:$0xf0]  ;;  %v6257_v56 = vld [vmem:[#allocation5 + $0x3c0] sm:$0xf] }
 0x35d   : > { %v1958_v54 = vadd.f32 %v1957_v20, %v1929_v26  ;;  %v7367_v20 = vld [vmem:[#allocation5 + $0x3f4] sm:$0xf0]  ;;  %v6273_v26 = vld [vmem:[#allocation5 + $0x3e0] sm:$0xf] }
 0x35e   : > { %v6282_v11 = vor.u32 %v7367_v20, %v6281_v19  ;;  %v6274_v24 = vor.u32 %v7365_v55, %v6273_v26  ;;  %v6249_v55 = vld [vmem:[#allocation5 + $0x3b0] sm:$0xf] }
 0x35f   : > { %v7764_v6 = vpop.eup %7763  ;;  %v1979_v4 = vmul.f32 0.5, %v1958_v54 }
 0x360   : > { %v1994_v37 = vmul.f32 0.5, %v7764_v6  ;;  %v1959_v36 = vpop.f32.mrf.mxu2  ;;  %v7766_v12 = vpop.eup %7765  ;;  %v6218_v6 = vor.u32 %v7351_v41, %v6217_v18  ;;  %2567 = vmatpush.bf16.msrb.mxu2 %v6282_v11  ;;  %v1820_v18 = vadd.f32 %v8757_v33, %v8719_v10 }
 0x361   : > { %v7768_v2 = vpop.eup %7767  ;;  %7769 = vtanh.f32 %v1979_v4  ;;  %v2009_v40 = vmul.f32 %v7766_v12, %v2001_v42  ;;  %v6209_v4 = vld [vmem:[#allocation5 + $0x360] sm:$0xf]  ;;  %v6265_v12 = vld [vmem:[#allocation5 + $0x3d0] sm:$0xf] }
 0x362   : > { %v2002_v46 = vadd.f32 0.5, %v1994_v37  ;;  %v1930_v16 = vpop.f32.mrf.mxu1  ;;  %v1875_v37 = vpop.f32.mrf.mxu3  ;;  %2538 = vmatpush.bf16.msra.mxu1 %v6218_v6 }
 0x363   : > { %v1931_v22 = vadd.f32 %v1930_v16, %v1902_v30  ;;  %v6210_v30 = vor.u32 %v7349_v39, %v6209_v4  ;;  %v6201_v16 = vld [vmem:[#allocation5 + $0x350] sm:$0xf]  ;;  %v7359_v4 = vld [vmem:[#allocation5 + $0x3b4] sm:$0xf0]  ;;  %v1876_v10 = vadd.f32 %v1875_v37, %v8753_v43  ;;  %v7350_v43 = vld [vmem:[#allocation5 + $0x374] sm:$0xf] }
 0x364   : > { %v2010_v59 = vmul.f32 %v7768_v2, %v2002_v46  ;;  %v7347_v2 = vld [vmem:[#allocation5 + $0x354] sm:$0xf0]  ;;  %2568 = vmatpush.bf16.msrb.mxu2 %v6274_v24  ;;  %v6219_v37 = vld [vmem:[#allocation5 + $0x378] sm:$0xf0] }
 0x365   : > { %v1960_v21 = vadd.f32 %v1959_v36, %v1931_v22 }
 0x366   : > { %v2016_v25 = vpack.c.bf16 %v2010_v59, %v2009_v40  ;;  %v6266_v40 = vor.u32 %v7363_v31, %v6265_v12  ;;  %2539 = vmatpush.bf16.msra.mxu1 %v6210_v30  ;;  %v6250_v12 = vor.u32 %v7359_v4, %v6249_v55  ;;  %v7381_v4 = vld [vmem:[#allocation5 + $0x464] sm:$0xf0] }
 0x367   : > { %v1980_v61 = vmul.f32 0.5, %v1960_v21  ;;  %v7770_v15 = vpop.eup %7769 }
 0x368   : > { %2136 = vmatmul.bf16.gmra.mxu3 %v2016_v25  ;;  %2165 = vmatmul.bf16.gmra.mxu0 %v2016_v25  ;;  %v1962_v54 = vpop.f32.mrf.mxu2  ;;  %v1995_v36 = vmul.f32 0.5, %v7770_v15  ;;  %v6202_v25 = vor.u32 %v7347_v2, %v6201_v16 }
 0x369   : > { %7771 = vtanh.f32 %v1980_v61  ;;  %v7361_v61 = vld [vmem:[#allocation5 + $0x3c4] sm:$0xf0]  ;;  %2569 = vmatpush.bf16.msrb.mxu2 %v6266_v40 }
 0x36a   : > { %v1933_v32 = vpop.f32.mrf.mxu1  ;;  %7773 = vtanh.f32 %v1871_v27  ;;  %v2003_v59 = vadd.f32 0.5, %v1995_v36  ;;  %v1907_v27 = vadd.f32 %v1906_v58, %v8760_v17  ;;  %v6258_v26 = vor.u32 %v7361_v61, %v6257_v56  ;;  %2540 = vmatpush.bf16.msra.mxu1 %v6202_v25  ;;  %v1877_v24 = vpop.f32.mrf.mxu3  ;;  %v6185_v56 = vld [vmem:[#allocation5 + $0x330] sm:$0xf]  ;;  %v7343_v61 = vld [vmem:[#allocation5 + $0x334] sm:$0xf0] }
 0x36b   : > { %v1934_v42 = vadd.f32 %v1933_v32, %v1905_v60  ;;  %7775 = vtanh.f32 %v1873_v47  ;;  %v6193_v60 = vld [vmem:[#allocation5 + $0x340] sm:$0xf]  ;;  %v7345_v47 = vld [vmem:[#allocation5 + $0x344] sm:$0xf0]  ;;  %v1849_v36 = vadd.f32 %v8755_v52, %v1820_v18  ;;  %v6222_v25 = vor.u32 %v7350_v43, %v6219_v37  ;;  %v6179_v43 = vld [vmem:[#allocation5 + $0x328] sm:$0xf0] }
 0x36c   : > { %v6225_v37 = vld [vmem:[#allocation5 + $0x380] sm:$0xf] }
 0x36d   : > { %v1963_v46 = vadd.f32 %v1962_v54, %v1934_v42  ;;  %v6194_v42 = vor.u32 %v7345_v47, %v6193_v60  ;;  %2570 = vmatpush.bf16.msrb.mxu2 %v6258_v26  ;;  %v1878_v31 = vadd.f32 %v1877_v24, %v1849_v36  ;;  %2625 = vmatpush.bf16.msrb.mxu0 %v6222_v25  ;;  %v6345_v60 = vld [vmem:[#allocation5 + $0x470] sm:$0xf]  ;;  %v7383_v47 = vld [vmem:[#allocation5 + $0x474] sm:$0xf0]  ;;  %v6177_v36 = vld [vmem:[#allocation5 + $0x320] sm:$0xf] }
 0x36e   : > { %v6346_v18 = vor.u32 %v7383_v47, %v6345_v60  ;;  %v7353_v25 = vld [vmem:[#allocation5 + $0x384] sm:$0xf0]  ;;  %v7375_v60 = vld [vmem:[#allocation5 + $0x434] sm:$0xf0]  ;;  %v7338_v47 = vld [vmem:[#allocation5 + $0x314] sm:$0xf] }
 0x36f   : > { %v7772_v22 = vpop.eup %7771  ;;  %v1981_v62 = vmul.f32 0.5, %v1963_v46  ;;  %2541 = vmatpush.bf16.msra.mxu1 %v6194_v42  ;;  %v6195_v42 = vld [vmem:[#allocation5 + $0x348] sm:$0xf0] }
 0x370   : > { %v1996_v21 = vmul.f32 0.5, %v7772_v22  ;;  %v7774_v19 = vpop.eup %7773  ;;  %v1964_v54 = vpop.f32.mrf.mxu2  ;;  %2596 = vmatpush.bf16.msrb.mxu3 %v6346_v18  ;;  %v6171_v18 = vld [vmem:[#allocation5 + $0x318] sm:$0xf0] }
 0x371   : > { %v7776_v11 = vpop.eup %7775  ;;  %7777 = vtanh.f32 %v1981_v62  ;;  %v2011_v32 = vmul.f32 %v7774_v19, %v2003_v59  ;;  %2571 = vmatpush.bf16.msrb.mxu2 %v6250_v12  ;;  %v6186_v19 = vor.u32 %v7343_v61, %v6185_v56  ;;  %v6226_v61 = vor.u32 %v7353_v25, %v6225_v37 }
 0x372   : > { %v2004_v20 = vadd.f32 0.5, %v1996_v21  ;;  %v1935_v15 = vpop.f32.mrf.mxu1 }
 0x373   : > { %v1936_v41 = vadd.f32 %v1935_v15, %v1907_v27  ;;  %v7348_v27 = vld [vmem:[#allocation5 + $0x364] sm:$0xf]  ;;  %2542 = vmatpush.bf16.msra.mxu1 %v6186_v19  ;;  %v7339_v19 = vld [vmem:[#allocation5 + $0x314] sm:$0xf0] }
 0x374   : > { %v2012_v6 = vmul.f32 %v7776_v11, %v2004_v20  ;;  %v6211_v20 = vld [vmem:[#allocation5 + $0x368] sm:$0xf0]  ;;  %v7346_v11 = vld [vmem:[#allocation5 + $0x354] sm:$0xf] }
 0x375   : > { %v1965_v17 = vadd.f32 %v1964_v54, %v1936_v41  ;;  %v6214_v15 = vor.u32 %v7348_v27, %v6211_v20  ;;  %v6203_v41 = vld [vmem:[#allocation5 + $0x358] sm:$0xf0]  ;;  %v7357_v54 = vld [vmem:[#allocation5 + $0x3a4] sm:$0xf0]  ;;  %v6169_v27 = vld [vmem:[#allocation5 + $0x310] sm:$0xf] }
 0x376   : > { %v2017_v39 = vpack.c.bf16 %v2012_v6, %v2011_v32  ;;  %v6206_v26 = vor.u32 %v7346_v11, %v6203_v41  ;;  %v6241_v32 = vld [vmem:[#allocation5 + $0x3a0] sm:$0xf]  ;;  %v6170_v20 = vor.u32 %v7339_v19, %v6169_v27  ;;  %v6174_v41 = vor.u32 %v7338_v47, %v6171_v18  ;;  %v7922_v19 = vld [vmem:[#allocation2 + $0x8] sm:$0xff]  ;;  %v6339_v47 = vld [vmem:[#allocation5 + $0x468] sm:$0xf0] }
 0x377   : > { %v1982_v30 = vmul.f32 0.5, %v1965_v17  ;;  %v7778_v33 = vpop.eup %7777  ;;  %2626 = vmatpush.bf16.msrb.mxu0 %v6214_v15  ;;  %v6337_v6 = vld [vmem:[#allocation5 + $0x460] sm:$0xf]  ;;  %v6242_v55 = vor.u32 %v7357_v54, %v6241_v32  ;;  %v7344_v17 = vld [vmem:[#allocation5 + $0x344] sm:$0xf] }
 0x378   : > { %2141 = vmatmul.bf16.gmra.mxu3 %v2017_v39  ;;  %2170 = vmatmul.bf16.gmra.mxu0 %v2017_v39  ;;  %v1997_v46 = vmul.f32 0.5, %v7778_v33  ;;  %v6338_v24 = vor.u32 %v7381_v4, %v6337_v6  ;;  %v6198_v39 = vor.u32 %v7344_v17, %v6195_v42  ;;  %v7355_v33 = vld [vmem:[#allocation5 + $0x394] sm:$0xf0]  ;;  %v6313_v15 = vld [vmem:[#allocation5 + $0x430] sm:$0xf] }
 0x379   : > { %7779 = vtanh.f32 %v1982_v30  ;;  %2572 = vmatpush.bf16.msrb.mxu2 %v6242_v55  ;;  %v7341_v30 = vld [vmem:[#allocation5 + $0x324] sm:$0xf0]  ;;  %v6314_v11 = vor.u32 %v7375_v60, %v6313_v15  ;;  %v6161_v32 = vld [vmem:[#allocation5 + $0x300] sm:$0xf]  ;;  %v7336_v17 = vld [vmem:[#allocation5 + $0x304] sm:$0xf] }
 0x37a   : > { %7781 = vtanh.f32 %v1876_v10  ;;  %v2005_v2 = vadd.f32 0.5, %v1997_v46  ;;  %v6178_v12 = vor.u32 %v7341_v30, %v6177_v36  ;;  %2597 = vmatpush.bf16.msrb.mxu3 %v6338_v24  ;;  %v6233_v10 = vld [vmem:[#allocation5 + $0x390] sm:$0xf]  ;;  %v7337_v54 = vld [vmem:[#allocation5 + $0x304] sm:$0xf0] }
 0x37b   : > { %7783 = vtanh.f32 %v1878_v31  ;;  %2627 = vmatpush.bf16.msrb.mxu0 %v6206_v26  ;;  %v6329_v31 = vld [vmem:[#allocation5 + $0x450] sm:$0xf]  ;;  %v6234_v46 = vor.u32 %v7355_v33, %v6233_v10  ;;  %v6305_v6 = vld [vmem:[#allocation5 + $0x420] sm:$0xf]  ;;  %v6162_v55 = vor.u32 %v7337_v54, %v6161_v32  ;;  %v7373_v4 = vld [vmem:[#allocation5 + $0x424] sm:$0xf0] }
 0x37c   : > { %2543 = vmatpush.bf16.msra.mxu1 %v6178_v12  ;;  %v2037_v26 = vld [vmem:[#allocation13 + $0x2] sm:$0x3]  ;;  %v6163_v42 = vld [vmem:[#allocation5 + $0x308] sm:$0xf0]  ;;  %v6306_v24 = vor.u32 %v7373_v4, %v6305_v6  ;;  %v7371_v33 = vld [vmem:[#allocation5 + $0x414] sm:$0xf0] }
 0x37d   : > { %2573 = vmatpush.bf16.msrb.mxu2 %v6234_v46  ;;  %v7921_v36 = vld [vmem:[#allocation13] sm:$0x3]  ;;  %v8788_v12 = vperm.slane %v2037_v26, 1  ;;  %v6297_v10 = vld [vmem:[#allocation5 + $0x410] sm:$0xf]  ;;  %v7923_v4 = vld [vmem:[#allocation2 + $0x10] sm:$0xff] }
 0x37e   : > { %v8786_v30 = vperm.slane %v7921_v36, 1  ;;  %v7380_v60 = vld [vmem:[#allocation5 + $0x464] sm:$0xf] }
 0x37f   : > { %v7780_v16 = vpop.eup %7779  ;;  %2628 = vmatpush.bf16.msrb.mxu0 %v6198_v39  ;;  %v6166_v39 = vor.u32 %v7336_v17, %v6163_v42  ;;  %v6342_v18 = vor.u32 %v7380_v60, %v6339_v47 }
 0x380   : > { %v1998_v58 = vmul.f32 0.5, %v7780_v16  ;;  %v7782_v22 = vpop.eup %7781  ;;  %v7379_v16 = vld [vmem:[#allocation5 + $0x454] sm:$0xf0]  ;;  %2544 = vmatpush.bf16.msra.mxu1 %v6170_v20 }
 0x381   : > { %v7784_v62 = vpop.eup %7783  ;;  %v2013_v40 = vmul.f32 %v7782_v22, %v2005_v2  ;;  %v7342_v2 = vld [vmem:[#allocation5 + $0x334] sm:$0xf]  ;;  %v6330_v22 = vor.u32 %v7379_v16, %v6329_v31  ;;  %2574 = vmatpush.bf16.msrb.mxu2 %v6226_v61  ;;  %v6298_v31 = vor.u32 %v7371_v33, %v6297_v10  ;;  %v1410_v16 = vadd.f32 %v8710_v45, %v8786_v30  ;;  %v6331_v33 = vld [vmem:[#allocation5 + $0x458] sm:$0xf0] }
 0x382   : > { %v2006_v52 = vadd.f32 0.5, %v1998_v58  ;;  %v6187_v58 = vld [vmem:[#allocation5 + $0x338] sm:$0xf0]  ;;  %v7378_v10 = vld [vmem:[#allocation5 + $0x454] sm:$0xf] }
 0x383   : > { %2598 = vmatpush.bf16.msrb.mxu3 %v6330_v22  ;;  %v7369_v22 = vld [vmem:[#allocation5 + $0x404] sm:$0xf0] }
 0x384   : > { %v2014_v59 = vmul.f32 %v7784_v62, %v2006_v52  ;;  %v6190_v52 = vor.u32 %v7342_v2, %v6187_v58  ;;  %v6321_v62 = vld [vmem:[#allocation5 + $0x440] sm:$0xf]  ;;  %2545 = vmatpush.bf16.msra.mxu1 %v6162_v55  ;;  %v1415_v55 = vadd.f32 %v8714_v8, %v8786_v30 }
 0x385   : > { %v6289_v58 = vld [vmem:[#allocation5 + $0x400] sm:$0xf] }
 0x386   : > { %v2018_v21 = vpack.c.bf16 %v2014_v59, %v2013_v40  ;;  %2629 = vmatpush.bf16.msrb.mxu0 %v6190_v52  ;;  %v7377_v40 = vld [vmem:[#allocation5 + $0x444] sm:$0xf0]  ;;  %v7340_v59 = vld [vmem:[#allocation5 + $0x324] sm:$0xf]  ;;  %v8793_v52 = vperm.slane %v2037_v26, 0 }
 0x387   : > { %v6182_v56 = vor.u32 %v7340_v59, %v6179_v43  ;;  %v7382_v59 = vld [vmem:[#allocation5 + $0x474] sm:$0xf]  ;;  %v6275_v26 = vld [vmem:[#allocation5 + $0x3e8] sm:$0xf0] }
 0x388   : > { %2146 = vmatmul.bf16.gmra.mxu3 %v2018_v21  ;;  %2175 = vmatmul.bf16.gmra.mxu0 %v2018_v21  ;;  %v6322_v21 = vor.u32 %v7377_v40, %v6321_v62  ;;  %v6290_v62 = vor.u32 %v7369_v22, %v6289_v58  ;;  %v7366_v43 = vld [vmem:[#allocation5 + $0x3f4] sm:$0xf] }
 0x38a   : > { %2599 = vmatpush.bf16.msrb.mxu3 %v6322_v21  ;;  %2630 = vmatpush.bf16.msrb.mxu0 %v6182_v56  ;;  %v6347_v21 = vld [vmem:[#allocation5 + $0x478] sm:$0xf0] }
 0x38b   : > { %v6350_v25 = vor.u32 %v7382_v59, %v6347_v21  ;;  %v6283_v56 = vld [vmem:[#allocation5 + $0x3f8] sm:$0xf0] }
 0x38c   : > { %v6286_v45 = vor.u32 %v7366_v43, %v6283_v56  ;;  %v7376_v56 = vld [vmem:[#allocation5 + $0x444] sm:$0xf] }
 0x38d   : > { %2683 = vmatpush.bf16.msra.mxu2 %v6350_v25 }
 0x38e   : > { %2600 = vmatpush.bf16.msrb.mxu3 %v6314_v11  ;;  %2631 = vmatpush.bf16.msrb.mxu0 %v6174_v41  ;;  %v7364_v41 = vld [vmem:[#allocation5 + $0x3e4] sm:$0xf] }
 0x38f   : > { %2654 = vmatpush.bf16.msrb.mxu1 %v6286_v45  ;;  %v6278_v54 = vor.u32 %v7364_v41, %v6275_v26  ;;  %v7925_v41 = vld [vmem:[#allocation2 + $0x20] sm:$0xff] }
 0x391   : > { %2684 = vmatpush.bf16.msra.mxu2 %v6342_v18  ;;  %v1420_v18 = vadd.f32 %v8728_v23, %v8786_v30  ;;  %v7358_v23 = vld [vmem:[#allocation5 + $0x3b4] sm:$0xf] }
 0x392   : > { %2601 = vmatpush.bf16.msrb.mxu3 %v6306_v24  ;;  %2632 = vmatpush.bf16.msrb.mxu0 %v6166_v39 }
 0x393   : > { %2655 = vmatpush.bf16.msrb.mxu1 %v6278_v54 }
 0x396   : > { %2602 = vmatpush.bf16.msrb.mxu3 %v6298_v31 }
 0x39a   : > { %2603 = vmatpush.bf16.msrb.mxu3 %v6290_v62  ;;  %v7924_v62 = vld [vmem:[#allocation2 + $0x18] sm:$0xff] }
 0x3d5   : > { %v2161_v46 = vpop.f32.mrf.mxu0 }
 0x3d6   : > { %v2162_v2 = vadd.f32 %v2161_v46, %v8788_v12  ;;  %v6334_v46 = vor.u32 %v7378_v10, %v6331_v33 }
 0x3d8   : > { %v8795_v40 = vadd.f32 %v2162_v2, %v1410_v16  ;;  %v7362_v16 = vld [vmem:[#allocation5 + $0x3d4] sm:$0xf]  ;;  %v6267_v2 = vld [vmem:[#allocation5 + $0x3d8] sm:$0xf0]  ;;  %2685 = vmatpush.bf16.msra.mxu2 %v6334_v46 }
 0x3d9   : > { %v6270_v58 = vor.u32 %v7362_v16, %v6267_v2  ;;  %v7372_v2 = vld [vmem:[#allocation5 + $0x424] sm:$0xf] }
 0x3db   : > { %v2132_v37 = vpop.f32.mrf.mxu3  ;;  %2656 = vmatpush.bf16.msrb.mxu1 %v6270_v58  ;;  %v7356_v58 = vld [vmem:[#allocation5 + $0x3a4] sm:$0xf] }
 0x3dc   : > { %v2133_v61 = vadd.f32 %v2132_v37, %v8793_v52 }
 0x3dd   : > { %v8798_v27 = vpop.f32.mrf.mxu0 }
 0x3de   : > { %v2181_v20 = vadd.f32 %v7922_v19, %v2133_v61  ;;  %v6323_v61 = vld [vmem:[#allocation5 + $0x448] sm:$0xf0] }
 0x3df   : > { %v6326_v19 = vor.u32 %v7376_v56, %v6323_v61 }
 0x3e0   : > { %v2189_v15 = vmul.f32 %v2181_v20, %v8506_v7  ;;  %v7360_v20 = vld [vmem:[#allocation5 + $0x3c4] sm:$0xf] }
 0x3e1   : > { %2686 = vmatpush.bf16.msra.mxu2 %v6326_v19 }
 0x3e2   : > { %2205 = vst [vmem:[#allocation2 + $0x8] sm:$0xff] %v2189_v15 }
 0x3e3   : > { %v2134_v11 = vpop.f32.mrf.mxu3 }
 0x3e4   : > { %v2135_v32 = vadd.f32 %v2134_v11, %v8793_v52 }
 0x3e5   : > { %v2166_v6 = vpop.f32.mrf.mxu0 }
 0x3e6   : > { %v2182_v17 = vadd.f32 %v7923_v4, %v2135_v32  ;;  %v2167_v42 = vadd.f32 %v2166_v6, %v8788_v12 }
 0x3e8   : > { %v2190_v24 = vmul.f32 %v2182_v17, %v8540_v63  ;;  %v8806_v39 = vadd.f32 %v2167_v42, %v1415_v55  ;;  %v7374_v42 = vld [vmem:[#allocation5 + $0x434] sm:$0xf] }
 0x3e9   : > { %v2213_v43 = vld [vmem:[#allocation2 + $0x4] sm:$0xff] }
 0x3ea   : > { %2206 = vst [vmem:[#allocation2 + $0x10] sm:$0xff] %v2190_v24  ;;  %v8808_v36 = vpack.c.bf16 %v2190_v24, %v2189_v15  ;;  %v6259_v15 = vld [vmem:[#allocation5 + $0x3c8] sm:$0xf0]  ;;  %v6315_v24 = vld [vmem:[#allocation5 + $0x438] sm:$0xf0] }
 0x3eb   : > { %v2137_v31 = vpop.f32.mrf.mxu3  ;;  %v6262_v47 = vor.u32 %v7360_v20, %v6259_v15  ;;  %v6318_v33 = vor.u32 %v7374_v42, %v6315_v24  ;;  %v7370_v20 = vld [vmem:[#allocation5 + $0x414] sm:$0xf]  ;;  %v6299_v15 = vld [vmem:[#allocation5 + $0x418] sm:$0xf0]  ;;  %v7368_v24 = vld [vmem:[#allocation5 + $0x404] sm:$0xf] }
 0x3ec   : > { %v2138_v8 = vadd.f32 %v2137_v31, %v8793_v52  ;;  %2575 = vmatmul.bf16.vlgmr.msrb.gmra.mxu2 %v8808_v36  ;;  %v6251_v31 = vld [vmem:[#allocation5 + $0x3b8] sm:$0xf0] }
 0x3ed   : > { %v8812_v22 = vpop.f32.mrf.mxu0  ;;  %2657 = vmatpush.bf16.msrb.mxu1 %v6262_v47  ;;  %v6254_v16 = vor.u32 %v7358_v23, %v6251_v31  ;;  %2687 = vmatpush.bf16.msra.mxu2 %v6318_v33  ;;  %v6302_v47 = vor.u32 %v7370_v20, %v6299_v15 }
 0x3ee   : > { %v2183_v59 = vadd.f32 %v7924_v62, %v2138_v8  ;;  %v6307_v8 = vld [vmem:[#allocation5 + $0x428] sm:$0xf0] }
 0x3f0   : > { %v2191_v21 = vmul.f32 %v2183_v59, %v8542_v0  ;;  %v6310_v59 = vor.u32 %v7372_v2, %v6307_v8 }
 0x3f1   : > { %v2214_v37 = vld [vmem:[#allocation2 + $0xc] sm:$0xff]  ;;  %2658 = vmatpush.bf16.msrb.mxu1 %v6254_v16 }
 0x3f2   : > { %2207 = vst [vmem:[#allocation2 + $0x18] sm:$0xff] %v2191_v21  ;;  %v2230_v25 = vpack.c.bf16 %v2214_v37, %v2213_v43  ;;  %v7926_v43 = vld [vmem:[#allocation2 + $0x28] sm:$0xff]  ;;  %2688 = vmatpush.bf16.msra.mxu2 %v6310_v59  ;;  %v3047_v16 = vld [vmem:[#allocation3 + $0x2] sm:$0x3]  ;;  %v7352_v59 = vld [vmem:[#allocation5 + $0x384] sm:$0xf] }
 0x3f3   : > { %v2139_v45 = vpop.f32.mrf.mxu3 }
 0x3f4   : > { %v2140_v60 = vadd.f32 %v2139_v45, %v8793_v52  ;;  %2546 = vmatmul.bf16.vlgmr.msra.gmra.mxu1 %v2230_v25  ;;  %2633 = vmatmul.bf16.vlgmr.msrb.gmra.mxu0 %v2230_v25 }
 0x3f5   : > { %v2171_v11 = vpop.f32.mrf.mxu0 }
 0x3f6   : > { %v2184_v26 = vadd.f32 %v7925_v41, %v2140_v60  ;;  %v2172_v32 = vadd.f32 %v2171_v11, %v8788_v12  ;;  %v7354_v11 = vld [vmem:[#allocation5 + $0x394] sm:$0xf]  ;;  %2689 = vmatpush.bf16.msra.mxu2 %v6302_v47 }
 0x3f8   : > { %v2192_v54 = vmul.f32 %v2184_v26, %v8514_v34  ;;  %v8820_v6 = vadd.f32 %v2172_v32, %v1420_v18  ;;  %v6235_v18 = vld [vmem:[#allocation5 + $0x398] sm:$0xf0]  ;;  %v1425_v32 = vadd.f32 %v8741_v13, %v8786_v30 }
 0x3f9   : > { %v2215_v55 = vld [vmem:[#allocation2 + $0x14] sm:$0xff]  ;;  %v6238_v26 = vor.u32 %v7354_v11, %v6235_v18 }
 0x3fa   : > { %2208 = vst [vmem:[#allocation2 + $0x20] sm:$0xff] %v2192_v54  ;;  %v8822_v4 = vpack.c.bf16 %v2215_v55, %v2214_v37  ;;  %v8824_v17 = vpack.c.bf16 %v2192_v54, %v2191_v21  ;;  %v6243_v21 = vld [vmem:[#allocation5 + $0x3a8] sm:$0xf0]  ;;  %v7927_v54 = vld [vmem:[#allocation2 + $0x30] sm:$0xff] }
 0x3fb   : > { %v2142_v10 = vpop.f32.mrf.mxu3  ;;  %v6246_v25 = vor.u32 %v7356_v58, %v6243_v21  ;;  %v6227_v21 = vld [vmem:[#allocation5 + $0x388] sm:$0xf0] }
 0x3fc   : > { %v2143_v46 = vadd.f32 %v2142_v10, %v8793_v52  ;;  %2604 = vmatmul.bf16.vlgmr.msrb.gmra.mxu3 %v8822_v4  ;;  %2580 = vmatmul.bf16.gmra.mxu2 %v8824_v17  ;;  %v6291_v10 = vld [vmem:[#allocation5 + $0x408] sm:$0xf0] }
 0x3fd   : > { %v8829_v62 = vpop.f32.mrf.mxu0  ;;  %2659 = vmatpush.bf16.msrb.mxu1 %v6246_v25  ;;  %v6294_v23 = vor.u32 %v7368_v24, %v6291_v10  ;;  %v7928_v25 = vld [vmem:[#allocation2 + $0x38] sm:$0xff] }
 0x3fe   : > { %v2185_v37 = vadd.f32 %v7926_v43, %v2143_v46  ;;  %v3066_v43 = vsel %vm624_vm0, %v3047_v16, 0 }
 0x3ff   : > { %2690 = vmatpush.bf16.msra.mxu2 %v6294_v23 }
 0x400   : > { %v2193_v56 = vmul.f32 %v2185_v37, %v8524_v50  ;;  %v6230_v37 = vor.u32 %v7352_v59, %v6227_v21 }
 0x401   : > { %v2216_v61 = vld [vmem:[#allocation2 + $0x1c] sm:$0xff]  ;;  %2660 = vmatpush.bf16.msrb.mxu1 %v6238_v26 }
 0x402   : > { %2209 = vst [vmem:[#allocation2 + $0x28] sm:$0xff] %v2193_v56  ;;  %v2233_v45 = vpack.c.bf16 %v2216_v61, %v2215_v55 }
 0x403   : > { %v2144_v19 = vpop.f32.mrf.mxu3 }
 0x404   : > { %v2145_v60 = vadd.f32 %v2144_v19, %v8793_v52  ;;  %2551 = vmatmul.bf16.gmra.mxu1 %v2233_v45  ;;  %2638 = vmatmul.bf16.gmra.mxu0 %v2233_v45 }
 0x405   : > { %v2176_v41 = vpop.f32.mrf.mxu0  ;;  %2661 = vmatpush.bf16.msrb.mxu1 %v6230_v37  ;;  %v7388_v37 = vld [vmem:[#allocation8 + $0x20] sm:$0xff] }
 0x406   : > { %v2186_v42 = vadd.f32 %v7927_v54, %v2145_v60  ;;  %v2177_v55 = vadd.f32 %v2176_v41, %v8788_v12  ;;  %v7929_v60 = vld [vmem:[#allocation2 + $0x40] sm:$0xff] }
 0x408   : > { %v2194_v33 = vmul.f32 %v2186_v42, %v8516_v35  ;;  %v8837_v31 = vadd.f32 %v2177_v55, %v1425_v32 }
 0x409   : > { %v2217_v46 = vld [vmem:[#allocation2 + $0x24] sm:$0xff]  ;;  %3075 = vmatpush.bf16.msra.mxu1 %v3066_v43 }
 0x40a   : > { %2210 = vst [vmem:[#allocation2 + $0x30] sm:$0xff] %v2194_v33  ;;  %v2235_v2 = vpack.c.bf16 %v2217_v46, %v2216_v61  ;;  %v2237_v8 = vpack.c.bf16 %v2194_v33, %v2193_v56 }
 0x40b   : > { %v2147_v13 = vpop.f32.mrf.mxu3 }
 0x40c   : > { %v2148_v58 = vadd.f32 %v2147_v13, %v8793_v52  ;;  %2609 = vmatmul.bf16.gmra.mxu3 %v2235_v2  ;;  %2585 = vmatmul.bf16.gmra.mxu2 %v2237_v8 }
 0x40e   : > { %v2187_v45 = vadd.f32 %v7928_v25, %v2148_v58  ;;  %v7389_v58 = vld [vmem:[#allocation8 + $0x28] sm:$0xff] }
 0x410   : > { %v2195_v19 = vmul.f32 %v2187_v45, %v8526_v51 }
 0x411   : > { %v2218_v20 = vld [vmem:[#allocation2 + $0x2c] sm:$0xff] }
 0x412   : > { %2211 = vst [vmem:[#allocation2 + $0x38] sm:$0xff] %v2195_v19  ;;  %v2236_v56 = vpack.c.bf16 %v2218_v20, %v2217_v46  ;;  %v7391_v46 = vld [vmem:[#allocation8 + $0x38] sm:$0xff] }
 0x413   : > { %v2149_v61 = vpop.f32.mrf.mxu3  ;;  %2828 = vmatpush.bf16.msra.mxu3 %v7391_v46 }
 0x414   : > { %v2150_v15 = vadd.f32 %v2149_v61, %v8793_v52  ;;  %2556 = vmatmul.bf16.gmra.mxu1 %v2236_v56  ;;  %2643 = vmatmul.bf16.gmra.mxu0 %v2236_v56  ;;  %v2292_v52 = vld [vmem:[#allocation11 + $0x4] sm:$0x3]  ;;  %v8860_v61 = vpop.f32.mrf.mxu0 }
 0x415   : > { %v8847_v24 = vperm.slane %v2292_v52, 0  ;;  %v8873_v46 = vperm.slane %v2292_v52, 1 }
 0x416   : > { %v2188_v47 = vadd.f32 %v7929_v60, %v2150_v15 }
 0x418   : > { %v2196_v11 = vmul.f32 %v2188_v47, %v8504_v44 }
 0x419   : > { %v2219_v18 = vld [vmem:[#allocation2 + $0x34] sm:$0xff] }
 0x41a   : > { %2212 = vst [vmem:[#allocation2 + $0x40] sm:$0xff] %v2196_v11  ;;  %v2238_v41 = vpack.c.bf16 %v2219_v18, %v2218_v20  ;;  %v2240_v26 = vpack.c.bf16 %v2196_v11, %v2195_v19  ;;  %v7387_v20 = vld [vmem:[#allocation8 + $0x18] sm:$0xff] }
 0x41c   : > { %2614 = vmatmul.bf16.gmra.mxu3 %v2238_v41  ;;  %2590 = vmatmul.bf16.gmra.mxu2 %v2240_v26 }
 0x421   : > { %v2220_v32 = vld [vmem:[#allocation2 + $0x3c] sm:$0xff]  ;;  %v2229_v42 = vld [vmem:[#allocation2 + $0x44] sm:$0xff] }
 0x422   : > { %v2239_v54 = vpack.c.bf16 %v2220_v32, %v2219_v18  ;;  %v2241_v55 = vpack.c.bf16 %v2229_v42, %v2220_v32 }
 0x424   : > { %2561 = vmatmul.bf16.gmra.mxu1 %v2239_v54  ;;  %2648 = vmatmul.bf16.gmra.mxu0 %v2239_v54 }
 0x42c   : > { %2619 = vmatmul.bf16.gmra.mxu3 %v2241_v55  ;;  %2691 = vmatmul.bf16.vlgmr.msra.gmra.mxu2 %v8822_v4 }
 0x434   : > { %2662 = vmatmul.bf16.vlgmr.msrb.gmra.mxu1 %v8808_v36  ;;  %v7390_v36 = vld [vmem:[#allocation8 + $0x30] sm:$0xff] }
 0x435   : > { %2829 = vmatpush.bf16.msra.mxu3 %v7390_v36 }
 0x439   : > { %2830 = vmatpush.bf16.msra.mxu3 %v7389_v58 }
 0x43c   : > { %2696 = vmatmul.bf16.gmra.mxu2 %v2235_v2 }
 0x43d   : > { %2831 = vmatpush.bf16.msra.mxu3 %v7388_v37 }
 0x441   : > { %2832 = vmatpush.bf16.msra.mxu3 %v7387_v20 }
 0x444   : > { %2667 = vmatmul.bf16.gmra.mxu1 %v8824_v17 }
 0x44c   : > { %2701 = vmatmul.bf16.gmra.mxu2 %v2238_v41 }
 0x454   : > { %2672 = vmatmul.bf16.gmra.mxu1 %v2237_v8 }
 0x45c   : > { %2706 = vmatmul.bf16.gmra.mxu2 %v2241_v55  ;;  %v7385_v55 = vld [vmem:[#allocation8 + $0x8] sm:$0xff] }
 0x464   : > { %2677 = vmatmul.bf16.gmra.mxu1 %v2240_v26  ;;  %v7386_v26 = vld [vmem:[#allocation8 + $0x10] sm:$0xff] }
 0x465   : > { %2833 = vmatpush.bf16.msra.mxu3 %v7386_v26 }
 0x469   : > { %2834 = vmatpush.bf16.msra.mxu3 %v7385_v55 }
 0x46f   : > { %v2576_v10 = vpop.f32.mrf.mxu2 }
 0x471   : > { %v2547_v33 = vpop.f32.mrf.mxu1  ;;  %v2634_v47 = vpop.f32.mrf.mxu0 }
 0x472   : > { %v2548_v23 = vadd.f32 %v2547_v33, %v8847_v24 }
 0x474   : > { %v2577_v16 = vadd.f32 %v2576_v10, %v2548_v23  ;;  %v7384_v23 = vld [vmem:[#allocation8] sm:$0xff] }
 0x475   : > { %2835 = vmatpush.bf16.msra.mxu3 %v7384_v23 }
 0x477   : > { %v2578_v4 = vpop.f32.mrf.mxu2 }
 0x479   : > { %v2549_v13 = vpop.f32.mrf.mxu1  ;;  %v2636_v10 = vpop.f32.mrf.mxu0 }
 0x47a   : > { %v2637_v20 = vadd.f32 %v2636_v10, %v8873_v46 }
 0x47f   : > { %v2581_v2 = vpop.f32.mrf.mxu2  ;;  %v2605_v54 = vpop.f32.mrf.mxu3 }
 0x481   : > { %v2552_v17 = vpop.f32.mrf.mxu1  ;;  %v2639_v37 = vpop.f32.mrf.mxu0 }
 0x482   : > { %v2553_v8 = vadd.f32 %v2552_v17, %v8847_v24 }
 0x484   : > { %v8851_v59 = vadd.f32 %v2581_v2, %v2553_v8  ;;  %v2635_v2 = vadd.f32 %v2634_v47, %v8873_v46  ;;  %v2606_v47 = vadd.f32 %v2605_v54, %v2577_v16 }
 0x487   : > { %v8853_v21 = vpop.f32.mrf.mxu2  ;;  %v2607_v17 = vpop.f32.mrf.mxu3 }
 0x489   : > { %v8855_v43 = vpop.f32.mrf.mxu1  ;;  %v2641_v55 = vpop.f32.mrf.mxu0 }
 0x48a   : > { %v2642_v16 = vadd.f32 %v2641_v55, %v8873_v46 }
 0x48f   : > { %v2586_v25 = vpop.f32.mrf.mxu2  ;;  %v2610_v52 = vpop.f32.mrf.mxu3 }
 0x491   : > { %v2557_v45 = vpop.f32.mrf.mxu1 }
 0x492   : > { %v2558_v19 = vadd.f32 %v2557_v45, %v8847_v24 }
 0x494   : > { %v8858_v56 = vadd.f32 %v2586_v25, %v2558_v19 }
 0x497   : > { %v8862_v15 = vpop.f32.mrf.mxu2 }
 0x499   : > { %v8864_v60 = vpop.f32.mrf.mxu1 }
 0x49f   : > { %v2591_v11 = vpop.f32.mrf.mxu2 }
 0x4a1   : > { %v2562_v18 = vpop.f32.mrf.mxu1 }
 0x4a2   : > { %v2563_v41 = vadd.f32 %v2562_v18, %v8847_v24  ;;  %v2550_v18 = vadd.f32 %v2549_v13, %v8847_v24 }
 0x4a4   : > { %v8867_v32 = vadd.f32 %v2591_v11, %v2563_v41  ;;  %v2579_v23 = vadd.f32 %v2578_v4, %v2550_v18 }
 0x4a7   : > { %v8869_v42 = vpop.f32.mrf.mxu2 }
 0x4a9   : > { %v8871_v33 = vpop.f32.mrf.mxu1 }
 0x4af   : > { %v2692_v36 = vpop.f32.mrf.mxu2 }
 0x4b1   : > { %v2663_v8 = vpop.f32.mrf.mxu1 }
 0x4b2   : > { %v2664_v58 = vadd.f32 %v2663_v8, %v2635_v2  ;;  %v2640_v2 = vadd.f32 %v2639_v37, %v8873_v46 }
 0x4b4   : > { %v2693_v25 = vadd.f32 %v2692_v36, %v2664_v58  ;;  %v2608_v36 = vadd.f32 %v2607_v17, %v2579_v23 }
 0x4b6   : > { %v2720_v45 = vmul.f32 0.5, %v2693_v25  ;;  %v2612_v25 = vpop.f32.mrf.mxu3 }
 0x4b7   : > { %v2694_v19 = vpop.f32.mrf.mxu2 }
 0x4b8   : > { %7785 = vtanh.f32 %v2720_v45 }
 0x4b9   : > { %v2665_v11 = vpop.f32.mrf.mxu1 }
 0x4ba   : > { %v2666_v41 = vadd.f32 %v2665_v11, %v2637_v20 }
 0x4bc   : > { %v2695_v26 = vadd.f32 %v2694_v19, %v2666_v41  ;;  %v2644_v19 = vpop.f32.mrf.mxu0 }
 0x4be   : > { %v2721_v49 = vmul.f32 0.5, %v2695_v26  ;;  %v7786_v29 = vpop.eup %7785 }
 0x4bf   : > { %v2697_v53 = vpop.f32.mrf.mxu2  ;;  %v2736_v10 = vmul.f32 0.5, %v7786_v29 }
 0x4c0   : > { %7787 = vtanh.f32 %v2721_v49  ;;  %v2555_v49 = vadd.f32 %v8855_v43, %v8847_v24 }
 0x4c1   : > { %v2668_v8 = vpop.f32.mrf.mxu1  ;;  %7789 = vtanh.f32 %v2606_v47  ;;  %v2744_v11 = vadd.f32 0.5, %v2736_v10 }
 0x4c2   : > { %v2669_v58 = vadd.f32 %v2668_v8, %v2640_v2  ;;  %7791 = vtanh.f32 %v2608_v36  ;;  %v2584_v2 = vadd.f32 %v8853_v21, %v2555_v49  ;;  %v2611_v8 = vadd.f32 %v2610_v52, %v8851_v59 }
 0x4c4   : > { %v2698_v13 = vadd.f32 %v2697_v53, %v2669_v58  ;;  %v2615_v58 = vpop.f32.mrf.mxu3  ;;  %v2646_v43 = vpop.f32.mrf.mxu0 }
 0x4c5   : > { %v2647_v52 = vadd.f32 %v2646_v43, %v8873_v46 }
 0x4c6   : > { %v7788_v45 = vpop.eup %7787  ;;  %v2722_v20 = vmul.f32 0.5, %v2698_v13  ;;  %v2645_v13 = vadd.f32 %v2644_v19, %v8873_v46 }
 0x4c7   : > { %v2737_v4 = vmul.f32 0.5, %v7788_v45  ;;  %v2699_v18 = vpop.f32.mrf.mxu2  ;;  %v7790_v54 = vpop.eup %7789  ;;  %v2613_v45 = vadd.f32 %v2612_v25, %v2584_v2 }
 0x4c8   : > { %v7792_v17 = vpop.eup %7791  ;;  %7793 = vtanh.f32 %v2722_v20  ;;  %v2752_v26 = vmul.f32 %v7790_v54, %v2744_v11 }
 0x4c9   : > { %v2745_v41 = vadd.f32 0.5, %v2737_v4  ;;  %v2670_v37 = vpop.f32.mrf.mxu1 }
 0x4ca   : > { %v2671_v29 = vadd.f32 %v2670_v37, %v2642_v16 }
 0x4cb   : > { %v2753_v53 = vmul.f32 %v7792_v17, %v2745_v41 }
 0x4cc   : > { %v2700_v23 = vadd.f32 %v2699_v18, %v2671_v29  ;;  %v2617_v17 = vpop.f32.mrf.mxu3  ;;  %v2560_v29 = vadd.f32 %v8864_v60, %v8847_v24 }
 0x4cd   : > { %v2760_v47 = vpack.c.bf16 %v2753_v53, %v2752_v26  ;;  %v2649_v53 = vpop.f32.mrf.mxu0 }
 0x4ce   : > { %v2723_v36 = vmul.f32 0.5, %v2700_v23  ;;  %v7794_v10 = vpop.eup %7793  ;;  %v2650_v60 = vadd.f32 %v2649_v53, %v8873_v46 }
 0x4cf   : > { %2836 = vmatmul.bf16.vlgmr.msra.gmra.mxu3 %v2760_v47  ;;  %v2702_v55 = vpop.f32.mrf.mxu2  ;;  %v2738_v11 = vmul.f32 0.5, %v7794_v10  ;;  %v2616_v10 = vadd.f32 %v2615_v58, %v8858_v56 }
 0x4d0   : > { %7795 = vtanh.f32 %v2723_v36 }
 0x4d1   : > { %v2673_v20 = vpop.f32.mrf.mxu1  ;;  %7797 = vtanh.f32 %v2611_v8  ;;  %v2746_v54 = vadd.f32 0.5, %v2738_v11  ;;  %v2589_v8 = vadd.f32 %v8862_v15, %v2560_v29  ;;  %v7398_v15 = vld [vmem:[%s9374_s6 + $0x30] sm:$0xff] }
 0x4d2   : > { %v2674_v4 = vadd.f32 %v2673_v20, %v2645_v13  ;;  %7799 = vtanh.f32 %v2613_v45  ;;  %v7399_v13 = vld [vmem:[%s9374_s6 + $0x38] sm:$0xff] }
 0x4d3   : > { %v2618_v43 = vadd.f32 %v2617_v17, %v2589_v8  ;;  %2957 = vmatpush.bf16.msra.mxu0 %v7399_v13 }
 0x4d4   : > { %v2703_v18 = vadd.f32 %v2702_v55, %v2674_v4  ;;  %v2620_v56 = vpop.f32.mrf.mxu3 }
 0x4d6   : > { %v7796_v16 = vpop.eup %7795  ;;  %v2724_v21 = vmul.f32 0.5, %v2703_v18 }
 0x4d7   : > { %v2739_v41 = vmul.f32 0.5, %v7796_v16  ;;  %v2704_v59 = vpop.f32.mrf.mxu2  ;;  %v7798_v37 = vpop.eup %7797  ;;  %2958 = vmatpush.bf16.msra.mxu0 %v7398_v15 }
 0x4d8   : > { %v7800_v25 = vpop.eup %7799  ;;  %7801 = vtanh.f32 %v2724_v21  ;;  %v2754_v23 = vmul.f32 %v7798_v37, %v2746_v54  ;;  %v2651_v16 = vpop.f32.mrf.mxu0  ;;  %v7397_v21 = vld [vmem:[%s9374_s6 + $0x28] sm:$0xff] }
 0x4d9   : > { %v2747_v49 = vadd.f32 0.5, %v2739_v41  ;;  %v2675_v19 = vpop.f32.mrf.mxu1  ;;  %v2652_v37 = vadd.f32 %v2651_v16, %v8873_v46  ;;  %v7393_v16 = vld [vmem:[%s9374_s6 + $0x8] sm:$0xff] }
 0x4da   : > { %v2676_v26 = vadd.f32 %v2675_v19, %v2647_v52 }
 0x4db   : > { %v2755_v47 = vmul.f32 %v7800_v25, %v2747_v49  ;;  %2959 = vmatpush.bf16.msra.mxu0 %v7397_v21  ;;  %v7396_v25 = vld [vmem:[%s9374_s6 + $0x20] sm:$0xff] }
 0x4dc   : > { %v2705_v2 = vadd.f32 %v2704_v59, %v2676_v26  ;;  %v2565_v26 = vadd.f32 %v8871_v33, %v8847_v24  ;;  %v2622_v8 = vpop.f32.mrf.mxu3  ;;  %v7392_v21 = vld [vmem:[%s9374_s6] sm:$0xff] }
 0x4dd   : > { %v2761_v36 = vpack.c.bf16 %v2755_v47, %v2754_v23 }
 0x4de   : > { %v2725_v55 = vmul.f32 0.5, %v2705_v2  ;;  %v7802_v45 = vpop.eup %7801 }
 0x4df   : > { %2841 = vmatmul.bf16.gmra.mxu3 %v2761_v36  ;;  %v2707_v4 = vpop.f32.mrf.mxu2  ;;  %v2740_v58 = vmul.f32 0.5, %v7802_v45  ;;  %2960 = vmatpush.bf16.msra.mxu0 %v7396_v25  ;;  %v2621_v45 = vadd.f32 %v2620_v56, %v8867_v32 }
 0x4e0   : > { %7803 = vtanh.f32 %v2725_v55  ;;  %v7395_v55 = vld [vmem:[%s9374_s6 + $0x18] sm:$0xff] }
 0x4e1   : > { %v2678_v20 = vpop.f32.mrf.mxu1  ;;  %7805 = vtanh.f32 %v2616_v10  ;;  %v2748_v59 = vadd.f32 0.5, %v2740_v58  ;;  %v2594_v10 = vadd.f32 %v8869_v42, %v2565_v26 }
 0x4e2   : > { %v2679_v11 = vadd.f32 %v2678_v20, %v2650_v60  ;;  %7807 = vtanh.f32 %v2618_v43  ;;  %v7394_v60 = vld [vmem:[%s9374_s6 + $0x10] sm:$0xff] }
 0x4e3   : > { %v2623_v33 = vadd.f32 %v2622_v8, %v2594_v10  ;;  %2961 = vmatpush.bf16.msra.mxu0 %v7395_v55 }
 0x4e4   : > { %v2708_v18 = vadd.f32 %v2707_v4, %v2679_v11 }
 0x4e6   : > { %v7804_v54 = vpop.eup %7803  ;;  %v2726_v41 = vmul.f32 0.5, %v2708_v18 }
 0x4e7   : > { %v2741_v52 = vmul.f32 0.5, %v7804_v54  ;;  %v7806_v17 = vpop.eup %7805  ;;  %v2709_v47 = vpop.f32.mrf.mxu2  ;;  %2962 = vmatpush.bf16.msra.mxu0 %v7394_v60 }
 0x4e8   : > { %v7808_v29 = vpop.eup %7807  ;;  %7809 = vtanh.f32 %v2726_v41  ;;  %v2756_v23 = vmul.f32 %v7806_v17, %v2748_v59  ;;  %v2164_v41 = vadd.f32 %v8798_v27, %v8788_v12  ;;  %v1412_v59 = vadd.f32 %v8712_v57, %v8786_v30 }
 0x4e9   : > { %v2749_v49 = vadd.f32 0.5, %v2741_v52  ;;  %v2680_v19 = vpop.f32.mrf.mxu1  ;;  %v2169_v27 = vadd.f32 %v8812_v22, %v8788_v12  ;;  %v1417_v57 = vadd.f32 %v8721_v9, %v8786_v30  ;;  %v2174_v22 = vadd.f32 %v8829_v62, %v8788_v12 }
 0x4ea   : > { %v2681_v53 = vadd.f32 %v2680_v19, %v2652_v37  ;;  %v7716_v37 = vld [vmem:[#allocation14] ss:$0 sm:$0xff]  ;;  %v2198_v17 = vadd.f32 %v2164_v41, %v1412_v59  ;;  %v1422_v9 = vadd.f32 %v8733_v5, %v8786_v30  ;;  %v2179_v62 = vadd.f32 %v8860_v61, %v8788_v12  ;;  %v3011_v61 = vpop.permute.xlu2 %3010 }
 0x4eb   : > { %v2757_v2 = vmul.f32 %v7808_v29, %v2749_v49  ;;  %2963 = vmatpush.bf16.msra.mxu0 %v7393_v16  ;;  %v1427_v5 = vadd.f32 %v8746_v48, %v8786_v30 }
 0x4ec   : > { %v2710_v36 = vadd.f32 %v2709_v47, %v2681_v53 }
 0x4ed   : > { %v2762_v46 = vpack.c.bf16 %v2757_v2, %v2756_v23  ;;  %v2200_v2 = vadd.f32 %v2169_v27, %v1417_v57 }
 0x4ee   : > { %v2727_v13 = vmul.f32 0.5, %v2710_v36  ;;  %v7810_v24 = vpop.eup %7809 }
 0x4ef   : > { %2846 = vmatmul.bf16.gmra.mxu3 %v2762_v46  ;;  %v2742_v43 = vmul.f32 0.5, %v7810_v24  ;;  %2964 = vmatpush.bf16.msra.mxu0 %v7392_v21 }
 0x4f0   : > { %7811 = vtanh.f32 %v2727_v13 }
 0x4f1   : > { %7813 = vtanh.f32 %v2621_v45  ;;  %v2750_v4 = vadd.f32 0.5, %v2742_v43 }
 0x4f2   : > { %7815 = vtanh.f32 %v2623_v33  ;;  %v2202_v33 = vadd.f32 %v2174_v22, %v1422_v9  ;;  %v7431_v9 = vld [vmem:[#allocation5 + $0x574] sm:$0xf0] }
 0x4f6   : > { %v7812_v20 = vpop.eup %7811 }
 0x4f7   : > { %v2743_v15 = vmul.f32 0.5, %v7812_v20  ;;  %v7814_v42 = vpop.eup %7813 }
 0x4f8   : > { %v7816_v58 = vpop.eup %7815  ;;  %v2758_v32 = vmul.f32 %v7814_v42, %v2750_v4 }
 0x4f9   : > { %v2751_v11 = vadd.f32 0.5, %v2743_v15 }
 0x4fb   : > { %v2759_v56 = vmul.f32 %v7816_v58, %v2751_v11 }
 0x4fd   : > { %v2763_v18 = vpack.c.bf16 %v2759_v56, %v2758_v32  ;;  %v2204_v32 = vadd.f32 %v2179_v62, %v1427_v5 }
 0x4ff   : > { %2851 = vmatmul.bf16.gmra.mxu3 %v2763_v18 }
 0x552   : > { %v2837_v54 = vpop.f32.mrf.mxu3 }
 0x553   : > { %v2857_v52 = vadd.f32 %v2837_v54, %v8795_v40 }
 0x555   : > { %v2869_v19 = vadd.f32 %v7716_v37, %v2857_v52  ;;  %v7717_v52 = vld [vmem:[#allocation16] ss:$0 sm:$0xff] }
 0x557   : > { %v2877_v26 = vmul.f32 %v2869_v19, %v8506_v7  ;;  %v3013_v19 = vpop.permute.xlu0 %3012 }
 0x55a   : > { %v2839_v49 = vpop.f32.mrf.mxu3 }
 0x55b   : > { %v2858_v25 = vadd.f32 %v2839_v49, %v2198_v17 }
 0x55d   : > { %v2870_v29 = vadd.f32 %v7716_v37, %v2858_v25 }
 0x55f   : > { %v2878_v53 = vmul.f32 %v2870_v29, %v8540_v63 }
 0x561   : > { %v2885_v23 = vpack.c.bf16 %v2878_v53, %v2877_v26 }
 0x562   : > { %v2842_v47 = vpop.f32.mrf.mxu3 }
 0x563   : > { %2965 = vmatmul.bf16.vlgmr.msra.gmra.mxu0 %v2885_v23  ;;  %v2859_v40 = vadd.f32 %v2842_v47, %v8806_v39  ;;  %v3015_v47 = vpop.permute.xlu1 %3014 }
 0x565   : > { %v2871_v8 = vadd.f32 %v7716_v37, %v2859_v40 }
 0x567   : > { %v2879_v10 = vmul.f32 %v2871_v8, %v8542_v0 }
 0x56a   : > { %v2844_v36 = vpop.f32.mrf.mxu3 }
 0x56b   : > { %v2860_v46 = vadd.f32 %v2844_v36, %v2200_v2  ;;  %v3017_v36 = vpop.permute.xlu2 %3016 }
 0x56d   : > { %v2872_v55 = vadd.f32 %v7716_v37, %v2860_v46 }
 0x56f   : > { %v2880_v13 = vmul.f32 %v2872_v55, %v8514_v34 }
 0x571   : > { %v2886_v45 = vpack.c.bf16 %v2880_v13, %v2879_v10  ;;  %v6477_v13 = vld [vmem:[#allocation5 + $0x4f0] sm:$0xf] }
 0x572   : > { %v2847_v24 = vpop.f32.mrf.mxu3 }
 0x573   : > { %2970 = vmatmul.bf16.gmra.mxu0 %v2886_v45  ;;  %v2861_v39 = vadd.f32 %v2847_v24, %v8820_v6  ;;  %v7415_v45 = vld [vmem:[#allocation5 + $0x4f4] sm:$0xf0]  ;;  %v6541_v24 = vld [vmem:[#allocation5 + $0x570] sm:$0xf] }
 0x574   : > { %v6478_v22 = vor.u32 %v7415_v45, %v6477_v13 }
 0x575   : > { %v2873_v43 = vadd.f32 %v7716_v37, %v2861_v39 }
 0x576   : > { %3445 = vmatpush.bf16.msrb.mxu2 %v6478_v22  ;;  %v6471_v22 = vld [vmem:[#allocation5 + $0x4e8] sm:$0xf0] }
 0x577   : > { %v2881_v15 = vmul.f32 %v2873_v43, %v8524_v50 }
 0x57a   : > { %v2849_v60 = vpop.f32.mrf.mxu3 }
 0x57b   : > { %v2862_v20 = vadd.f32 %v2849_v60, %v2202_v33  ;;  %v6542_v33 = vor.u32 %v7431_v9, %v6541_v24  ;;  %v3019_v60 = vpop.permute.xlu0 %3018  ;;  %v7412_v24 = vld [vmem:[#allocation5 + $0x4e4] sm:$0xf] }
 0x57c   : > { %v6474_v9 = vor.u32 %v7412_v24, %v6471_v22  ;;  %v6565_v24 = vld [vmem:[#allocation5 + $0x5a0] sm:$0xf]  ;;  %v7437_v22 = vld [vmem:[#allocation5 + $0x5a4] sm:$0xf0] }
 0x57d   : > { %v2874_v4 = vadd.f32 %v7716_v37, %v2862_v20  ;;  %3474 = vmatpush.bf16.msrb.mxu3 %v6542_v33  ;;  %v7405_v33 = vld [vmem:[#allocation5 + $0x4a4] sm:$0xf0] }
 0x57f   : > { %v2882_v42 = vmul.f32 %v2874_v4, %v8516_v35 }
 0x581   : > { %v2887_v11 = vpack.c.bf16 %v2882_v42, %v2881_v15  ;;  %v3021_v42 = vpop.permute.xlu1 %3020 }
 0x582   : > { %v2852_v58 = vpop.f32.mrf.mxu3 }
 0x583   : > { %2975 = vmatmul.bf16.gmra.mxu0 %v2887_v11  ;;  %v2863_v6 = vadd.f32 %v2852_v58, %v8837_v31 }
 0x585   : > { %v2875_v18 = vadd.f32 %v7716_v37, %v2863_v6 }
 0x587   : > { %v2883_v54 = vmul.f32 %v2875_v18, %v8526_v51 }
 0x58a   : > { %v2854_v56 = vpop.f32.mrf.mxu3 }
 0x58b   : > { %v2864_v16 = vadd.f32 %v2854_v56, %v2204_v32  ;;  %v3023_v32 = vpop.permute.xlu2 %3022 }
 0x58d   : > { %v2876_v21 = vadd.f32 %v7716_v37, %v2864_v16 }
 0x58f   : > { %v2884_v41 = vmul.f32 %v2876_v21, %v8504_v44 }
 0x591   : > { %v2888_v59 = vpack.c.bf16 %v2884_v41, %v2883_v54  ;;  %v3025_v54 = vpop.permute.xlu0 %3024 }
 0x593   : > { %2980 = vmatmul.bf16.gmra.mxu0 %v2888_v59 }
 0x5e0   : > { %v2966_v17 = vpop.f32.mrf.mxu0 }
 0x5e1   : > { %v2967_v49 = vadd.f32 %v7717_v52, %v2966_v17  ;;  %v6469_v17 = vld [vmem:[#allocation5 + $0x4e0] sm:$0xf] }
 0x5e3   : > { %v2986_v12 = vmul.f32 %v2967_v49, %v8506_v7  ;;  %v7413_v49 = vld [vmem:[#allocation5 + $0x4e4] sm:$0xf0] }
 0x5e5   : > { %v3034_v48 = vadd.f32 %v3011_v61, %v2986_v12  ;;  %v6533_v12 = vld [vmem:[#allocation5 + $0x560] sm:$0xf]  ;;  %v6470_v61 = vor.u32 %v7413_v49, %v6469_v17  ;;  %v6589_v17 = vld [vmem:[#allocation5 + $0x5d0] sm:$0xf]  ;;  %v7443_v49 = vld [vmem:[#allocation5 + $0x5d4] sm:$0xf0] }
 0x5e7   : > { %5418 = vrot.lane.b32.xlu1 %v3034_v48, %s8263_s24  ;;  %3446 = vmatpush.bf16.msrb.mxu2 %v6470_v61  ;;  %v6590_v61 = vor.u32 %v7443_v49, %v6589_v17  ;;  %v7444_v49 = vld [vmem:[#allocation5 + $0x5e4] sm:$0xf] }
 0x5e8   : > { %v2968_v30 = vpop.f32.mrf.mxu0 }
 0x5e9   : > { %v2969_v31 = vadd.f32 %v7717_v52, %v2968_v30  ;;  %v6461_v30 = vld [vmem:[#allocation5 + $0x4d0] sm:$0xf] }
 0x5eb   : > { %v2987_v37 = vmul.f32 %v2969_v31, %v8540_v63  ;;  %v7411_v31 = vld [vmem:[#allocation5 + $0x4d4] sm:$0xf0] }
 0x5ed   : > { %v3035_v25 = vadd.f32 %v3013_v19, %v2987_v37  ;;  %v6525_v19 = vld [vmem:[#allocation5 + $0x550] sm:$0xf] }
 0x5ef   : > { %5420 = vrot.lane.b32.xlu2 %v3035_v25, %s8263_s24  ;;  %v3042_v29 = vpack.c.bf16 %v3035_v25, %v3034_v48  ;;  %v7429_v48 = vld [vmem:[#allocation5 + $0x564] sm:$0xf0]  ;;  %v7427_v25 = vld [vmem:[#allocation5 + $0x554] sm:$0xf0] }
 0x5f0   : > { %v2971_v26 = vpop.f32.mrf.mxu0  ;;  %v6534_v37 = vor.u32 %v7429_v48, %v6533_v12  ;;  %v7406_v12 = vld [vmem:[#allocation5 + $0x4b4] sm:$0xf]  ;;  %v6447_v48 = vld [vmem:[#allocation5 + $0x4b8] sm:$0xf0] }
 0x5f1   : > { %v2972_v53 = vadd.f32 %v7717_v52, %v2971_v26  ;;  %6415 = vmatmul.msk.bf16.vlgmr.msra.gmra.mxu1 %vm611_vm1, %v3042_v29  ;;  %v6526_v29 = vor.u32 %v7427_v25, %v6525_v19  ;;  %v6453_v26 = vld [vmem:[#allocation5 + $0x4c0] sm:$0xf] }
 0x5f2   : > { %3475 = vmatpush.bf16.msrb.mxu3 %v6534_v37  ;;  %v6450_v37 = vor.u32 %v7406_v12, %v6447_v48  ;;  %v6581_v25 = vld [vmem:[#allocation5 + $0x5c0] sm:$0xf]  ;;  %v6599_v12 = vld [vmem:[#allocation5 + $0x5e8] sm:$0xf0]  ;;  %v7426_v48 = vld [vmem:[#allocation5 + $0x554] sm:$0xf] }
 0x5f3   : > { %v2988_v23 = vmul.f32 %v2972_v53, %v8542_v0  ;;  %v7409_v53 = vld [vmem:[#allocation5 + $0x4c4] sm:$0xf0] }
 0x5f5   : > { %v3036_v27 = vadd.f32 %v3015_v47, %v2988_v23  ;;  %v6517_v23 = vld [vmem:[#allocation5 + $0x540] sm:$0xf]  ;;  %v6454_v47 = vor.u32 %v7409_v53, %v6453_v26  ;;  %v6439_v53 = vld [vmem:[#allocation5 + $0x4a8] sm:$0xf0] }
 0x5f6   : > { %3476 = vmatpush.bf16.msrb.mxu3 %v6526_v29  ;;  %v7404_v29 = vld [vmem:[#allocation5 + $0x4a4] sm:$0xf] }
 0x5f7   : > { %5422 = vrot.lane.b32.xlu0 %v3036_v27, %s8263_s24 }
 0x5f8   : > { %v2973_v57 = vpop.f32.mrf.mxu0 }
 0x5f9   : > { %v2974_v40 = vadd.f32 %v7717_v52, %v2973_v57 }
 0x5fb   : > { %v2989_v2 = vmul.f32 %v2974_v40, %v8514_v34  ;;  %v6445_v40 = vld [vmem:[#allocation5 + $0x4b0] sm:$0xf] }
 0x5fd   : > { %v3037_v8 = vadd.f32 %v3017_v36, %v2989_v2  ;;  %v7407_v2 = vld [vmem:[#allocation5 + $0x4b4] sm:$0xf0]  ;;  %v7414_v36 = vld [vmem:[#allocation5 + $0x4f4] sm:$0xf] }
 0x5ff   : > { %5424 = vrot.lane.b32.xlu1 %v3037_v8, %s8263_s24  ;;  %v3043_v46 = vpack.c.bf16 %v3037_v8, %v3036_v27  ;;  %v7425_v27 = vld [vmem:[#allocation5 + $0x544] sm:$0xf0]  ;;  %v6446_v8 = vor.u32 %v7407_v2, %v6445_v40  ;;  %v6421_v40 = vld [vmem:[#allocation5 + $0x480] sm:$0xf] }
 0x600   : > { %v2976_v55 = vpop.f32.mrf.mxu0  ;;  %v6518_v57 = vor.u32 %v7425_v27, %v6517_v23  ;;  %v6485_v23 = vld [vmem:[#allocation5 + $0x500] sm:$0xf]  ;;  %v6442_v27 = vor.u32 %v7404_v29, %v6439_v53  ;;  %v7401_v2 = vld [vmem:[#allocation5 + $0x484] sm:$0xf0]  ;;  %v7442_v29 = vld [vmem:[#allocation5 + $0x5d4] sm:$0xf] }
 0x601   : > { %v2977_v10 = vadd.f32 %v7717_v52, %v2976_v55  ;;  %6416 = vmatmul.msk.bf16.gmra.mxu1 %vm611_vm1, %v3043_v46  ;;  %v6479_v46 = vld [vmem:[#allocation5 + $0x4f8] sm:$0xf0]  ;;  %v6509_v55 = vld [vmem:[#allocation5 + $0x530] sm:$0xf] }
 0x602   : > { %3477 = vmatpush.bf16.msrb.mxu3 %v6518_v57  ;;  %v6482_v13 = vor.u32 %v7414_v36, %v6479_v46  ;;  %v6422_v36 = vor.u32 %v7401_v2, %v6421_v40  ;;  %v7439_v46 = vld [vmem:[#allocation5 + $0x5b4] sm:$0xf0] }
 0x603   : > { %v2990_v39 = vmul.f32 %v2977_v10, %v8524_v50  ;;  %v7423_v10 = vld [vmem:[#allocation5 + $0x534] sm:$0xf0] }
 0x604   : > { %v6510_v45 = vor.u32 %v7423_v10, %v6509_v55  ;;  %3532 = vmatpush.bf16.msrb.mxu1 %v6482_v13  ;;  %v7402_v55 = vld [vmem:[#allocation5 + $0x494] sm:$0xf]  ;;  %v6431_v13 = vld [vmem:[#allocation5 + $0x498] sm:$0xf0] }
 0x605   : > { %v3038_v43 = vadd.f32 %v3019_v60, %v2990_v39  ;;  %v6437_v39 = vld [vmem:[#allocation5 + $0x4a0] sm:$0xf] }
 0x606   : > { %3478 = vmatpush.bf16.msrb.mxu3 %v6510_v45  ;;  %v6438_v60 = vor.u32 %v7405_v33, %v6437_v39  ;;  %v6434_v45 = vor.u32 %v7402_v55, %v6431_v13  ;;  %v6566_v39 = vor.u32 %v7437_v22, %v6565_v24  ;;  %v6423_v33 = vld [vmem:[#allocation5 + $0x488] sm:$0xf0]  ;;  %v7440_v55 = vld [vmem:[#allocation5 + $0x5c4] sm:$0xf]  ;;  %v6511_v24 = vld [vmem:[#allocation5 + $0x538] sm:$0xf0] }
 0x607   : > { %5426 = vrot.lane.b32.xlu2 %v3038_v43, %s8263_s24 }
 0x608   : > { %v2978_v20 = vpop.f32.mrf.mxu0  ;;  %3533 = vmatpush.bf16.msrb.mxu1 %v6474_v9  ;;  %v7400_v9 = vld [vmem:[#allocation5 + $0x484] sm:$0xf] }
 0x609   : > { %v2979_v4 = vadd.f32 %v7717_v52, %v2978_v20  ;;  %v7447_v20 = vld [vmem:[#allocation5 + $0x5f4] sm:$0xf0] }
 0x60b   : > { %v2991_v15 = vmul.f32 %v2979_v4, %v8516_v35  ;;  %v7410_v4 = vld [vmem:[#allocation5 + $0x4d4] sm:$0xf] }
 0x60d   : > { %v3039_v11 = vadd.f32 %v3021_v42, %v2991_v15  ;;  %v6463_v42 = vld [vmem:[#allocation5 + $0x4d8] sm:$0xf0] }
 0x60f   : > { %5428 = vrot.lane.b32.xlu0 %v3039_v11, %s8263_s24  ;;  %v3044_v58 = vpack.c.bf16 %v3039_v11, %v3038_v43  ;;  %v6605_v43 = vld [vmem:[#allocation5 + $0x5f0] sm:$0xf]  ;;  %v6466_v11 = vor.u32 %v7410_v4, %v6463_v42  ;;  %v7430_v4 = vld [vmem:[#allocation5 + $0x574] sm:$0xf] }
 0x610   : > { %v2981_v62 = vpop.f32.mrf.mxu0  ;;  %v6606_v15 = vor.u32 %v7447_v20, %v6605_v43  ;;  %v6557_v43 = vld [vmem:[#allocation5 + $0x590] sm:$0xf]  ;;  %v7435_v20 = vld [vmem:[#allocation5 + $0x594] sm:$0xf0] }
 0x611   : > { %v2982_v5 = vadd.f32 %v7717_v52, %v2981_v62  ;;  %6417 = vmatmul.msk.bf16.gmra.mxu1 %vm611_vm1, %v3044_v58  ;;  %v6501_v58 = vld [vmem:[#allocation5 + $0x520] sm:$0xf]  ;;  %v7421_v62 = vld [vmem:[#allocation5 + $0x524] sm:$0xf0]  ;;  %v6558_v42 = vor.u32 %v7435_v20, %v6557_v43 }
 0x612   : > { %3503 = vmatpush.bf16.msrb.mxu0 %v6606_v15  ;;  %3534 = vmatpush.bf16.msrb.mxu1 %v6466_v11  ;;  %v6543_v15 = vld [vmem:[#allocation5 + $0x578] sm:$0xf0] }
 0x613   : > { %v2992_v6 = vmul.f32 %v2982_v5, %v8526_v51  ;;  %v6597_v5 = vld [vmem:[#allocation5 + $0x5e0] sm:$0xf]  ;;  %v6546_v11 = vor.u32 %v7430_v4, %v6543_v15  ;;  %v7438_v15 = vld [vmem:[#allocation5 + $0x5b4] sm:$0xf] }
 0x615   : > { %v3040_v56 = vadd.f32 %v3023_v32, %v2992_v6  ;;  %v6502_v6 = vor.u32 %v7421_v62, %v6501_v58  ;;  %v7445_v32 = vld [vmem:[#allocation5 + $0x5e4] sm:$0xf0]  ;;  %v6549_v58 = vld [vmem:[#allocation5 + $0x580] sm:$0xf] }
 0x616   : > { %v7433_v62 = vld [vmem:[#allocation5 + $0x584] sm:$0xf0] }
 0x617   : > { %5430 = vrot.lane.b32.xlu1 %v3040_v56, %s8263_s24  ;;  %3479 = vmatpush.bf16.msrb.mxu3 %v6502_v6  ;;  %v8968_v6 = vld [vmem:[#allocation10 + $0x1] ss:$0 sm:$0xff] }
 0x618   : > { %v2983_v18 = vpop.f32.mrf.mxu0 }
 0x619   : > { %v2984_v16 = vadd.f32 %v7717_v52, %v2983_v18  ;;  %v6462_v52 = vor.u32 %v7411_v31, %v6461_v30  ;;  %v6455_v18 = vld [vmem:[#allocation5 + $0x4c8] sm:$0xf0]  ;;  %v6493_v30 = vld [vmem:[#allocation5 + $0x510] sm:$0xf]  ;;  %v7419_v31 = vld [vmem:[#allocation5 + $0x514] sm:$0xf0] }
 0x61a   : > { %v6494_v19 = vor.u32 %v7419_v31, %v6493_v30  ;;  %v6527_v30 = vld [vmem:[#allocation5 + $0x558] sm:$0xf0] }
 0x61b   : > { %v2993_v21 = vmul.f32 %v2984_v16, %v8504_v44  ;;  %3447 = vmatpush.bf16.msrb.mxu2 %v6462_v52  ;;  %v6598_v16 = vor.u32 %v7445_v32, %v6597_v5  ;;  %v7441_v52 = vld [vmem:[#allocation5 + $0x5c4] sm:$0xf0]  ;;  %v6550_v5 = vor.u32 %v7433_v62, %v6549_v58  ;;  %v7446_v32 = vld [vmem:[#allocation5 + $0x5f4] sm:$0xf]  ;;  %v7420_v58 = vld [vmem:[#allocation5 + $0x524] sm:$0xf] }
 0x61c   : > { %3480 = vmatpush.bf16.msrb.mxu3 %v6494_v19  ;;  %v6582_v26 = vor.u32 %v7441_v52, %v6581_v25  ;;  %v6503_v62 = vld [vmem:[#allocation5 + $0x528] sm:$0xf0] }
 0x61d   : > { %v3041_v41 = vadd.f32 %v3025_v54, %v2993_v21  ;;  %v6429_v54 = vld [vmem:[#allocation5 + $0x490] sm:$0xf]  ;;  %3504 = vmatpush.bf16.msrb.mxu0 %v6598_v16  ;;  %v7428_v16 = vld [vmem:[#allocation5 + $0x564] sm:$0xf] }
 0x61f   : > { %5432 = vrot.lane.b32.xlu2 %v3041_v41, %s8263_s24  ;;  %v3045_v59 = vpack.c.bf16 %v3041_v41, %v3040_v56  ;;  %3448 = vmatpush.bf16.msrb.mxu2 %v6454_v47  ;;  %v7408_v56 = vld [vmem:[#allocation5 + $0x4c4] sm:$0xf]  ;;  %v7403_v41 = vld [vmem:[#allocation5 + $0x494] sm:$0xf0]  ;;  %v7417_v47 = vld [vmem:[#allocation5 + $0x504] sm:$0xf0] }
 0x620   : > { %v6458_v21 = vor.u32 %v7408_v56, %v6455_v18  ;;  %v6486_v57 = vor.u32 %v7417_v47, %v6485_v23  ;;  %v6607_v56 = vld [vmem:[#allocation5 + $0x5f8] sm:$0xf0]  ;;  %v7424_v23 = vld [vmem:[#allocation5 + $0x544] sm:$0xf]  ;;  %v6519_v47 = vld [vmem:[#allocation5 + $0x548] sm:$0xf0] }
 0x621   : > { %6418 = vmatmul.msk.bf16.gmra.mxu1 %vm611_vm1, %v3045_v59  ;;  %v6430_v59 = vor.u32 %v7403_v41, %v6429_v54  ;;  %3505 = vmatpush.bf16.msrb.mxu0 %v6590_v61  ;;  %v6610_v18 = vor.u32 %v7446_v32, %v6607_v56  ;;  %v6602_v61 = vor.u32 %v7444_v49, %v6599_v12  ;;  %v7434_v12 = vld [vmem:[#allocation5 + $0x594] sm:$0xf] }
 0x622   : > { %3535 = vmatpush.bf16.msrb.mxu1 %v6458_v21  ;;  %3481 = vmatpush.bf16.msrb.mxu3 %v6486_v57  ;;  %v6535_v21 = vld [vmem:[#allocation5 + $0x568] sm:$0xf0]  ;;  %v6522_v57 = vor.u32 %v7424_v23, %v6519_v47  ;;  %v6506_v56 = vor.u32 %v7420_v58, %v6503_v62 }
 0x623   : > { %3449 = vmatpush.bf16.msrb.mxu2 %v6446_v8  ;;  %v6573_v8 = vld [vmem:[#allocation5 + $0x5b0] sm:$0xf]  ;;  %v6538_v41 = vor.u32 %v7428_v16, %v6535_v21 }
 0x624   : > { %v6574_v10 = vor.u32 %v7439_v46, %v6573_v8 }
 0x625   : > { %3506 = vmatpush.bf16.msrb.mxu0 %v6582_v26  ;;  %v6591_v26 = vld [vmem:[#allocation5 + $0x5d8] sm:$0xf0] }
 0x626   : > { %3536 = vmatpush.bf16.msrb.mxu1 %v6450_v37  ;;  %3590 = vmatpush.bf16.msra.mxu3 %v6610_v18  ;;  %v6530_v37 = vor.u32 %v7426_v48, %v6527_v30  ;;  %v6594_v53 = vor.u32 %v7442_v29, %v6591_v26  ;;  %v6567_v18 = vld [vmem:[#allocation5 + $0x5a8] sm:$0xf0]  ;;  %v7418_v48 = vld [vmem:[#allocation5 + $0x514] sm:$0xf]  ;;  %v6495_v30 = vld [vmem:[#allocation5 + $0x518] sm:$0xf0] }
 0x627   : > { %3450 = vmatpush.bf16.msrb.mxu2 %v6438_v60  ;;  %v6426_v60 = vor.u32 %v7400_v9, %v6423_v33  ;;  %v7432_v29 = vld [vmem:[#allocation5 + $0x584] sm:$0xf]  ;;  %v6551_v26 = vld [vmem:[#allocation5 + $0x588] sm:$0xf0] }
 0x628   : > { %v6554_v23 = vor.u32 %v7432_v29, %v6551_v26 }
 0x629   : > { %3507 = vmatpush.bf16.msrb.mxu0 %v6574_v10  ;;  %v6583_v10 = vld [vmem:[#allocation5 + $0x5c8] sm:$0xf0] }
 0x62a   : > { %3537 = vmatpush.bf16.msrb.mxu1 %v6442_v27  ;;  %3591 = vmatpush.bf16.msra.mxu3 %v6602_v61  ;;  %v6586_v13 = vor.u32 %v7440_v55, %v6583_v10  ;;  %v6559_v61 = vld [vmem:[#allocation5 + $0x598] sm:$0xf0] }
 0x62b   : > { %3451 = vmatpush.bf16.msrb.mxu2 %v6430_v59 }
 0x62d   : > { %3508 = vmatpush.bf16.msrb.mxu0 %v6566_v39 }
 0x62e   : > { %3538 = vmatpush.bf16.msrb.mxu1 %v6434_v45  ;;  %3592 = vmatpush.bf16.msra.mxu3 %v6594_v53  ;;  %v7422_v45 = vld [vmem:[#allocation5 + $0x534] sm:$0xf] }
 0x62f   : > { %3452 = vmatpush.bf16.msrb.mxu2 %v6422_v36  ;;  %v6514_v9 = vor.u32 %v7422_v45, %v6511_v24 }
 0x631   : > { %3509 = vmatpush.bf16.msrb.mxu0 %v6558_v42  ;;  %v6575_v42 = vld [vmem:[#allocation5 + $0x5b8] sm:$0xf0] }
 0x632   : > { %3539 = vmatpush.bf16.msrb.mxu1 %v6426_v60  ;;  %3593 = vmatpush.bf16.msra.mxu3 %v6586_v13 }
 0x633   : > { %3561 = vmatpush.bf16.msra.mxu2 %v6546_v11  ;;  %v6578_v11 = vor.u32 %v7438_v15, %v6575_v42 }
 0x635   : > { %3510 = vmatpush.bf16.msrb.mxu0 %v6550_v5  ;;  %v7436_v5 = vld [vmem:[#allocation5 + $0x5a4] sm:$0xf] }
 0x636   : > { %3594 = vmatpush.bf16.msra.mxu3 %v6578_v11  ;;  %v6570_v21 = vor.u32 %v7436_v5, %v6567_v18  ;;  %v9006_v18 = vld [vmem:[#allocation11 + $0x6] sm:$0x3] }
 0x637   : > { %3562 = vmatpush.bf16.msra.mxu2 %v6538_v41 }
 0x63a   : > { %3595 = vmatpush.bf16.msra.mxu3 %v6570_v21  ;;  %v6669_v21 = vld [vmem:[#allocation7 + $0x170] sm:$0xf] }
 0x63b   : > { %3563 = vmatpush.bf16.msra.mxu2 %v6530_v37 }
 0x63f   : > { %3564 = vmatpush.bf16.msra.mxu2 %v6522_v57 }
 0x643   : > { %3565 = vmatpush.bf16.msra.mxu2 %v6514_v9 }
 0x647   : > { %3566 = vmatpush.bf16.msra.mxu2 %v6506_v56 }
 0x66e   : > { %v3077_v54 = vpop.f32.mrf.mxu1 }
 0x66f   : > { %v3078_v59 = vadd.f32 %v8968_v6, %v3077_v54 }
 0x671   : > { %v8972_v17 = vmul.f32 %v3078_v59, %v8506_v7 }
 0x673   : > { %3105 = vst [vmem:[#allocation2 + $0x8] sm:$0xff] %v8972_v17 }
 0x676   : > { %v3079_v31 = vpop.f32.mrf.mxu1 }
 0x677   : > { %v3080_v19 = vadd.f32 %v8968_v6, %v3079_v31  ;;  %v6562_v31 = vor.u32 %v7434_v12, %v6559_v61  ;;  %v7461_v12 = vld [vmem:[#allocation7 + $0x164] sm:$0xf0] }
 0x679   : > { %v3098_v25 = vmul.f32 %v3080_v19, %v8540_v63  ;;  %v6498_v19 = vor.u32 %v7418_v48, %v6495_v30  ;;  %3596 = vmatpush.bf16.msra.mxu3 %v6562_v31  ;;  %v6653_v31 = vld [vmem:[#allocation7 + $0x150] sm:$0xf] }
 0x67a   : > { %v3113_v36 = vld [vmem:[#allocation2 + $0x7] sm:$0xff] }
 0x67b   : > { %3106 = vst [vmem:[#allocation2 + $0x10] sm:$0xff] %v3098_v25  ;;  %v8978_v52 = vpack.c.bf16 %v3098_v25, %v8972_v17  ;;  %3567 = vmatpush.bf16.msra.mxu2 %v6498_v19 }
 0x67d   : > { %3482 = vmatmul.bf16.vlgmr.msrb.gmra.mxu3 %v8978_v52 }
 0x67e   : > { %v3082_v27 = vpop.f32.mrf.mxu1  ;;  %3597 = vmatpush.bf16.msra.mxu3 %v6554_v23  ;;  %v6645_v23 = vld [vmem:[#allocation7 + $0x140] sm:$0xf] }
 0x67f   : > { %v3083_v40 = vadd.f32 %v8968_v6, %v3082_v27 }
 0x681   : > { %v8983_v2 = vmul.f32 %v3083_v40, %v8542_v0 }
 0x682   : > { %v3114_v8 = vld [vmem:[#allocation2 + $0xf] sm:$0xff] }
 0x683   : > { %3107 = vst [vmem:[#allocation2 + $0x18] sm:$0xff] %v8983_v2  ;;  %v3137_v46 = vpack.c.bf16 %v3114_v8, %v3113_v36  ;;  %v3129_v60 = vld [vmem:[#allocation2 + $0x9] sm:$0xff]  ;;  %v7416_v36 = vld [vmem:[#allocation5 + $0x504] sm:$0xf]  ;;  %v6487_v8 = vld [vmem:[#allocation5 + $0x508] sm:$0xf0] }
 0x684   : > { %v6490_v55 = vor.u32 %v7416_v36, %v6487_v8  ;;  %v7462_v36 = vld [vmem:[#allocation7 + $0x174] sm:$0xf]  ;;  %v6671_v8 = vld [vmem:[#allocation7 + $0x178] sm:$0xf0] }
 0x685   : > { %3453 = vmatmul.bf16.vlgmr.msrb.gmra.mxu2 %v3137_v46  ;;  %3540 = vmatmul.bf16.vlgmr.msrb.gmra.mxu1 %v3137_v46 }
 0x686   : > { %v3084_v22 = vpop.f32.mrf.mxu1  ;;  %3568 = vmatpush.bf16.msra.mxu2 %v6490_v55  ;;  %v6637_v55 = vld [vmem:[#allocation7 + $0x130] sm:$0xf] }
 0x687   : > { %v3085_v39 = vadd.f32 %v8968_v6, %v3084_v22 }
 0x689   : > { %v3100_v33 = vmul.f32 %v3085_v39, %v8514_v34 }
 0x68a   : > { %v3130_v43 = vld [vmem:[#allocation2 + $0x11] sm:$0xff] }
 0x68b   : > { %3108 = vst [vmem:[#allocation2 + $0x20] sm:$0xff] %v3100_v33  ;;  %v8988_v20 = vpack.c.bf16 %v3130_v43, %v3129_v60  ;;  %v8991_v4 = vpack.c.bf16 %v3100_v33, %v8983_v2  ;;  %v3115_v41 = vld [vmem:[#allocation2 + $0x17] sm:$0xff] }
 0x68d   : > { %3511 = vmatmul.bf16.vlgmr.msrb.gmra.mxu0 %v8988_v20  ;;  %3487 = vmatmul.bf16.gmra.mxu3 %v8991_v4 }
 0x68e   : > { %v3087_v32 = vpop.f32.mrf.mxu1 }
 0x68f   : > { %v3088_v16 = vadd.f32 %v8968_v6, %v3087_v32 }
 0x691   : > { %v3101_v54 = vmul.f32 %v3088_v16, %v8524_v50  ;;  %v9009_v16 = vperm.slane %v9006_v18, 0 }
 0x692   : > { %v3116_v59 = vld [vmem:[#allocation2 + $0x1f] sm:$0xff] }
 0x693   : > { %3109 = vst [vmem:[#allocation2 + $0x28] sm:$0xff] %v3101_v54  ;;  %v3140_v49 = vpack.c.bf16 %v3116_v59, %v3115_v41  ;;  %v3131_v47 = vld [vmem:[#allocation2 + $0x19] sm:$0xff] }
 0x695   : > { %3458 = vmatmul.bf16.gmra.mxu2 %v3140_v49  ;;  %3545 = vmatmul.bf16.gmra.mxu1 %v3140_v49  ;;  %v6661_v49 = vld [vmem:[#allocation7 + $0x160] sm:$0xf] }
 0x696   : > { %v3089_v37 = vpop.f32.mrf.mxu1  ;;  %v6662_v30 = vor.u32 %v7461_v12, %v6661_v49  ;;  %v6629_v49 = vld [vmem:[#allocation7 + $0x120] sm:$0xf]  ;;  %v7453_v12 = vld [vmem:[#allocation7 + $0x124] sm:$0xf0] }
 0x697   : > { %v3090_v25 = vadd.f32 %v8968_v6, %v3089_v37  ;;  %v7459_v37 = vld [vmem:[#allocation7 + $0x154] sm:$0xf0] }
 0x698   : > { %v6654_v29 = vor.u32 %v7459_v37, %v6653_v31  ;;  %v6631_v31 = vld [vmem:[#allocation7 + $0x128] sm:$0xf0] }
 0x699   : > { %v3102_v53 = vmul.f32 %v3090_v25, %v8516_v35 }
 0x69a   : > { %v3132_v27 = vld [vmem:[#allocation2 + $0x21] sm:$0xff] }
 0x69b   : > { %3110 = vst [vmem:[#allocation2 + $0x30] sm:$0xff] %v3102_v53  ;;  %v3142_v57 = vpack.c.bf16 %v3132_v27, %v3131_v47  ;;  %v3144_v40 = vpack.c.bf16 %v3102_v53, %v3101_v54  ;;  %v3117_v45 = vld [vmem:[#allocation2 + $0x27] sm:$0xff]  ;;  %v7457_v47 = vld [vmem:[#allocation7 + $0x144] sm:$0xf0] }
 0x69c   : > { %v7463_v54 = vld [vmem:[#allocation7 + $0x174] sm:$0xf0] }
 0x69d   : > { %3516 = vmatmul.bf16.gmra.mxu0 %v3142_v57  ;;  %3492 = vmatmul.bf16.gmra.mxu3 %v3144_v40 }
 0x69e   : > { %v3092_v46 = vpop.f32.mrf.mxu1 }
 0x69f   : > { %v3093_v10 = vadd.f32 %v8968_v6, %v3092_v46  ;;  %v6674_v46 = vor.u32 %v7462_v36, %v6671_v8 }
 0x6a1   : > { %v3103_v13 = vmul.f32 %v3093_v10, %v8526_v51  ;;  %v7455_v10 = vld [vmem:[#allocation7 + $0x134] sm:$0xf0]  ;;  %3804 = vmatpush.bf16.msra.mxu1 %v6674_v46 }
 0x6a2   : > { %v3118_v24 = vld [vmem:[#allocation2 + $0x2f] sm:$0xff] }
 0x6a3   : > { %3111 = vst [vmem:[#allocation2 + $0x38] sm:$0xff] %v3103_v13  ;;  %v3143_v22 = vpack.c.bf16 %v3118_v24, %v3117_v45  ;;  %v3133_v60 = vld [vmem:[#allocation2 + $0x29] sm:$0xff]  ;;  %v6638_v24 = vor.u32 %v7455_v10, %v6637_v55  ;;  %v6613_v10 = vld [vmem:[#allocation7 + $0x100] sm:$0xf] }
 0x6a5   : > { %3463 = vmatmul.bf16.gmra.mxu2 %v3143_v22  ;;  %3550 = vmatmul.bf16.gmra.mxu1 %v3143_v22 }
 0x6a6   : > { %v3094_v9 = vpop.f32.mrf.mxu1 }
 0x6a7   : > { %v3095_v39 = vadd.f32 %v8968_v6, %v3094_v9  ;;  %v7460_v9 = vld [vmem:[#allocation7 + $0x164] sm:$0xf] }
 0x6a9   : > { %v3104_v33 = vmul.f32 %v3095_v39, %v8504_v44  ;;  %v6663_v39 = vld [vmem:[#allocation7 + $0x168] sm:$0xf0] }
 0x6aa   : > { %v3134_v43 = vld [vmem:[#allocation2 + $0x31] sm:$0xff] }
 0x6ab   : > { %3112 = vst [vmem:[#allocation2 + $0x40] sm:$0xff] %v3104_v33  ;;  %v3145_v15 = vpack.c.bf16 %v3134_v43, %v3133_v60  ;;  %v3147_v42 = vpack.c.bf16 %v3104_v33, %v3103_v13  ;;  %v3119_v11 = vld [vmem:[#allocation2 + $0x37] sm:$0xff]  ;;  %v6666_v33 = vor.u32 %v7460_v9, %v6663_v39  ;;  %v7458_v43 = vld [vmem:[#allocation7 + $0x154] sm:$0xf]  ;;  %v6615_v9 = vld [vmem:[#allocation7 + $0x108] sm:$0xf0] }
 0x6ac   : > { %v9040_v39 = vperm.slane %v9006_v18, 1 }
 0x6ad   : > { %3521 = vmatmul.bf16.gmra.mxu0 %v3145_v15  ;;  %3497 = vmatmul.bf16.gmra.mxu3 %v3147_v42 }
 0x6ae   : > { %3805 = vmatpush.bf16.msra.mxu1 %v6666_v33 }
 0x6b2   : > { %v3120_v58 = vld [vmem:[#allocation2 + $0x3f] sm:$0xff] }
 0x6b3   : > { %v3146_v62 = vpack.c.bf16 %v3120_v58, %v3119_v11  ;;  %v3135_v5 = vld [vmem:[#allocation2 + $0x39] sm:$0xff]  ;;  %v3136_v32 = vld [vmem:[#allocation2 + $0x41] sm:$0xff] }
 0x6b4   : > { %v3148_v56 = vpack.c.bf16 %v3136_v32, %v3135_v5  ;;  %v6647_v5 = vld [vmem:[#allocation7 + $0x148] sm:$0xf0] }
 0x6b5   : > { %3468 = vmatmul.bf16.gmra.mxu2 %v3146_v62  ;;  %3555 = vmatmul.bf16.gmra.mxu1 %v3146_v62  ;;  %v7456_v62 = vld [vmem:[#allocation7 + $0x144] sm:$0xf] }
 0x6b6   : > { %v6650_v32 = vor.u32 %v7456_v62, %v6647_v5 }
 0x6bd   : > { %3526 = vmatmul.bf16.gmra.mxu0 %v3148_v56  ;;  %3598 = vmatmul.bf16.vlgmr.msra.gmra.mxu3 %v8988_v20  ;;  %v6670_v20 = vor.u32 %v7463_v54, %v6669_v21  ;;  %v6639_v21 = vld [vmem:[#allocation7 + $0x138] sm:$0xf0] }
 0x6bf   : > { %3775 = vmatpush.bf16.msra.mxu0 %v6670_v20 }
 0x6c3   : > { %3776 = vmatpush.bf16.msra.mxu0 %v6662_v30  ;;  %v6630_v30 = vor.u32 %v7453_v12, %v6629_v49 }
 0x6c5   : > { %3569 = vmatmul.bf16.vlgmr.msra.gmra.mxu2 %v8978_v52 }
 0x6c7   : > { %3777 = vmatpush.bf16.msra.mxu0 %v6654_v29  ;;  %v6621_v29 = vld [vmem:[#allocation7 + $0x110] sm:$0xf] }
 0x6cd   : > { %3603 = vmatmul.bf16.gmra.mxu3 %v3142_v57 }
 0x6d5   : > { %3574 = vmatmul.bf16.gmra.mxu2 %v8991_v4 }
 0x6dd   : > { %3608 = vmatmul.bf16.gmra.mxu3 %v3145_v15  ;;  %v6655_v15 = vld [vmem:[#allocation7 + $0x158] sm:$0xf0] }
 0x6e5   : > { %3579 = vmatmul.bf16.gmra.mxu2 %v3144_v40  ;;  %v6646_v40 = vor.u32 %v7457_v47, %v6645_v23  ;;  %v7450_v23 = vld [vmem:[#allocation7 + $0x114] sm:$0xf] }
 0x6e7   : > { %3778 = vmatpush.bf16.msra.mxu0 %v6646_v40 }
 0x6eb   : > { %3779 = vmatpush.bf16.msra.mxu0 %v6638_v24  ;;  %v7448_v24 = vld [vmem:[#allocation7 + $0x104] sm:$0xf] }
 0x6ec   : > { %v6618_v33 = vor.u32 %v7448_v24, %v6615_v9 }
 0x6ed   : > { %3613 = vmatmul.bf16.gmra.mxu3 %v3148_v56 }
 0x6ef   : > { %3780 = vmatpush.bf16.msra.mxu0 %v6630_v30 }
 0x6f5   : > { %3584 = vmatmul.bf16.gmra.mxu2 %v3147_v42  ;;  %v6658_v42 = vor.u32 %v7458_v43, %v6655_v15 }
 0x6f7   : > { %3806 = vmatpush.bf16.msra.mxu1 %v6658_v42 }
 0x6fb   : > { %3807 = vmatpush.bf16.msra.mxu1 %v6650_v32 }
 0x700   : > { %v3483_v6 = vpop.f32.mrf.mxu3 }
 0x702   : > { %v3541_v56 = vpop.f32.mrf.mxu1 }
 0x703   : > { %v3542_v43 = vadd.f32 %v3541_v56, %v9040_v39 }
 0x708   : > { %v3454_v41 = vpop.f32.mrf.mxu2  ;;  %v9011_v59 = vpop.f32.mrf.mxu3 }
 0x709   : > { %v3455_v52 = vadd.f32 %v3454_v41, %v9009_v16 }
 0x70a   : > { %v3512_v40 = vpop.f32.mrf.mxu0  ;;  %v3543_v36 = vpop.f32.mrf.mxu1 }
 0x70b   : > { %v9014_v4 = vadd.f32 %v3483_v6, %v3455_v52  ;;  %v7454_v6 = vld [vmem:[#allocation7 + $0x134] sm:$0xf] }
 0x70c   : > { %v6642_v54 = vor.u32 %v7454_v6, %v6639_v21  ;;  %v3544_v21 = vadd.f32 %v3543_v36, %v9040_v39 }
 0x70e   : > { %3808 = vmatpush.bf16.msra.mxu1 %v6642_v54 }
 0x710   : > { %v9016_v61 = vpop.f32.mrf.mxu2  ;;  %v3488_v48 = vpop.f32.mrf.mxu3 }
 0x711   : > { %v3457_v54 = vadd.f32 %v9016_v61, %v9009_v16 }
 0x712   : > { %v3546_v5 = vpop.f32.mrf.mxu1 }
 0x713   : > { %v3486_v49 = vadd.f32 %v9011_v59, %v3457_v54 }
 0x718   : > { %v3459_v19 = vpop.f32.mrf.mxu2  ;;  %v9018_v25 = vpop.f32.mrf.mxu3 }
 0x719   : > { %v3460_v26 = vadd.f32 %v3459_v19, %v9009_v16 }
 0x71b   : > { %v9021_v53 = vadd.f32 %v3488_v48, %v3460_v26  ;;  %v7452_v48 = vld [vmem:[#allocation7 + $0x124] sm:$0xf]  ;;  %v7451_v26 = vld [vmem:[#allocation7 + $0x114] sm:$0xf0] }
 0x71c   : > { %v6634_v19 = vor.u32 %v7452_v48, %v6631_v31  ;;  %v6622_v47 = vor.u32 %v7451_v26, %v6621_v29  ;;  %v3548_v48 = vpop.f32.mrf.mxu1  ;;  %v3513_v31 = vadd.f32 %v3512_v40, %v9014_v4  ;;  %v3547_v26 = vadd.f32 %v3546_v5, %v9040_v39 }
 0x71d   : > { %v3549_v4 = vadd.f32 %v3548_v48, %v9040_v39 }
 0x71e   : > { %3809 = vmatpush.bf16.msra.mxu1 %v6634_v19  ;;  %3781 = vmatpush.bf16.msra.mxu0 %v6622_v47 }
 0x720   : > { %v9023_v27 = vpop.f32.mrf.mxu2  ;;  %v3493_v57 = vpop.f32.mrf.mxu3 }
 0x721   : > { %v3462_v40 = vadd.f32 %v9023_v27, %v9009_v16 }
 0x728   : > { %v3464_v13 = vpop.f32.mrf.mxu2  ;;  %v9025_v45 = vpop.f32.mrf.mxu3 }
 0x729   : > { %v3465_v22 = vadd.f32 %v3464_v13, %v9009_v16  ;;  %v7449_v13 = vld [vmem:[#allocation7 + $0x104] sm:$0xf0] }
 0x72b   : > { %v9028_v60 = vadd.f32 %v3493_v57, %v3465_v22  ;;  %v6623_v57 = vld [vmem:[#allocation7 + $0x118] sm:$0xf0]  ;;  %v6614_v22 = vor.u32 %v7449_v13, %v6613_v10  ;;  %v3551_v10 = vpop.f32.mrf.mxu1 }
 0x72c   : > { %v6626_v8 = vor.u32 %v7450_v23, %v6623_v57 }
 0x72d   : > { %3782 = vmatpush.bf16.msra.mxu0 %v6614_v22 }
 0x72e   : > { %3810 = vmatpush.bf16.msra.mxu1 %v6626_v8 }
 0x730   : > { %v9030_v11 = vpop.f32.mrf.mxu2  ;;  %v3498_v58 = vpop.f32.mrf.mxu3 }
 0x732   : > { %3811 = vmatpush.bf16.msra.mxu1 %v6618_v33 }
 0x738   : > { %v3469_v41 = vpop.f32.mrf.mxu2  ;;  %v9032_v20 = vpop.f32.mrf.mxu3 }
 0x739   : > { %v3470_v52 = vadd.f32 %v3469_v41, %v9009_v16 }
 0x73b   : > { %v9035_v37 = vadd.f32 %v3498_v58, %v3470_v52  ;;  %v3514_v58 = vpop.f32.mrf.mxu0 }
 0x73c   : > { %v3515_v29 = vadd.f32 %v3514_v58, %v3486_v49  ;;  %v3553_v49 = vpop.f32.mrf.mxu1 }
 0x740   : > { %v9037_v46 = vpop.f32.mrf.mxu2  ;;  %v3599_v55 = vpop.f32.mrf.mxu3 }
 0x743   : > { %v3517_v12 = vpop.f32.mrf.mxu0 }
 0x744   : > { %v3518_v54 = vadd.f32 %v3517_v12, %v9021_v53  ;;  %v3554_v12 = vadd.f32 %v3553_v49, %v9040_v39 }
 0x748   : > { %v3570_v15 = vpop.f32.mrf.mxu2  ;;  %v3601_v42 = vpop.f32.mrf.mxu3 }
 0x749   : > { %v3571_v62 = vadd.f32 %v3570_v15, %v3542_v43 }
 0x74b   : > { %v3600_v32 = vadd.f32 %v3599_v55, %v3571_v62  ;;  %v3519_v59 = vpop.f32.mrf.mxu0  ;;  %v3491_v62 = vadd.f32 %v9018_v25, %v3462_v40 }
 0x74d   : > { %v3627_v6 = vmul.f32 0.5, %v3600_v32  ;;  %v3520_v27 = vadd.f32 %v3519_v59, %v3491_v62  ;;  %v6797_v62 = vld [vmem:[#allocation5 + $0x6f0] sm:$0xf] }
 0x74f   : > { %7817 = vtanh.f32 %v3627_v6 }
 0x750   : > { %v3572_v41 = vpop.f32.mrf.mxu2  ;;  %v3604_v18 = vpop.f32.mrf.mxu3 }
 0x751   : > { %v3573_v52 = vadd.f32 %v3572_v41, %v3544_v21 }
 0x753   : > { %v3602_v56 = vadd.f32 %v3601_v42, %v3573_v52  ;;  %v3522_v52 = vpop.f32.mrf.mxu0 }
 0x755   : > { %v3628_v30 = vmul.f32 0.5, %v3602_v56  ;;  %v7818_v19 = vpop.eup %7817 }
 0x756   : > { %v3643_v61 = vmul.f32 0.5, %v7818_v19 }
 0x757   : > { %7819 = vtanh.f32 %v3628_v30 }
 0x758   : > { %v3575_v23 = vpop.f32.mrf.mxu2  ;;  %7821 = vtanh.f32 %v3513_v31  ;;  %v3606_v57 = vpop.f32.mrf.mxu3  ;;  %v3651_v13 = vadd.f32 0.5, %v3643_v61 }
 0x759   : > { %v3576_v47 = vadd.f32 %v3575_v23, %v3547_v26  ;;  %7823 = vtanh.f32 %v3515_v29  ;;  %v3467_v23 = vadd.f32 %v9030_v11, %v9009_v16  ;;  %v6733_v11 = vld [vmem:[#allocation5 + $0x670] sm:$0xf] }
 0x75b   : > { %v3605_v36 = vadd.f32 %v3604_v18, %v3576_v47  ;;  %v3552_v18 = vadd.f32 %v3551_v10, %v9040_v39  ;;  %v3524_v59 = vpop.f32.mrf.mxu0 }
 0x75d   : > { %v7820_v8 = vpop.eup %7819  ;;  %v3629_v55 = vmul.f32 0.5, %v3605_v36 }
 0x75e   : > { %v3644_v24 = vmul.f32 0.5, %v7820_v8  ;;  %v7822_v22 = vpop.eup %7821 }
 0x75f   : > { %v7824_v43 = vpop.eup %7823  ;;  %7825 = vtanh.f32 %v3629_v55  ;;  %v3659_v42 = vmul.f32 %v7822_v22, %v3651_v13  ;;  %v3556_v55 = vpop.f32.mrf.mxu1 }
 0x760   : > { %v3652_v9 = vadd.f32 0.5, %v3644_v24  ;;  %v3577_v33 = vpop.f32.mrf.mxu2  ;;  %v3609_v6 = vpop.f32.mrf.mxu3  ;;  %v3496_v24 = vadd.f32 %v9025_v45, %v3467_v23 }
 0x761   : > { %v3578_v15 = vadd.f32 %v3577_v33, %v3549_v4  ;;  %v7479_v33 = vld [vmem:[#allocation5 + $0x674] sm:$0xf0] }
 0x762   : > { %v3660_v58 = vmul.f32 %v7824_v43, %v3652_v9  ;;  %v3523_v9 = vadd.f32 %v3522_v52, %v9028_v60 }
 0x763   : > { %v3607_v5 = vadd.f32 %v3606_v57, %v3578_v15  ;;  %v3525_v15 = vadd.f32 %v3524_v59, %v3496_v24  ;;  %v7473_v59 = vld [vmem:[#allocation5 + $0x644] sm:$0xf0]  ;;  %v3472_v24 = vadd.f32 %v9037_v46, %v9009_v16 }
 0x764   : > { %v3667_v32 = vpack.c.bf16 %v3660_v58, %v3659_v42  ;;  %v3557_v42 = vadd.f32 %v3556_v55, %v9040_v39  ;;  %v6734_v58 = vor.u32 %v7479_v33, %v6733_v11  ;;  %v6773_v11 = vld [vmem:[#allocation5 + $0x6c0] sm:$0xf]  ;;  %v7489_v33 = vld [vmem:[#allocation5 + $0x6c4] sm:$0xf0] }
 0x765   : > { %v3630_v21 = vmul.f32 0.5, %v3607_v5  ;;  %v7826_v41 = vpop.eup %7825  ;;  %v7495_v5 = vld [vmem:[#allocation5 + $0x6f4] sm:$0xf0]  ;;  %v3501_v16 = vadd.f32 %v9032_v20, %v3472_v24  ;;  %v7509_v24 = vld [vmem:[#allocation5 + $0x764] sm:$0xf0] }
 0x766   : > { %3783 = vmatmul.bf16.vlgmr.msra.gmra.mxu0 %v3667_v32  ;;  %3812 = vmatmul.bf16.vlgmr.msra.gmra.mxu1 %v3667_v32  ;;  %v3645_v30 = vmul.f32 0.5, %v7826_v41  ;;  %v6725_v32 = vld [vmem:[#allocation5 + $0x660] sm:$0xf] }
 0x767   : > { %7827 = vtanh.f32 %v3630_v21  ;;  %v6798_v21 = vor.u32 %v7495_v5, %v6797_v62  ;;  %v6789_v41 = vld [vmem:[#allocation5 + $0x6e0] sm:$0xf]  ;;  %4197 = vmatpush.bf16.msrb.mxu2 %v6734_v58 }
 0x768   : > { %v3580_v56 = vpop.f32.mrf.mxu2  ;;  %7829 = vtanh.f32 %v3518_v54  ;;  %v3653_v29 = vadd.f32 0.5, %v3645_v30  ;;  %v3611_v53 = vpop.f32.mrf.mxu3  ;;  %v7477_v54 = vld [vmem:[#allocation5 + $0x664] sm:$0xf0] }
 0x769   : > { %v3581_v48 = vadd.f32 %v3580_v56, %v3552_v18  ;;  %7831 = vtanh.f32 %v3520_v27  ;;  %v6726_v60 = vor.u32 %v7477_v54, %v6725_v32  ;;  %v7493_v18 = vld [vmem:[#allocation5 + $0x6e4] sm:$0xf0]  ;;  %4226 = vmatpush.bf16.msrb.mxu3 %v6798_v21  ;;  %v6717_v56 = vld [vmem:[#allocation5 + $0x650] sm:$0xf] }
 0x76a   : > { %v6790_v49 = vor.u32 %v7493_v18, %v6789_v41  ;;  %v6765_v54 = vld [vmem:[#allocation5 + $0x6b0] sm:$0xf]  ;;  %v7487_v41 = vld [vmem:[#allocation5 + $0x6b4] sm:$0xf0] }
 0x76b   : > { %v3610_v25 = vadd.f32 %v3609_v6, %v3581_v48  ;;  %v7475_v48 = vld [vmem:[#allocation5 + $0x654] sm:$0xf0]  ;;  %4198 = vmatpush.bf16.msrb.mxu2 %v6726_v60 }
 0x76c   : > { %v6718_v23 = vor.u32 %v7475_v48, %v6717_v56  ;;  %v6766_v48 = vor.u32 %v7487_v41, %v6765_v54  ;;  %v6695_v41 = vld [vmem:[#allocation5 + $0x628] sm:$0xf0] }
 0x76d   : > { %v7828_v31 = vpop.eup %7827  ;;  %v3631_v19 = vmul.f32 0.5, %v3610_v25  ;;  %v6781_v25 = vld [vmem:[#allocation5 + $0x6d0] sm:$0xf]  ;;  %4227 = vmatpush.bf16.msrb.mxu3 %v6790_v49 }
 0x76e   : > { %v3646_v26 = vmul.f32 0.5, %v7828_v31  ;;  %v7830_v47 = vpop.eup %7829  ;;  %v7491_v31 = vld [vmem:[#allocation5 + $0x6d4] sm:$0xf0] }
 0x76f   : > { %v7832_v36 = vpop.eup %7831  ;;  %7833 = vtanh.f32 %v3631_v19  ;;  %v3661_v10 = vmul.f32 %v7830_v47, %v3653_v29  ;;  %v3527_v19 = vpop.f32.mrf.mxu0  ;;  %v6709_v47 = vld [vmem:[#allocation5 + $0x640] sm:$0xf]  ;;  %4199 = vmatpush.bf16.msrb.mxu2 %v6718_v23  ;;  %v6861_v23 = vld [vmem:[#allocation5 + $0x770] sm:$0xf] }
 0x770   : > { %v3654_v61 = vadd.f32 0.5, %v3646_v26  ;;  %v3582_v57 = vpop.f32.mrf.mxu2  ;;  %v3614_v45 = vpop.f32.mrf.mxu3  ;;  %v7478_v26 = vld [vmem:[#allocation5 + $0x674] sm:$0xf]  ;;  %v6710_v58 = vor.u32 %v7473_v59, %v6709_v47  ;;  %v3528_v18 = vadd.f32 %v3527_v19, %v9035_v37  ;;  %v7511_v47 = vld [vmem:[#allocation5 + $0x774] sm:$0xf0] }
 0x771   : > { %v3583_v8 = vadd.f32 %v3582_v57, %v3554_v12  ;;  %v3558_v29 = vpop.f32.mrf.mxu1  ;;  %v6757_v59 = vld [vmem:[#allocation5 + $0x6a0] sm:$0xf] }
 0x772   : > { %v3662_v13 = vmul.f32 %v7832_v36, %v3654_v61  ;;  %v6735_v61 = vld [vmem:[#allocation5 + $0x678] sm:$0xf0] }
 0x773   : > { %v3612_v4 = vadd.f32 %v3611_v53, %v3583_v8  ;;  %v6782_v8 = vor.u32 %v7491_v31, %v6781_v25  ;;  %v6738_v55 = vor.u32 %v7478_v26, %v6735_v61  ;;  %4200 = vmatpush.bf16.msrb.mxu2 %v6710_v58  ;;  %v6862_v61 = vor.u32 %v7511_v47, %v6861_v23  ;;  %v7470_v58 = vld [vmem:[#allocation5 + $0x634] sm:$0xf]  ;;  %v7501_v23 = vld [vmem:[#allocation5 + $0x724] sm:$0xf0]  ;;  %v7464_v47 = vld [vmem:[#allocation5 + $0x604] sm:$0xf] }
 0x774   : > { %v3668_v40 = vpack.c.bf16 %v3662_v13, %v3661_v10  ;;  %v7476_v10 = vld [vmem:[#allocation5 + $0x664] sm:$0xf]  ;;  %v3559_v13 = vadd.f32 %v3558_v29, %v9040_v39  ;;  %v6701_v39 = vld [vmem:[#allocation5 + $0x630] sm:$0xf] }
 0x775   : > { %v3632_v22 = vmul.f32 0.5, %v3612_v4  ;;  %v7834_v43 = vpop.eup %7833  ;;  %v6727_v4 = vld [vmem:[#allocation5 + $0x668] sm:$0xf0]  ;;  %4284 = vmatpush.bf16.msrb.mxu1 %v6738_v55  ;;  %4228 = vmatpush.bf16.msrb.mxu3 %v6782_v8  ;;  %v7485_v55 = vld [vmem:[#allocation5 + $0x6a4] sm:$0xf0] }
 0x776   : > { %3788 = vmatmul.bf16.gmra.mxu0 %v3668_v40  ;;  %3817 = vmatmul.bf16.gmra.mxu1 %v3668_v40  ;;  %v3647_v52 = vmul.f32 0.5, %v7834_v43  ;;  %v6730_v43 = vor.u32 %v7476_v10, %v6727_v4  ;;  %v6853_v10 = vld [vmem:[#allocation5 + $0x760] sm:$0xf]  ;;  %v7472_v4 = vld [vmem:[#allocation5 + $0x644] sm:$0xf] }
 0x777   : > { %7835 = vtanh.f32 %v3632_v22  ;;  %4255 = vmatpush.bf16.msrb.mxu0 %v6862_v61  ;;  %v6679_v61 = vld [vmem:[#allocation5 + $0x608] sm:$0xf0] }
 0x778   : > { %v3585_v6 = vpop.f32.mrf.mxu2  ;;  %7837 = vtanh.f32 %v3523_v9  ;;  %v3655_v57 = vadd.f32 0.5, %v3647_v52  ;;  %v3616_v5 = vpop.f32.mrf.mxu3 }
 0x779   : > { %v3586_v27 = vadd.f32 %v3585_v6, %v3557_v42  ;;  %7839 = vtanh.f32 %v3525_v15  ;;  %v7471_v6 = vld [vmem:[#allocation5 + $0x634] sm:$0xf0]  ;;  %4285 = vmatpush.bf16.msrb.mxu1 %v6730_v43  ;;  %v3529_v52 = vpop.f32.mrf.mxu0 }
 0x77a   : > { %v6702_v60 = vor.u32 %v7471_v6, %v6701_v39  ;;  %v3530_v56 = vadd.f32 %v3529_v52, %v3501_v16  ;;  %v7483_v39 = vld [vmem:[#allocation5 + $0x694] sm:$0xf0] }
 0x77b   : > { %v3615_v30 = vadd.f32 %v3614_v45, %v3586_v27  ;;  %v6774_v45 = vor.u32 %v7489_v33, %v6773_v11  ;;  %v6693_v11 = vld [vmem:[#allocation5 + $0x620] sm:$0xf]  ;;  %v7469_v33 = vld [vmem:[#allocation5 + $0x624] sm:$0xf0] }
 0x77c   : > { %4201 = vmatpush.bf16.msrb.mxu2 %v6702_v60  ;;  %v6694_v43 = vor.u32 %v7469_v33, %v6693_v11  ;;  %v7481_v60 = vld [vmem:[#allocation5 + $0x684] sm:$0xf0]  ;;  %v7510_v11 = vld [vmem:[#allocation5 + $0x774] sm:$0xf] }
 0x77d   : > { %v7836_v53 = vpop.eup %7835  ;;  %v3633_v12 = vmul.f32 0.5, %v3615_v30  ;;  %4229 = vmatpush.bf16.msrb.mxu3 %v6774_v45  ;;  %v7505_v45 = vld [vmem:[#allocation5 + $0x744] sm:$0xf0] }
 0x77e   : > { %v3648_v36 = vmul.f32 0.5, %v7836_v53  ;;  %v7838_v40 = vpop.eup %7837 }
 0x77f   : > { %v7840_v15 = vpop.eup %7839  ;;  %7841 = vtanh.f32 %v3633_v12  ;;  %v3663_v62 = vmul.f32 %v7838_v40, %v3655_v57  ;;  %v7474_v57 = vld [vmem:[#allocation5 + $0x654] sm:$0xf]  ;;  %v6711_v40 = vld [vmem:[#allocation5 + $0x648] sm:$0xf0] }
 0x780   : > { %v3656_v22 = vadd.f32 0.5, %v3648_v36  ;;  %v3587_v9 = vpop.f32.mrf.mxu2  ;;  %v6719_v36 = vld [vmem:[#allocation5 + $0x658] sm:$0xf0]  ;;  %4202 = vmatpush.bf16.msrb.mxu2 %v6694_v43 }
 0x781   : > { %v3588_v42 = vadd.f32 %v3587_v9, %v3559_v13  ;;  %4230 = vmatpush.bf16.msrb.mxu3 %v6766_v48  ;;  %v6722_v8 = vor.u32 %v7474_v57, %v6719_v36  ;;  %v6758_v13 = vor.u32 %v7485_v55, %v6757_v59  ;;  %v6714_v9 = vor.u32 %v7472_v4, %v6711_v40  ;;  %v7499_v59 = vld [vmem:[#allocation5 + $0x714] sm:$0xf0] }
 0x782   : > { %v3664_v32 = vmul.f32 %v7840_v15, %v3656_v22  ;;  %v6854_v22 = vor.u32 %v7509_v24, %v6853_v10  ;;  %v6845_v15 = vld [vmem:[#allocation5 + $0x750] sm:$0xf]  ;;  %v6682_v36 = vor.u32 %v7464_v47, %v6679_v61  ;;  %v7497_v24 = vld [vmem:[#allocation5 + $0x704] sm:$0xf0]  ;;  %v7504_v61 = vld [vmem:[#allocation5 + $0x744] sm:$0xf] }
 0x783   : > { %v3617_v46 = vadd.f32 %v3616_v5, %v3588_v42  ;;  %4286 = vmatpush.bf16.msrb.mxu1 %v6722_v8  ;;  %v7507_v42 = vld [vmem:[#allocation5 + $0x754] sm:$0xf0]  ;;  %v6703_v5 = vld [vmem:[#allocation5 + $0x638] sm:$0xf0]  ;;  %v6813_v8 = vld [vmem:[#allocation5 + $0x710] sm:$0xf] }
 0x784   : > { %v3669_v21 = vpack.c.bf16 %v3664_v32, %v3663_v62  ;;  %4256 = vmatpush.bf16.msrb.mxu0 %v6854_v22  ;;  %v6846_v62 = vor.u32 %v7507_v42, %v6845_v15  ;;  %v6749_v32 = vld [vmem:[#allocation5 + $0x690] sm:$0xf]  ;;  %v6706_v6 = vor.u32 %v7470_v58, %v6703_v5  ;;  %v6814_v55 = vor.u32 %v7499_v59, %v6813_v8  ;;  %v7494_v22 = vld [vmem:[#allocation5 + $0x6f4] sm:$0xf]  ;;  %v6863_v15 = vld [vmem:[#allocation5 + $0x778] sm:$0xf0] }
 0x785   : > { %v3634_v27 = vmul.f32 0.5, %v3617_v46  ;;  %v7842_v49 = vpop.eup %7841  ;;  %4231 = vmatpush.bf16.msrb.mxu3 %v6758_v13  ;;  %v6750_v16 = vor.u32 %v7483_v39, %v6749_v32  ;;  %v6837_v46 = vld [vmem:[#allocation5 + $0x740] sm:$0xf]  ;;  %v3689_v10 = vld [vmem:[#allocation13 + $0x4] sm:$0x3]  ;;  %v6866_v58 = vor.u32 %v7510_v11, %v6863_v15 }
 0x786   : > { %3793 = vmatmul.bf16.gmra.mxu0 %v3669_v21  ;;  %3822 = vmatmul.bf16.gmra.mxu1 %v3669_v21  ;;  %v3649_v20 = vmul.f32 0.5, %v7842_v49  ;;  %v7468_v21 = vld [vmem:[#allocation5 + $0x624] sm:$0xf]  ;;  %v6838_v54 = vor.u32 %v7505_v45, %v6837_v46  ;;  %v6685_v49 = vld [vmem:[#allocation5 + $0x610] sm:$0xf]  ;;  %v9066_v4 = vperm.slane %v3689_v10, 0 }
 0x787   : > { %7843 = vtanh.f32 %v3634_v27  ;;  %4287 = vmatpush.bf16.msrb.mxu1 %v6714_v9  ;;  %v6741_v27 = vld [vmem:[#allocation5 + $0x680] sm:$0xf]  ;;  %v6799_v9 = vld [vmem:[#allocation5 + $0x6f8] sm:$0xf0]  ;;  %v7492_v32 = vld [vmem:[#allocation5 + $0x6e4] sm:$0xf] }
 0x788   : > { %7845 = vtanh.f32 %v3528_v18  ;;  %v3657_v25 = vadd.f32 0.5, %v3649_v20  ;;  %4257 = vmatpush.bf16.msrb.mxu0 %v6846_v62  ;;  %v6698_v18 = vor.u32 %v7468_v21, %v6695_v41  ;;  %v6742_v52 = vor.u32 %v7481_v60, %v6741_v27  ;;  %v6829_v20 = vld [vmem:[#allocation5 + $0x730] sm:$0xf]  ;;  %v6805_v13 = vld [vmem:[#allocation5 + $0x700] sm:$0xf] }
 0x789   : > { %7847 = vtanh.f32 %v3530_v56  ;;  %4232 = vmatpush.bf16.msrb.mxu3 %v6750_v16  ;;  %v7467_v56 = vld [vmem:[#allocation5 + $0x614] sm:$0xf0]  ;;  %v6806_v40 = vor.u32 %v7497_v24, %v6805_v13  ;;  %v6802_v43 = vor.u32 %v7494_v22, %v6799_v9  ;;  %v6791_v39 = vld [vmem:[#allocation5 + $0x6e8] sm:$0xf0]  ;;  %v7508_v46 = vld [vmem:[#allocation5 + $0x764] sm:$0xf] }
 0x78a   : > { %v6686_v48 = vor.u32 %v7467_v56, %v6685_v49  ;;  %v6794_v16 = vor.u32 %v7492_v32, %v6791_v39  ;;  %v6855_v45 = vld [vmem:[#allocation5 + $0x768] sm:$0xf0]  ;;  %v7930_v41 = vld [vmem:[#allocation2 + $0x10] sm:$0xff]  ;;  %v7486_v22 = vld [vmem:[#allocation5 + $0x6b4] sm:$0xf] }
 0x78b   : > { %4288 = vmatpush.bf16.msrb.mxu1 %v6706_v6  ;;  %v6767_v9 = vld [vmem:[#allocation5 + $0x6b8] sm:$0xf0]  ;;  %v7500_v32 = vld [vmem:[#allocation5 + $0x724] sm:$0xf] }
 0x78c   : > { %4258 = vmatpush.bf16.msrb.mxu0 %v6838_v54  ;;  %4203 = vmatpush.bf16.msrb.mxu2 %v6686_v48  ;;  %v6858_v54 = vor.u32 %v7508_v46, %v6855_v45  ;;  %v7506_v48 = vld [vmem:[#allocation5 + $0x754] sm:$0xf]  ;;  %v6831_v15 = vld [vmem:[#allocation5 + $0x738] sm:$0xf0] }
 0x78d   : > { %v7844_v30 = vpop.eup %7843  ;;  %4233 = vmatpush.bf16.msrb.mxu3 %v6742_v52  ;;  %v6783_v52 = vld [vmem:[#allocation5 + $0x6d8] sm:$0xf0] }
 0x78e   : > { %v3650_v31 = vmul.f32 0.5, %v7844_v30  ;;  %v7846_v29 = vpop.eup %7845  ;;  %v7503_v30 = vld [vmem:[#allocation5 + $0x734] sm:$0xf0] }
 0x78f   : > { %v7848_v53 = vpop.eup %7847  ;;  %v3665_v37 = vmul.f32 %v7846_v29, %v3657_v25  ;;  %4289 = vmatpush.bf16.msrb.mxu1 %v6698_v18  ;;  %v7466_v25 = vld [vmem:[#allocation5 + $0x614] sm:$0xf]  ;;  %v6687_v29 = vld [vmem:[#allocation5 + $0x618] sm:$0xf0] }
 0x790   : > { %v3658_v26 = vadd.f32 0.5, %v3650_v31  ;;  %v6830_v31 = vor.u32 %v7503_v30, %v6829_v20  ;;  %v7490_v18 = vld [vmem:[#allocation5 + $0x6d4] sm:$0xf]  ;;  %v6847_v20 = vld [vmem:[#allocation5 + $0x758] sm:$0xf0] }
 0x791   : > { %4342 = vmatpush.bf16.msra.mxu3 %v6866_v58  ;;  %v6786_v56 = vor.u32 %v7490_v18, %v6783_v52  ;;  %v7498_v18 = vld [vmem:[#allocation5 + $0x714] sm:$0xf]  ;;  %v6815_v52 = vld [vmem:[#allocation5 + $0x718] sm:$0xf0] }
 0x792   : > { %v3666_v19 = vmul.f32 %v7848_v53, %v3658_v26  ;;  %v6690_v26 = vor.u32 %v7466_v25, %v6687_v29  ;;  %v6677_v53 = vld [vmem:[#allocation5 + $0x600] sm:$0xf]  ;;  %4259 = vmatpush.bf16.msrb.mxu0 %v6830_v31  ;;  %v6850_v25 = vor.u32 %v7506_v48, %v6847_v20  ;;  %v6751_v48 = vld [vmem:[#allocation5 + $0x698] sm:$0xf0]  ;;  %v6818_v20 = vor.u32 %v7498_v18, %v6815_v52 }
 0x794   : > { %v3670_v12 = vpack.c.bf16 %v3666_v19, %v3665_v37  ;;  %v7465_v37 = vld [vmem:[#allocation5 + $0x604] sm:$0xf0]  ;;  %4290 = vmatpush.bf16.msrb.mxu1 %v6690_v26  ;;  %v6821_v19 = vld [vmem:[#allocation5 + $0x720] sm:$0xf] }
 0x795   : > { %v6822_v57 = vor.u32 %v7501_v23, %v6821_v19  ;;  %4343 = vmatpush.bf16.msra.mxu3 %v6858_v54  ;;  %v7488_v19 = vld [vmem:[#allocation5 + $0x6c4] sm:$0xf] }
 0x796   : > { %3798 = vmatmul.bf16.gmra.mxu0 %v3670_v12  ;;  %3827 = vmatmul.bf16.gmra.mxu1 %v3670_v12  ;;  %v6678_v12 = vor.u32 %v7465_v37, %v6677_v53 }
 0x797   : > { %4260 = vmatpush.bf16.msrb.mxu0 %v6822_v57  ;;  %v6839_v57 = vld [vmem:[#allocation5 + $0x748] sm:$0xf0] }
 0x798   : > { %4204 = vmatpush.bf16.msrb.mxu2 %v6678_v12  ;;  %4291 = vmatpush.bf16.msrb.mxu1 %v6682_v36  ;;  %v6775_v12 = vld [vmem:[#allocation5 + $0x6c8] sm:$0xf0]  ;;  %v6842_v8 = vor.u32 %v7504_v61, %v6839_v57 }
 0x799   : > { %4344 = vmatpush.bf16.msra.mxu3 %v6850_v25  ;;  %v6778_v47 = vor.u32 %v7488_v19, %v6775_v12  ;;  %v7933_v25 = vld [vmem:[#allocation2 + $0x30] sm:$0xff] }
 0x79b   : > { %4261 = vmatpush.bf16.msrb.mxu0 %v6814_v55 }
 0x79c   : > { %4313 = vmatpush.bf16.msra.mxu2 %v6802_v43  ;;  %v7502_v43 = vld [vmem:[#allocation5 + $0x734] sm:$0xf] }
 0x79d   : > { %4345 = vmatpush.bf16.msra.mxu3 %v6842_v8  ;;  %v6834_v58 = vor.u32 %v7502_v43, %v6831_v15  ;;  %v6743_v8 = vld [vmem:[#allocation5 + $0x688] sm:$0xf0] }
 0x79e   : > { %v7935_v43 = vld [vmem:[#allocation2 + $0x40] sm:$0xff] }
 0x79f   : > { %4262 = vmatpush.bf16.msrb.mxu0 %v6806_v40 }
 0x7a0   : > { %4314 = vmatpush.bf16.msra.mxu2 %v6794_v16  ;;  %v7932_v16 = vld [vmem:[#allocation2 + $0x28] sm:$0xff] }
 0x7a1   : > { %4346 = vmatpush.bf16.msra.mxu3 %v6834_v58 }
 0x7a4   : > { %4315 = vmatpush.bf16.msra.mxu2 %v6786_v56  ;;  %v7482_v56 = vld [vmem:[#allocation5 + $0x694] sm:$0xf] }
 0x7a8   : > { %4316 = vmatpush.bf16.msra.mxu2 %v6778_v47 }
 0x7e3   : > { %v3784_v33 = vpop.f32.mrf.mxu0 }
 0x7e4   : > { %v3785_v42 = vadd.f32 %v3784_v33, %v9066_v4  ;;  %v6770_v33 = vor.u32 %v7486_v22, %v6767_v9 }
 0x7e6   : > { %v3833_v62 = vadd.f32 %v3785_v42, %v8972_v17  ;;  %4317 = vmatpush.bf16.msra.mxu2 %v6770_v33 }
 0x7e8   : > { %v3841_v5 = vmul.f32 %v3833_v62, %v8506_v7  ;;  %v7484_v62 = vld [vmem:[#allocation5 + $0x6a4] sm:$0xf] }
 0x7ea   : > { %3857 = vst [vmem:[#allocation2 + $0x8] sm:$0xff] %v3841_v5 }
 0x7eb   : > { %v3786_v6 = vpop.f32.mrf.mxu0 }
 0x7ec   : > { %v3787_v21 = vadd.f32 %v3786_v6, %v9066_v4  ;;  %v6823_v6 = vld [vmem:[#allocation5 + $0x728] sm:$0xf0] }
 0x7ed   : > { %v6826_v45 = vor.u32 %v7500_v32, %v6823_v6 }
 0x7ee   : > { %v3834_v27 = vadd.f32 %v7930_v41, %v3787_v21 }
 0x7ef   : > { %4347 = vmatpush.bf16.msra.mxu3 %v6826_v45 }
 0x7f0   : > { %v3842_v60 = vmul.f32 %v3834_v27, %v8540_v63 }
 0x7f1   : > { %v3865_v26 = vld [vmem:[#allocation2 + $0x6] sm:$0xff] }
 0x7f2   : > { %3858 = vst [vmem:[#allocation2 + $0x10] sm:$0xff] %v3842_v60  ;;  %v9073_v17 = vpack.c.bf16 %v3842_v60, %v3841_v5  ;;  %v6759_v5 = vld [vmem:[#allocation5 + $0x6a8] sm:$0xf0] }
 0x7f3   : > { %v3789_v49 = vpop.f32.mrf.mxu0  ;;  %v6762_v39 = vor.u32 %v7484_v62, %v6759_v5  ;;  %4348 = vmatpush.bf16.msra.mxu3 %v6818_v20 }
 0x7f4   : > { %v3790_v30 = vadd.f32 %v3789_v49, %v9066_v4  ;;  %4234 = vmatmul.bf16.vlgmr.msrb.gmra.mxu3 %v9073_v17 }
 0x7f5   : > { %4318 = vmatpush.bf16.msra.mxu2 %v6762_v39 }
 0x7f6   : > { %v3835_v31 = vadd.f32 %v3790_v30, %v8983_v2  ;;  %v7931_v2 = vld [vmem:[#allocation2 + $0x20] sm:$0xff]  ;;  %v6754_v30 = vor.u32 %v7482_v56, %v6751_v48 }
 0x7f8   : > { %v3843_v29 = vmul.f32 %v3835_v31, %v8542_v0 }
 0x7f9   : > { %v3866_v53 = vld [vmem:[#allocation2 + $0xe] sm:$0xff]  ;;  %4319 = vmatpush.bf16.msra.mxu2 %v6754_v30 }
 0x7fa   : > { %3859 = vst [vmem:[#allocation2 + $0x18] sm:$0xff] %v3843_v29  ;;  %v3889_v37 = vpack.c.bf16 %v3866_v53, %v3865_v26  ;;  %v3881_v10 = vld [vmem:[#allocation2 + $0xa] sm:$0xff]  ;;  %v6807_v26 = vld [vmem:[#allocation5 + $0x708] sm:$0xf0] }
 0x7fb   : > { %v3791_v23 = vpop.f32.mrf.mxu0 }
 0x7fc   : > { %v3792_v36 = vadd.f32 %v3791_v23, %v9066_v4  ;;  %4205 = vmatmul.bf16.vlgmr.msrb.gmra.mxu2 %v3889_v37  ;;  %4292 = vmatmul.bf16.vlgmr.msrb.gmra.mxu1 %v3889_v37 }
 0x7fe   : > { %v3836_v59 = vadd.f32 %v7931_v2, %v3792_v36  ;;  %v7480_v36 = vld [vmem:[#allocation5 + $0x684] sm:$0xf] }
 0x7ff   : > { %v6746_v2 = vor.u32 %v7480_v36, %v6743_v8  ;;  %v6901_v8 = vld [vmem:[#allocation7 + $0x1c0] sm:$0xf] }
 0x800   : > { %v3844_v55 = vmul.f32 %v3836_v59, %v8514_v34  ;;  %v7934_v59 = vld [vmem:[#allocation2 + $0x38] sm:$0xff] }
 0x801   : > { %v3882_v13 = vld [vmem:[#allocation2 + $0x12] sm:$0xff]  ;;  %4320 = vmatpush.bf16.msra.mxu2 %v6746_v2  ;;  %v7521_v2 = vld [vmem:[#allocation7 + $0x1c4] sm:$0xf0] }
 0x802   : > { %3860 = vst [vmem:[#allocation2 + $0x20] sm:$0xff] %v3844_v55  ;;  %v9081_v24 = vpack.c.bf16 %v3882_v13, %v3881_v10  ;;  %v9083_v40 = vpack.c.bf16 %v3844_v55, %v3843_v29  ;;  %v3867_v54 = vld [vmem:[#allocation2 + $0x16] sm:$0xff] }
 0x803   : > { %v3794_v11 = vpop.f32.mrf.mxu0  ;;  %v7496_v29 = vld [vmem:[#allocation5 + $0x704] sm:$0xf] }
 0x804   : > { %v3795_v42 = vadd.f32 %v3794_v11, %v9066_v4  ;;  %4263 = vmatmul.bf16.vlgmr.msrb.gmra.mxu0 %v9081_v24  ;;  %4239 = vmatmul.bf16.gmra.mxu3 %v9083_v40  ;;  %v6810_v37 = vor.u32 %v7496_v29, %v6807_v26 }
 0x806   : > { %v3837_v46 = vadd.f32 %v7932_v16, %v3795_v42  ;;  %4349 = vmatpush.bf16.msra.mxu3 %v6810_v37  ;;  %v6909_v37 = vld [vmem:[#allocation7 + $0x1d0] sm:$0xf] }
 0x808   : > { %v3845_v21 = vmul.f32 %v3837_v46, %v8524_v50 }
 0x809   : > { %v3868_v41 = vld [vmem:[#allocation2 + $0x1e] sm:$0xff] }
 0x80a   : > { %3861 = vst [vmem:[#allocation2 + $0x28] sm:$0xff] %v3845_v21  ;;  %v3892_v27 = vpack.c.bf16 %v3868_v41, %v3867_v54  ;;  %v3883_v19 = vld [vmem:[#allocation2 + $0x1a] sm:$0xff] }
 0x80b   : > { %v3796_v60 = vpop.f32.mrf.mxu0 }
 0x80c   : > { %v3797_v49 = vadd.f32 %v3796_v60, %v9066_v4  ;;  %4210 = vmatmul.bf16.gmra.mxu2 %v3892_v27  ;;  %4297 = vmatmul.bf16.gmra.mxu1 %v3892_v27  ;;  %v9104_v60 = vld [vmem:[#allocation11 + $0x8] sm:$0x3] }
 0x80e   : > { %v3838_v31 = vadd.f32 %v7933_v25, %v3797_v49  ;;  %v6917_v25 = vld [vmem:[#allocation7 + $0x1e0] sm:$0xf] }
 0x810   : > { %v3846_v53 = vmul.f32 %v3838_v31, %v8516_v35  ;;  %v7525_v31 = vld [vmem:[#allocation7 + $0x1e4] sm:$0xf0] }
 0x811   : > { %v3884_v12 = vld [vmem:[#allocation2 + $0x22] sm:$0xff] }
 0x812   : > { %3862 = vst [vmem:[#allocation2 + $0x30] sm:$0xff] %v3846_v53  ;;  %v3894_v23 = vpack.c.bf16 %v3884_v12, %v3883_v19  ;;  %v3896_v47 = vpack.c.bf16 %v3846_v53, %v3845_v21  ;;  %v3869_v13 = vld [vmem:[#allocation2 + $0x26] sm:$0xff]  ;;  %v9098_v21 = vpop.f32.mrf.mxu1  ;;  %v6918_v53 = vor.u32 %v7525_v31, %v6917_v25  ;;  %v6895_v31 = vld [vmem:[#allocation7 + $0x1b8] sm:$0xf0] }
 0x813   : > { %v3799_v61 = vpop.f32.mrf.mxu0  ;;  %v7523_v19 = vld [vmem:[#allocation7 + $0x1d4] sm:$0xf0]  ;;  %v7518_v25 = vld [vmem:[#allocation7 + $0x1b4] sm:$0xf] }
 0x814   : > { %v3800_v57 = vadd.f32 %v3799_v61, %v9066_v4  ;;  %4268 = vmatmul.bf16.gmra.mxu0 %v3894_v23  ;;  %4244 = vmatmul.bf16.gmra.mxu3 %v3896_v47 }
 0x816   : > { %v3839_v55 = vadd.f32 %v7934_v59, %v3800_v57 }
 0x818   : > { %v3847_v10 = vmul.f32 %v3839_v55, %v8526_v51 }
 0x819   : > { %v3870_v22 = vld [vmem:[#allocation2 + $0x2e] sm:$0xff] }
 0x81a   : > { %3863 = vst [vmem:[#allocation2 + $0x38] sm:$0xff] %v3847_v10  ;;  %v3895_v9 = vpack.c.bf16 %v3870_v22, %v3869_v13  ;;  %v3885_v58 = vld [vmem:[#allocation2 + $0x2a] sm:$0xff]  ;;  %v9100_v54 = vpop.f32.mrf.mxu1 }
 0x81b   : > { %v3801_v11 = vpop.f32.mrf.mxu0  ;;  %v7526_v22 = vld [vmem:[#allocation7 + $0x1f4] sm:$0xf] }
 0x81c   : > { %v3802_v33 = vadd.f32 %v3801_v11, %v9066_v4  ;;  %4215 = vmatmul.bf16.gmra.mxu2 %v3895_v9  ;;  %4302 = vmatmul.bf16.gmra.mxu1 %v3895_v9  ;;  %v6927_v9 = vld [vmem:[#allocation7 + $0x1f8] sm:$0xf0] }
 0x81d   : > { %v6930_v11 = vor.u32 %v7526_v22, %v6927_v9  ;;  %v6877_v22 = vld [vmem:[#allocation7 + $0x190] sm:$0xf]  ;;  %v7515_v9 = vld [vmem:[#allocation7 + $0x194] sm:$0xf0] }
 0x81e   : > { %v3840_v15 = vadd.f32 %v7935_v43, %v3802_v33  ;;  %v6893_v33 = vld [vmem:[#allocation7 + $0x1b0] sm:$0xf]  ;;  %v7519_v43 = vld [vmem:[#allocation7 + $0x1b4] sm:$0xf0] }
 0x81f   : > { %4556 = vmatpush.bf16.msra.mxu1 %v6930_v11  ;;  %v7514_v11 = vld [vmem:[#allocation7 + $0x194] sm:$0xf] }
 0x820   : > { %v3848_v42 = vmul.f32 %v3840_v15, %v8504_v44 }
 0x821   : > { %v3886_v62 = vld [vmem:[#allocation2 + $0x32] sm:$0xff] }
 0x822   : > { %3864 = vst [vmem:[#allocation2 + $0x40] sm:$0xff] %v3848_v42  ;;  %v3897_v5 = vpack.c.bf16 %v3886_v62, %v3885_v58  ;;  %v3899_v32 = vpack.c.bf16 %v3848_v42, %v3847_v10  ;;  %v3871_v39 = vld [vmem:[#allocation2 + $0x36] sm:$0xff]  ;;  %v9102_v41 = vpop.f32.mrf.mxu1  ;;  %v6902_v10 = vor.u32 %v7521_v2, %v6901_v8  ;;  %v6894_v58 = vor.u32 %v7519_v43, %v6893_v33  ;;  %v6887_v2 = vld [vmem:[#allocation7 + $0x1a8] sm:$0xf0]  ;;  %v6879_v43 = vld [vmem:[#allocation7 + $0x198] sm:$0xf0] }
 0x823   : > { %v6878_v33 = vor.u32 %v7515_v9, %v6877_v22 }
 0x824   : > { %4273 = vmatmul.bf16.gmra.mxu0 %v3897_v5  ;;  %4249 = vmatmul.bf16.gmra.mxu3 %v3899_v32 }
 0x829   : > { %v3872_v6 = vld [vmem:[#allocation2 + $0x3e] sm:$0xff] }
 0x82a   : > { %v3898_v16 = vpack.c.bf16 %v3872_v6, %v3871_v39  ;;  %v3887_v46 = vld [vmem:[#allocation2 + $0x3a] sm:$0xff]  ;;  %v3888_v4 = vld [vmem:[#allocation2 + $0x42] sm:$0xff]  ;;  %v9106_v18 = vpop.f32.mrf.mxu1 }
 0x82b   : > { %v3900_v45 = vpack.c.bf16 %v3888_v4, %v3887_v46  ;;  %v7522_v46 = vld [vmem:[#allocation7 + $0x1d4] sm:$0xf]  ;;  %v6911_v4 = vld [vmem:[#allocation7 + $0x1d8] sm:$0xf0] }
 0x82c   : > { %4220 = vmatmul.bf16.gmra.mxu2 %v3898_v16  ;;  %4307 = vmatmul.bf16.gmra.mxu1 %v3898_v16 }
 0x832   : > { %v9116_v30 = vpop.f32.mrf.mxu1 }
 0x834   : > { %4278 = vmatmul.bf16.gmra.mxu0 %v3900_v45  ;;  %4350 = vmatmul.bf16.vlgmr.msra.gmra.mxu3 %v9081_v24  ;;  %v6925_v24 = vld [vmem:[#allocation7 + $0x1f0] sm:$0xf] }
 0x83a   : > { %v9122_v61 = vpop.f32.mrf.mxu1 }
 0x83c   : > { %4321 = vmatmul.bf16.vlgmr.msra.gmra.mxu2 %v9073_v17  ;;  %v9109_v17 = vperm.slane %v9104_v60, 0 }
 0x842   : > { %v9129_v13 = vpop.f32.mrf.mxu1 }
 0x844   : > { %4355 = vmatmul.bf16.gmra.mxu3 %v3894_v23 }
 0x84a   : > { %v9136_v16 = vpop.f32.mrf.mxu1 }
 0x84c   : > { %4326 = vmatmul.bf16.gmra.mxu2 %v9083_v40  ;;  %v7527_v40 = vld [vmem:[#allocation7 + $0x1f4] sm:$0xf0] }
 0x84d   : > { %v6926_v56 = vor.u32 %v7527_v40, %v6925_v24  ;;  %v7520_v40 = vld [vmem:[#allocation7 + $0x1c4] sm:$0xf] }
 0x84f   : > { %4527 = vmatpush.bf16.msra.mxu0 %v6926_v56 }
 0x853   : > { %4528 = vmatpush.bf16.msra.mxu0 %v6918_v53 }
 0x854   : > { %4360 = vmatmul.bf16.gmra.mxu3 %v3897_v5  ;;  %v7524_v5 = vld [vmem:[#allocation7 + $0x1e4] sm:$0xf] }
 0x85c   : > { %4331 = vmatmul.bf16.gmra.mxu2 %v3896_v47  ;;  %v6910_v47 = vor.u32 %v7523_v19, %v6909_v37 }
 0x85e   : > { %4529 = vmatpush.bf16.msra.mxu0 %v6910_v47  ;;  %v7517_v47 = vld [vmem:[#allocation7 + $0x1a4] sm:$0xf0] }
 0x862   : > { %4530 = vmatpush.bf16.msra.mxu0 %v6902_v10 }
 0x864   : > { %4365 = vmatmul.bf16.gmra.mxu3 %v3900_v45  ;;  %v6914_v45 = vor.u32 %v7522_v46, %v6911_v4  ;;  %v7513_v46 = vld [vmem:[#allocation7 + $0x184] sm:$0xf0]  ;;  %v7512_v4 = vld [vmem:[#allocation7 + $0x184] sm:$0xf] }
 0x866   : > { %4531 = vmatpush.bf16.msra.mxu0 %v6894_v58 }
 0x86c   : > { %4336 = vmatmul.bf16.gmra.mxu2 %v3899_v32  ;;  %v6919_v32 = vld [vmem:[#allocation7 + $0x1e8] sm:$0xf0] }
 0x86d   : > { %v6922_v39 = vor.u32 %v7524_v5, %v6919_v32 }
 0x86f   : > { %4557 = vmatpush.bf16.msra.mxu1 %v6922_v39  ;;  %v6869_v39 = vld [vmem:[#allocation7 + $0x180] sm:$0xf] }
 0x873   : > { %4558 = vmatpush.bf16.msra.mxu1 %v6914_v45  ;;  %v6870_v45 = vor.u32 %v7513_v46, %v6869_v39 }
 0x877   : > { %v4235_v27 = vpop.f32.mrf.mxu3 }
 0x87f   : > { %v4206_v52 = vpop.f32.mrf.mxu2  ;;  %v9111_v49 = vpop.f32.mrf.mxu3 }
 0x880   : > { %v4207_v48 = vadd.f32 %v4206_v52, %v9109_v17  ;;  %v6903_v52 = vld [vmem:[#allocation7 + $0x1c8] sm:$0xf0] }
 0x881   : > { %v6906_v56 = vor.u32 %v7520_v40, %v6903_v52  ;;  %v9148_v40 = vperm.slane %v9104_v60, 1 }
 0x882   : > { %v9114_v20 = vadd.f32 %v4235_v27, %v4207_v48  ;;  %v4293_v48 = vpop.f32.mrf.mxu1 }
 0x883   : > { %4559 = vmatpush.bf16.msra.mxu1 %v6906_v56  ;;  %v4294_v56 = vadd.f32 %v4293_v48, %v9148_v40 }
 0x887   : > { %v9118_v29 = vpop.f32.mrf.mxu2  ;;  %v4240_v26 = vpop.f32.mrf.mxu3 }
 0x88a   : > { %v4295_v58 = vpop.f32.mrf.mxu1 }
 0x88f   : > { %v4211_v12 = vpop.f32.mrf.mxu2  ;;  %v9120_v23 = vpop.f32.mrf.mxu3 }
 0x890   : > { %v4212_v57 = vadd.f32 %v4211_v12, %v9109_v17  ;;  %v6885_v12 = vld [vmem:[#allocation7 + $0x1a0] sm:$0xf] }
 0x891   : > { %v6886_v8 = vor.u32 %v7517_v47, %v6885_v12 }
 0x892   : > { %v9125_v36 = vadd.f32 %v4240_v26, %v4212_v57  ;;  %v6898_v26 = vor.u32 %v7518_v25, %v6895_v31  ;;  %v7516_v57 = vld [vmem:[#allocation7 + $0x1a4] sm:$0xf] }
 0x893   : > { %v6890_v10 = vor.u32 %v7516_v57, %v6887_v2  ;;  %4532 = vmatpush.bf16.msra.mxu0 %v6886_v8  ;;  %v4296_v57 = vadd.f32 %v4295_v58, %v9148_v40  ;;  %v4209_v8 = vadd.f32 %v9118_v29, %v9109_v17 }
 0x894   : > { %4560 = vmatpush.bf16.msra.mxu1 %v6898_v26 }
 0x895   : > { %v4238_v22 = vadd.f32 %v9111_v49, %v4209_v8 }
 0x897   : > { %v9127_v59 = vpop.f32.mrf.mxu2  ;;  %v4245_v55 = vpop.f32.mrf.mxu3  ;;  %4533 = vmatpush.bf16.msra.mxu0 %v6878_v33 }
 0x898   : > { %4561 = vmatpush.bf16.msra.mxu1 %v6890_v10 }
 0x89b   : > { %4534 = vmatpush.bf16.msra.mxu0 %v6870_v45 }
 0x89f   : > { %v4216_v15 = vpop.f32.mrf.mxu2  ;;  %v9131_v42 = vpop.f32.mrf.mxu3 }
 0x8a0   : > { %v4217_v62 = vadd.f32 %v4216_v15, %v9109_v17  ;;  %v4264_v15 = vpop.f32.mrf.mxu0 }
 0x8a2   : > { %v9134_v6 = vadd.f32 %v4245_v55, %v4217_v62  ;;  %v6882_v62 = vor.u32 %v7514_v11, %v6879_v43  ;;  %v4265_v43 = vadd.f32 %v4264_v15, %v9114_v20  ;;  %v4214_v15 = vadd.f32 %v9127_v59, %v9109_v17 }
 0x8a4   : > { %4562 = vmatpush.bf16.msra.mxu1 %v6882_v62 }
 0x8a7   : > { %v9138_v27 = vpop.f32.mrf.mxu2  ;;  %v4250_v24 = vpop.f32.mrf.mxu3 }
 0x8a8   : > { %v4266_v26 = vpop.f32.mrf.mxu0 }
 0x8af   : > { %v4221_v53 = vpop.f32.mrf.mxu2  ;;  %v9140_v37 = vpop.f32.mrf.mxu3 }
 0x8b0   : > { %v4222_v19 = vadd.f32 %v4221_v53, %v9109_v17  ;;  %v4269_v9 = vpop.f32.mrf.mxu0 }
 0x8b2   : > { %v9143_v55 = vadd.f32 %v4250_v24, %v4222_v19  ;;  %v6871_v24 = vld [vmem:[#allocation7 + $0x188] sm:$0xf0]  ;;  %v4298_v19 = vpop.f32.mrf.mxu1 }
 0x8b3   : > { %v6874_v52 = vor.u32 %v7512_v4, %v6871_v24  ;;  %v4299_v39 = vadd.f32 %v4298_v19, %v9148_v40 }
 0x8b5   : > { %4563 = vmatpush.bf16.msra.mxu1 %v6874_v52 }
 0x8b7   : > { %v9145_v5 = vpop.f32.mrf.mxu2  ;;  %v4351_v32 = vpop.f32.mrf.mxu3 }
 0x8b8   : > { %v4271_v49 = vpop.f32.mrf.mxu0 }
 0x8ba   : > { %v4300_v11 = vpop.f32.mrf.mxu1 }
 0x8bb   : > { %v4301_v20 = vadd.f32 %v4300_v11, %v9148_v40 }
 0x8bf   : > { %v4322_v25 = vpop.f32.mrf.mxu2  ;;  %v4353_v31 = vpop.f32.mrf.mxu3 }
 0x8c0   : > { %v4323_v53 = vadd.f32 %v4322_v25, %v4294_v56 }
 0x8c2   : > { %v4352_v12 = vadd.f32 %v4351_v32, %v4323_v53  ;;  %v4267_v32 = vadd.f32 %v4266_v26, %v4238_v22  ;;  %v4303_v56 = vpop.f32.mrf.mxu1 }
 0x8c4   : > { %v4379_v47 = vmul.f32 0.5, %v4352_v12 }
 0x8c6   : > { %7849 = vtanh.f32 %v4379_v47 }
 0x8c7   : > { %v4324_v2 = vpop.f32.mrf.mxu2  ;;  %v4356_v60 = vpop.f32.mrf.mxu3 }
 0x8c8   : > { %v4325_v10 = vadd.f32 %v4324_v2, %v4296_v57  ;;  %v4243_v2 = vadd.f32 %v9120_v23, %v4214_v15 }
 0x8ca   : > { %v4354_v48 = vadd.f32 %v4353_v31, %v4325_v10  ;;  %v4272_v59 = vadd.f32 %v4271_v49, %v4243_v2  ;;  %v4219_v49 = vadd.f32 %v9138_v27, %v9109_v17  ;;  %v6989_v27 = vld [vmem:[#allocation5 + $0x7f0] sm:$0xf] }
 0x8cc   : > { %v4380_v33 = vmul.f32 0.5, %v4354_v48  ;;  %v7850_v62 = vpop.eup %7849 }
 0x8cd   : > { %v4395_v29 = vmul.f32 0.5, %v7850_v62  ;;  %v4274_v62 = vpop.f32.mrf.mxu0 }
 0x8ce   : > { %7851 = vtanh.f32 %v4380_v33  ;;  %v4270_v33 = vadd.f32 %v4269_v9, %v9125_v36  ;;  %v4275_v2 = vadd.f32 %v4274_v62, %v9134_v6  ;;  %v7557_v62 = vld [vmem:[#allocation5 + $0x864] sm:$0xf0] }
 0x8cf   : > { %v4327_v58 = vpop.f32.mrf.mxu2  ;;  %7853 = vtanh.f32 %v4265_v43  ;;  %v4358_v4 = vpop.f32.mrf.mxu3  ;;  %v4403_v25 = vadd.f32 0.5, %v4395_v29  ;;  %v4304_v43 = vadd.f32 %v4303_v56, %v9148_v40 }
 0x8d0   : > { %v4328_v46 = vadd.f32 %v4327_v58, %v4299_v39  ;;  %7855 = vtanh.f32 %v4267_v32  ;;  %v4305_v32 = vpop.f32.mrf.mxu1 }
 0x8d1   : > { %v4306_v9 = vadd.f32 %v4305_v32, %v9148_v40 }
 0x8d2   : > { %v4357_v45 = vadd.f32 %v4356_v60, %v4328_v46 }
 0x8d4   : > { %v7852_v24 = vpop.eup %7851  ;;  %v4381_v52 = vmul.f32 0.5, %v4357_v45 }
 0x8d5   : > { %v4396_v31 = vmul.f32 0.5, %v7852_v24  ;;  %v7854_v26 = vpop.eup %7853  ;;  %v4276_v15 = vpop.f32.mrf.mxu0 }
 0x8d6   : > { %v7856_v12 = vpop.eup %7855  ;;  %7857 = vtanh.f32 %v4381_v52  ;;  %v4411_v57 = vmul.f32 %v7854_v26, %v4403_v25 }
 0x8d7   : > { %v4404_v53 = vadd.f32 0.5, %v4396_v31  ;;  %v4329_v19 = vpop.f32.mrf.mxu2  ;;  %v4361_v22 = vpop.f32.mrf.mxu3 }
 0x8d8   : > { %v4330_v47 = vadd.f32 %v4329_v19, %v4301_v20  ;;  %v4308_v26 = vpop.f32.mrf.mxu1 }
 0x8d9   : > { %v4412_v8 = vmul.f32 %v7856_v12, %v4404_v53  ;;  %v4248_v12 = vadd.f32 %v9131_v42, %v4219_v49  ;;  %v7555_v49 = vld [vmem:[#allocation5 + $0x854] sm:$0xf0] }
 0x8da   : > { %v4359_v60 = vadd.f32 %v4358_v4, %v4330_v47 }
 0x8db   : > { %v4419_v10 = vpack.c.bf16 %v4412_v8, %v4411_v57 }
 0x8dc   : > { %v4382_v48 = vmul.f32 0.5, %v4359_v60  ;;  %v7858_v11 = vpop.eup %7857  ;;  %v7543_v60 = vld [vmem:[#allocation5 + $0x7f4] sm:$0xf0] }
 0x8dd   : > { %4535 = vmatmul.bf16.vlgmr.msra.gmra.mxu0 %v4419_v10  ;;  %4564 = vmatmul.bf16.vlgmr.msra.gmra.mxu1 %v4419_v10  ;;  %v4397_v46 = vmul.f32 0.5, %v7858_v11  ;;  %v7053_v11 = vld [vmem:[#allocation5 + $0x870] sm:$0xf] }
 0x8de   : > { %7859 = vtanh.f32 %v4382_v48  ;;  %v4309_v48 = vadd.f32 %v4308_v26, %v9148_v40  ;;  %v6965_v26 = vld [vmem:[#allocation5 + $0x7c0] sm:$0xf] }
 0x8df   : > { %v4332_v39 = vpop.f32.mrf.mxu2  ;;  %7861 = vtanh.f32 %v4270_v33  ;;  %v4405_v45 = vadd.f32 0.5, %v4397_v46  ;;  %v4363_v36 = vpop.f32.mrf.mxu3  ;;  %v6990_v33 = vor.u32 %v7543_v60, %v6989_v27  ;;  %v7045_v46 = vld [vmem:[#allocation5 + $0x860] sm:$0xf]  ;;  %v4224_v60 = vadd.f32 %v9145_v5, %v9109_v17 }
 0x8e0   : > { %v4333_v58 = vadd.f32 %v4332_v39, %v4304_v43  ;;  %7863 = vtanh.f32 %v4272_v59  ;;  %v7559_v59 = vld [vmem:[#allocation5 + $0x874] sm:$0xf0]  ;;  %v6981_v43 = vld [vmem:[#allocation5 + $0x7e0] sm:$0xf] }
 0x8e1   : > { %v7054_v39 = vor.u32 %v7559_v59, %v7053_v11  ;;  %4942 = vmatpush.bf16.msrb.mxu2 %v6990_v33  ;;  %v7029_v11 = vld [vmem:[#allocation5 + $0x840] sm:$0xf]  ;;  %v7553_v59 = vld [vmem:[#allocation5 + $0x844] sm:$0xf0]  ;;  %v4253_v17 = vadd.f32 %v9140_v37, %v4224_v60  ;;  %v6975_v60 = vld [vmem:[#allocation5 + $0x7d8] sm:$0xf0] }
 0x8e2   : > { %v4362_v23 = vadd.f32 %v4361_v22, %v4333_v58  ;;  %v4277_v22 = vadd.f32 %v4276_v15, %v4248_v12  ;;  %v7541_v58 = vld [vmem:[#allocation5 + $0x7e4] sm:$0xf0] }
 0x8e3   : > { %v6982_v6 = vor.u32 %v7541_v58, %v6981_v43  ;;  %4971 = vmatpush.bf16.msrb.mxu3 %v7054_v39 }
 0x8e4   : > { %v7860_v29 = vpop.eup %7859  ;;  %v4383_v4 = vmul.f32 0.5, %v4362_v23 }
 0x8e5   : > { %v4398_v24 = vmul.f32 0.5, %v7860_v29  ;;  %v7862_v52 = vpop.eup %7861  ;;  %4943 = vmatpush.bf16.msrb.mxu2 %v6982_v6  ;;  %v7535_v6 = vld [vmem:[#allocation5 + $0x7b4] sm:$0xf0] }
 0x8e6   : > { %v7864_v31 = vpop.eup %7863  ;;  %7865 = vtanh.f32 %v4383_v4  ;;  %v4413_v53 = vmul.f32 %v7862_v52, %v4405_v45  ;;  %v7046_v4 = vor.u32 %v7557_v62, %v7045_v46  ;;  %v6973_v45 = vld [vmem:[#allocation5 + $0x7d0] sm:$0xf]  ;;  %v4279_v52 = vpop.f32.mrf.mxu0  ;;  %v7030_v62 = vor.u32 %v7553_v59, %v7029_v11  ;;  %v7573_v59 = vld [vmem:[#allocation5 + $0x8e4] sm:$0xf0] }
 0x8e7   : > { %v4406_v56 = vadd.f32 0.5, %v4398_v24  ;;  %v4334_v25 = vpop.f32.mrf.mxu2  ;;  %v4366_v42 = vpop.f32.mrf.mxu3  ;;  %v7539_v24 = vld [vmem:[#allocation5 + $0x7d4] sm:$0xf0] }
 0x8e8   : > { %v4335_v20 = vadd.f32 %v4334_v25, %v4306_v9  ;;  %v7037_v9 = vld [vmem:[#allocation5 + $0x850] sm:$0xf]  ;;  %v7542_v25 = vld [vmem:[#allocation5 + $0x7f4] sm:$0xf]  ;;  %v6974_v15 = vor.u32 %v7539_v24, %v6973_v45  ;;  %4972 = vmatpush.bf16.msrb.mxu3 %v7046_v4  ;;  %v7551_v45 = vld [vmem:[#allocation5 + $0x834] sm:$0xf0] }
 0x8e9   : > { %v4414_v19 = vmul.f32 %v7864_v31, %v4406_v56  ;;  %v4310_v56 = vpop.f32.mrf.mxu1  ;;  %v7021_v4 = vld [vmem:[#allocation5 + $0x830] sm:$0xf] }
 0x8ea   : > { %v4364_v47 = vadd.f32 %v4363_v36, %v4335_v20  ;;  %v4311_v27 = vadd.f32 %v4310_v56, %v9148_v40  ;;  %4944 = vmatpush.bf16.msrb.mxu2 %v6974_v15  ;;  %v6957_v40 = vld [vmem:[#allocation5 + $0x7b0] sm:$0xf] }
 0x8eb   : > { %v4420_v57 = vpack.c.bf16 %v4414_v19, %v4413_v53  ;;  %v6991_v53 = vld [vmem:[#allocation5 + $0x7f8] sm:$0xf0] }
 0x8ec   : > { %v4384_v8 = vmul.f32 0.5, %v4364_v47  ;;  %v7866_v10 = vpop.eup %7865  ;;  %v7038_v47 = vor.u32 %v7555_v49, %v7037_v9  ;;  %v4280_v9 = vadd.f32 %v4279_v52, %v9143_v55 }
 0x8ed   : > { %4540 = vmatmul.bf16.gmra.mxu0 %v4420_v57  ;;  %4569 = vmatmul.bf16.gmra.mxu1 %v4420_v57  ;;  %v4399_v29 = vmul.f32 0.5, %v7866_v10  ;;  %v7537_v57 = vld [vmem:[#allocation5 + $0x7c4] sm:$0xf0]  ;;  %v6983_v10 = vld [vmem:[#allocation5 + $0x7e8] sm:$0xf0] }
 0x8ee   : > { %7867 = vtanh.f32 %v4384_v8  ;;  %v6994_v8 = vor.u32 %v7542_v25, %v6991_v53  ;;  %v6966_v39 = vor.u32 %v7537_v57, %v6965_v26  ;;  %4973 = vmatpush.bf16.msrb.mxu3 %v7038_v47  ;;  %v4281_v49 = vpop.f32.mrf.mxu0  ;;  %v7117_v57 = vld [vmem:[#allocation5 + $0x8f0] sm:$0xf] }
 0x8ef   : > { %v4337_v32 = vpop.f32.mrf.mxu2  ;;  %7869 = vtanh.f32 %v4275_v2  ;;  %v4407_v19 = vadd.f32 0.5, %v4399_v29  ;;  %v7540_v2 = vld [vmem:[#allocation5 + $0x7e4] sm:$0xf]  ;;  %v4282_v25 = vadd.f32 %v4281_v49, %v4253_v17  ;;  %v7534_v17 = vld [vmem:[#allocation5 + $0x7b4] sm:$0xf] }
 0x8f0   : > { %v4338_v23 = vadd.f32 %v4337_v32, %v4309_v48  ;;  %7871 = vtanh.f32 %v4277_v22  ;;  %5029 = vmatpush.bf16.msrb.mxu1 %v6994_v8  ;;  %v6986_v43 = vor.u32 %v7540_v2, %v6983_v10  ;;  %4945 = vmatpush.bf16.msrb.mxu2 %v6966_v39  ;;  %v7575_v8 = vld [vmem:[#allocation5 + $0x8f4] sm:$0xf0]  ;;  %v7532_v49 = vld [vmem:[#allocation5 + $0x7a4] sm:$0xf] }
 0x8f1   : > { %v7118_v2 = vor.u32 %v7575_v8, %v7117_v57  ;;  %v6943_v57 = vld [vmem:[#allocation5 + $0x798] sm:$0xf0] }
 0x8f2   : > { %v4367_v36 = vadd.f32 %v4366_v42, %v4338_v23  ;;  %v4368_v23 = vpop.f32.mrf.mxu3  ;;  %4974 = vmatpush.bf16.msrb.mxu3 %v7030_v62  ;;  %v6959_v62 = vld [vmem:[#allocation5 + $0x7b8] sm:$0xf0] }
 0x8f3   : > { %5000 = vmatpush.bf16.msrb.mxu0 %v7118_v2  ;;  %v6933_v2 = vld [vmem:[#allocation5 + $0x780] sm:$0xf] }
 0x8f4   : > { %v7868_v31 = vpop.eup %7867  ;;  %v4385_v20 = vmul.f32 0.5, %v4367_v36  ;;  %5030 = vmatpush.bf16.msrb.mxu1 %v6986_v43  ;;  %v6958_v36 = vor.u32 %v7535_v6, %v6957_v40  ;;  %v7536_v43 = vld [vmem:[#allocation5 + $0x7c4] sm:$0xf]  ;;  %v7101_v40 = vld [vmem:[#allocation5 + $0x8d0] sm:$0xf] }
 0x8f5   : > { %v4400_v12 = vmul.f32 0.5, %v7868_v31  ;;  %v7870_v22 = vpop.eup %7869  ;;  %v7022_v31 = vor.u32 %v7551_v45, %v7021_v4  ;;  %v7571_v6 = vld [vmem:[#allocation5 + $0x8d4] sm:$0xf0]  ;;  %v6962_v45 = vor.u32 %v7534_v17, %v6959_v62  ;;  %v7558_v62 = vld [vmem:[#allocation5 + $0x874] sm:$0xf] }
 0x8f6   : > { %v7872_v32 = vpop.eup %7871  ;;  %7873 = vtanh.f32 %v4385_v20  ;;  %v4415_v58 = vmul.f32 %v7870_v22, %v4407_v19  ;;  %4946 = vmatpush.bf16.msrb.mxu2 %v6958_v36  ;;  %v7013_v22 = vld [vmem:[#allocation5 + $0x820] sm:$0xf]  ;;  %v7547_v4 = vld [vmem:[#allocation5 + $0x814] sm:$0xf0] }
 0x8f7   : > { %v4408_v48 = vadd.f32 0.5, %v4400_v12  ;;  %v4339_v33 = vpop.f32.mrf.mxu2  ;;  %4975 = vmatpush.bf16.msrb.mxu3 %v7022_v31  ;;  %v7093_v36 = vld [vmem:[#allocation5 + $0x8c0] sm:$0xf] }
 0x8f8   : > { %v4340_v42 = vadd.f32 %v4339_v33, %v4311_v27  ;;  %v7538_v27 = vld [vmem:[#allocation5 + $0x7d4] sm:$0xf]  ;;  %v7109_v33 = vld [vmem:[#allocation5 + $0x8e0] sm:$0xf] }
 0x8f9   : > { %v4416_v46 = vmul.f32 %v7872_v32, %v4408_v48  ;;  %v6978_v10 = vor.u32 %v7538_v27, %v6975_v60  ;;  %v7549_v48 = vld [vmem:[#allocation5 + $0x824] sm:$0xf0]  ;;  %v6967_v32 = vld [vmem:[#allocation5 + $0x7c8] sm:$0xf0]  ;;  %v6997_v31 = vld [vmem:[#allocation5 + $0x800] sm:$0xf] }
 0x8fa   : > { %v4369_v5 = vadd.f32 %v4368_v23, %v4340_v42  ;;  %v7014_v11 = vor.u32 %v7549_v48, %v7013_v22  ;;  %v7110_v42 = vor.u32 %v7573_v59, %v7109_v33  ;;  %v6970_v39 = vor.u32 %v7536_v43, %v6967_v32  ;;  %v7529_v27 = vld [vmem:[#allocation5 + $0x784] sm:$0xf0]  ;;  %v7077_v60 = vld [vmem:[#allocation5 + $0x8a0] sm:$0xf]  ;;  %v7528_v48 = vld [vmem:[#allocation5 + $0x784] sm:$0xf] }
 0x8fb   : > { %v4421_v29 = vpack.c.bf16 %v4416_v46, %v4415_v58  ;;  %5031 = vmatpush.bf16.msrb.mxu1 %v6978_v10  ;;  %v6949_v58 = vld [vmem:[#allocation5 + $0x7a0] sm:$0xf]  ;;  %v7533_v46 = vld [vmem:[#allocation5 + $0x7a4] sm:$0xf0]  ;;  %v6934_v10 = vor.u32 %v7529_v27, %v6933_v2  ;;  %v6935_v33 = vld [vmem:[#allocation5 + $0x788] sm:$0xf0] }
 0x8fc   : > { %v4386_v24 = vmul.f32 0.5, %v4369_v5  ;;  %v7874_v56 = vpop.eup %7873  ;;  %4976 = vmatpush.bf16.msrb.mxu3 %v7014_v11  ;;  %v6950_v23 = vor.u32 %v7533_v46, %v6949_v58  ;;  %5001 = vmatpush.bf16.msrb.mxu0 %v7110_v42  ;;  %v7102_v5 = vor.u32 %v7571_v6, %v7101_v40  ;;  %v7565_v22 = vld [vmem:[#allocation5 + $0x8a4] sm:$0xf0]  ;;  %v6938_v59 = vor.u32 %v7528_v48, %v6935_v33  ;;  %v7069_v43 = vld [vmem:[#allocation5 + $0x890] sm:$0xf]  ;;  %v7938_v2 = vld [vmem:[#allocation2 + $0x10] sm:$0xff] }
 0x8fd   : > { %4545 = vmatmul.bf16.gmra.mxu0 %v4421_v29  ;;  %4574 = vmatmul.bf16.gmra.mxu1 %v4421_v29  ;;  %v4401_v37 = vmul.f32 0.5, %v7874_v56  ;;  %v7005_v29 = vld [vmem:[#allocation5 + $0x810] sm:$0xf]  ;;  %v7078_v11 = vor.u32 %v7565_v22, %v7077_v60  ;;  %v7563_v32 = vld [vmem:[#allocation5 + $0x894] sm:$0xf0] }
 0x8fe   : > { %7875 = vtanh.f32 %v4386_v24  ;;  %4947 = vmatpush.bf16.msrb.mxu2 %v6950_v23  ;;  %v7006_v24 = vor.u32 %v7547_v4, %v7005_v29  ;;  %v7070_v42 = vor.u32 %v7563_v32, %v7069_v43  ;;  %v7061_v58 = vld [vmem:[#allocation5 + $0x880] sm:$0xf]  ;;  %v7561_v46 = vld [vmem:[#allocation5 + $0x884] sm:$0xf0]  ;;  %v7936_v23 = vld [vmem:[#allocation13 + $0x4] sm:$0x3] }
 0x8ff   : > { %7877 = vtanh.f32 %v4280_v9  ;;  %v4409_v15 = vadd.f32 0.5, %v4401_v37  ;;  %5032 = vmatpush.bf16.msrb.mxu1 %v6970_v39  ;;  %v7569_v9 = vld [vmem:[#allocation5 + $0x8c4] sm:$0xf0]  ;;  %v4441_v39 = vld [vmem:[#allocation13 + $0x6] sm:$0x3]  ;;  %v9174_v40 = vperm.slane %v7936_v23, 1 }
 0x900   : > { %7879 = vtanh.f32 %v4282_v25  ;;  %5002 = vmatpush.bf16.msrb.mxu0 %v7102_v5  ;;  %4977 = vmatpush.bf16.msrb.mxu3 %v7006_v24  ;;  %v7094_v56 = vor.u32 %v7569_v9, %v7093_v36  ;;  %v6951_v25 = vld [vmem:[#allocation5 + $0x7a8] sm:$0xf0]  ;;  %v7545_v37 = vld [vmem:[#allocation5 + $0x804] sm:$0xf0]  ;;  %v9176_v6 = vperm.slane %v4441_v39, 0  ;;  %v9178_v17 = vperm.slane %v4441_v39, 1 }
 0x901   : > { %v7062_v5 = vor.u32 %v7561_v46, %v7061_v58  ;;  %v7055_v29 = vld [vmem:[#allocation5 + $0x878] sm:$0xf0]  ;;  %v7574_v4 = vld [vmem:[#allocation5 + $0x8f4] sm:$0xf]  ;;  %v7939_v23 = vld [vmem:[#allocation2 + $0x18] sm:$0xff] }
 0x902   : > { %v7058_v36 = vor.u32 %v7558_v62, %v7055_v29  ;;  %v7119_v9 = vld [vmem:[#allocation5 + $0x8f8] sm:$0xf0]  ;;  %v7554_v22 = vld [vmem:[#allocation5 + $0x854] sm:$0xf] }
 0x903   : > { %5033 = vmatpush.bf16.msrb.mxu1 %v6962_v45  ;;  %v7039_v48 = vld [vmem:[#allocation5 + $0x858] sm:$0xf0]  ;;  %v7570_v43 = vld [vmem:[#allocation5 + $0x8d4] sm:$0xf] }
 0x904   : > { %v7876_v20 = vpop.eup %7875  ;;  %5003 = vmatpush.bf16.msrb.mxu0 %v7094_v56  ;;  %v7103_v32 = vld [vmem:[#allocation5 + $0x8d8] sm:$0xf0] }
 0x905   : > { %v4402_v26 = vmul.f32 0.5, %v7876_v20  ;;  %v7878_v53 = vpop.eup %7877  ;;  %v6954_v20 = vor.u32 %v7532_v49, %v6951_v25  ;;  %v3814_v49 = vadd.f32 %v9098_v21, %v9174_v40  ;;  %v7106_v46 = vor.u32 %v7570_v43, %v7103_v32  ;;  %v7548_v43 = vld [vmem:[#allocation5 + $0x824] sm:$0xf]  ;;  %v7015_v32 = vld [vmem:[#allocation5 + $0x828] sm:$0xf0] }
 0x906   : > { %v7880_v12 = vpop.eup %7879  ;;  %v4417_v55 = vmul.f32 %v7878_v53, %v4409_v15  ;;  %v6998_v15 = vor.u32 %v7545_v37, %v6997_v31  ;;  %v7531_v53 = vld [vmem:[#allocation5 + $0x794] sm:$0xf0]  ;;  %v7122_v31 = vor.u32 %v7574_v4, %v7119_v9 }
 0x907   : > { %v4410_v19 = vadd.f32 0.5, %v4402_v26  ;;  %v6941_v26 = vld [vmem:[#allocation5 + $0x790] sm:$0xf]  ;;  %5034 = vmatpush.bf16.msrb.mxu1 %v6954_v20  ;;  %v7937_v37 = vld [vmem:[#allocation2 + $0x8] sm:$0xff] }
 0x908   : > { %4978 = vmatpush.bf16.msrb.mxu3 %v6998_v15 }
 0x909   : > { %v4418_v52 = vmul.f32 %v7880_v12, %v4410_v19  ;;  %v6942_v19 = vor.u32 %v7531_v53, %v6941_v26  ;;  %v7085_v12 = vld [vmem:[#allocation5 + $0x8b0] sm:$0xf]  ;;  %v7556_v53 = vld [vmem:[#allocation5 + $0x864] sm:$0xf] }
 0x90b   : > { %v4422_v47 = vpack.c.bf16 %v4418_v52, %v4417_v55  ;;  %v7567_v55 = vld [vmem:[#allocation5 + $0x8b4] sm:$0xf0]  ;;  %v7530_v52 = vld [vmem:[#allocation5 + $0x794] sm:$0xf]  ;;  %4948 = vmatpush.bf16.msrb.mxu2 %v6942_v19  ;;  %v7047_v19 = vld [vmem:[#allocation5 + $0x868] sm:$0xf0] }
 0x90c   : > { %v6946_v8 = vor.u32 %v7530_v52, %v6943_v57  ;;  %5087 = vmatpush.bf16.msra.mxu3 %v7122_v31  ;;  %v7050_v21 = vor.u32 %v7556_v53, %v7047_v19  ;;  %v7572_v52 = vld [vmem:[#allocation5 + $0x8e4] sm:$0xf]  ;;  %v7095_v31 = vld [vmem:[#allocation5 + $0x8c8] sm:$0xf0] }
 0x90d   : > { %4550 = vmatmul.bf16.gmra.mxu0 %v4422_v47  ;;  %4579 = vmatmul.bf16.gmra.mxu1 %v4422_v47  ;;  %v7086_v47 = vor.u32 %v7567_v55, %v7085_v12 }
 0x90e   : > { %5035 = vmatpush.bf16.msrb.mxu1 %v6946_v8 }
 0x90f   : > { %5004 = vmatpush.bf16.msrb.mxu0 %v7086_v47  ;;  %4949 = vmatpush.bf16.msrb.mxu2 %v6934_v10  ;;  %v7111_v47 = vld [vmem:[#allocation5 + $0x8e8] sm:$0xf0] }
 0x910   : > { %v7114_v8 = vor.u32 %v7572_v52, %v7111_v47  ;;  %v7550_v47 = vld [vmem:[#allocation5 + $0x834] sm:$0xf] }
 0x912   : > { %5036 = vmatpush.bf16.msrb.mxu1 %v6938_v59  ;;  %5088 = vmatpush.bf16.msra.mxu3 %v7114_v8  ;;  %v7042_v59 = vor.u32 %v7554_v22, %v7039_v48  ;;  %v3824_v8 = vadd.f32 %v9116_v30, %v9174_v40  ;;  %v7566_v22 = vld [vmem:[#allocation5 + $0x8b4] sm:$0xf]  ;;  %v7087_v48 = vld [vmem:[#allocation5 + $0x8b8] sm:$0xf0]  ;;  %v7079_v30 = vld [vmem:[#allocation5 + $0x8a8] sm:$0xf0] }
 0x913   : > { %5005 = vmatpush.bf16.msrb.mxu0 %v7078_v11  ;;  %5058 = vmatpush.bf16.msra.mxu2 %v7058_v36  ;;  %v7031_v36 = vld [vmem:[#allocation5 + $0x848] sm:$0xf0] }
 0x916   : > { %5089 = vmatpush.bf16.msra.mxu3 %v7106_v46 }
 0x917   : > { %5006 = vmatpush.bf16.msrb.mxu0 %v7070_v42  ;;  %5059 = vmatpush.bf16.msra.mxu2 %v7050_v21  ;;  %v3819_v42 = vadd.f32 %v9102_v41, %v9174_v40  ;;  %v7552_v41 = vld [vmem:[#allocation5 + $0x844] sm:$0xf] }
 0x91b   : > { %5007 = vmatpush.bf16.msrb.mxu0 %v7062_v5  ;;  %5060 = vmatpush.bf16.msra.mxu2 %v7042_v59  ;;  %v7090_v59 = vor.u32 %v7566_v22, %v7087_v48  ;;  %v3829_v48 = vadd.f32 %v9129_v13, %v9174_v40 }
 0x95a   : > { %v4536_v45 = vpop.f32.mrf.mxu0  ;;  %v4565_v24 = vpop.f32.mrf.mxu1 }
 0x95b   : > { %v4537_v56 = vadd.f32 %v4536_v45, %v9176_v6  ;;  %v4566_v25 = vadd.f32 %v4565_v24, %v9178_v17 }
 0x95d   : > { %v4585_v20 = vadd.f32 %v7937_v37, %v4537_v56  ;;  %v9184_v15 = vadd.f32 %v4566_v25, %v3814_v49  ;;  %v7034_v56 = vor.u32 %v7552_v41, %v7031_v36  ;;  %v7568_v25 = vld [vmem:[#allocation5 + $0x8c4] sm:$0xf]  ;;  %v7562_v36 = vld [vmem:[#allocation5 + $0x894] sm:$0xf] }
 0x95f   : > { %v4593_v26 = vmul.f32 %v4585_v20, %v8506_v7  ;;  %v7098_v20 = vor.u32 %v7568_v25, %v7095_v31  ;;  %5061 = vmatpush.bf16.msra.mxu2 %v7034_v56  ;;  %v7546_v25 = vld [vmem:[#allocation5 + $0x814] sm:$0xf]  ;;  %v7007_v31 = vld [vmem:[#allocation5 + $0x818] sm:$0xf0] }
 0x961   : > { %4609 = vst [vmem:[#allocation2 + $0x8] sm:$0xff] %v4593_v26  ;;  %5090 = vmatpush.bf16.msra.mxu3 %v7098_v20  ;;  %v7010_v20 = vor.u32 %v7546_v25, %v7007_v31 }
 0x962   : > { %v4538_v12 = vpop.f32.mrf.mxu0  ;;  %v9187_v55 = vpop.f32.mrf.mxu1 }
 0x963   : > { %v4539_v57 = vadd.f32 %v4538_v12, %v9176_v6 }
 0x965   : > { %v4586_v27 = vadd.f32 %v7938_v2, %v4539_v57  ;;  %v7023_v57 = vld [vmem:[#allocation5 + $0x838] sm:$0xf0]  ;;  %5091 = vmatpush.bf16.msra.mxu3 %v7090_v59  ;;  %v7544_v59 = vld [vmem:[#allocation5 + $0x804] sm:$0xf] }
 0x967   : > { %v4594_v60 = vmul.f32 %v4586_v27, %v8540_v63 }
 0x968   : > { %v4617_v4 = vld [vmem:[#allocation2 + $0x4] sm:$0xff] }
 0x969   : > { %4610 = vst [vmem:[#allocation2 + $0x10] sm:$0xff] %v4594_v60  ;;  %v9191_v10 = vpack.c.bf16 %v4594_v60, %v4593_v26  ;;  %v7940_v26 = vld [vmem:[#allocation2 + $0x20] sm:$0xff]  ;;  %v7026_v60 = vor.u32 %v7550_v47, %v7023_v57 }
 0x96a   : > { %v4541_v33 = vpop.f32.mrf.mxu0  ;;  %v4570_v11 = vpop.f32.mrf.mxu1 }
 0x96b   : > { %v4542_v39 = vadd.f32 %v4541_v33, %v9176_v6  ;;  %v4571_v58 = vadd.f32 %v4570_v11, %v9178_v17  ;;  %4979 = vmatmul.bf16.vlgmr.msrb.gmra.mxu3 %v9191_v10  ;;  %5062 = vmatpush.bf16.msra.mxu2 %v7026_v60 }
 0x96d   : > { %v4587_v5 = vadd.f32 %v7939_v23, %v4542_v39  ;;  %v9198_v62 = vadd.f32 %v4571_v58, %v3819_v42  ;;  %v7564_v42 = vld [vmem:[#allocation5 + $0x8a4] sm:$0xf]  ;;  %v7018_v39 = vor.u32 %v7548_v43, %v7015_v32  ;;  %v7941_v58 = vld [vmem:[#allocation2 + $0x28] sm:$0xff]  ;;  %v6999_v43 = vld [vmem:[#allocation5 + $0x808] sm:$0xf0] }
 0x96e   : > { %v7082_v23 = vor.u32 %v7564_v42, %v7079_v30  ;;  %v7002_v32 = vor.u32 %v7544_v59, %v6999_v43  ;;  %v7943_v42 = vld [vmem:[#allocation2 + $0x38] sm:$0xff] }
 0x96f   : > { %v4595_v29 = vmul.f32 %v4587_v5, %v8542_v0  ;;  %5063 = vmatpush.bf16.msra.mxu2 %v7018_v39  ;;  %v7580_v59 = vld [vmem:[#allocation8 + $0x60] sm:$0xff] }
 0x970   : > { %v4618_v45 = vld [vmem:[#allocation2 + $0xc] sm:$0xff]  ;;  %5092 = vmatpush.bf16.msra.mxu3 %v7082_v23 }
 0x971   : > { %4611 = vst [vmem:[#allocation2 + $0x18] sm:$0xff] %v4595_v29  ;;  %v4634_v24 = vpack.c.bf16 %v4618_v45, %v4617_v4 }
 0x972   : > { %v4543_v9 = vpop.f32.mrf.mxu0  ;;  %v9201_v49 = vpop.f32.mrf.mxu1 }
 0x973   : > { %v4544_v37 = vadd.f32 %v4543_v9, %v9176_v6  ;;  %4950 = vmatmul.bf16.vlgmr.msrb.gmra.mxu2 %v4634_v24  ;;  %5037 = vmatmul.bf16.vlgmr.msrb.gmra.mxu1 %v4634_v24  ;;  %v7071_v9 = vld [vmem:[#allocation5 + $0x898] sm:$0xf0] }
 0x974   : > { %5064 = vmatpush.bf16.msra.mxu2 %v7010_v20 }
 0x975   : > { %v4588_v53 = vadd.f32 %v7940_v26, %v4544_v37  ;;  %v7074_v37 = vor.u32 %v7562_v36, %v7071_v9  ;;  %v7942_v26 = vld [vmem:[#allocation2 + $0x30] sm:$0xff] }
 0x977   : > { %v4596_v19 = vmul.f32 %v4588_v53, %v8514_v34  ;;  %5093 = vmatpush.bf16.msra.mxu3 %v7074_v37 }
 0x978   : > { %v4619_v12 = vld [vmem:[#allocation2 + $0x14] sm:$0xff]  ;;  %5065 = vmatpush.bf16.msra.mxu2 %v7002_v32 }
 0x979   : > { %4612 = vst [vmem:[#allocation2 + $0x20] sm:$0xff] %v4596_v19  ;;  %v9205_v21 = vpack.c.bf16 %v4619_v12, %v4618_v45  ;;  %v9207_v52 = vpack.c.bf16 %v4596_v19, %v4595_v29  ;;  %v7560_v19 = vld [vmem:[#allocation5 + $0x884] sm:$0xf] }
 0x97a   : > { %v4546_v2 = vpop.f32.mrf.mxu0  ;;  %v4575_v27 = vpop.f32.mrf.mxu1 }
 0x97b   : > { %v4547_v33 = vadd.f32 %v4546_v2, %v9176_v6  ;;  %v4576_v11 = vadd.f32 %v4575_v27, %v9178_v17  ;;  %5008 = vmatmul.bf16.vlgmr.msrb.gmra.mxu0 %v9205_v21  ;;  %4984 = vmatmul.bf16.gmra.mxu3 %v9207_v52 }
 0x97d   : > { %v4589_v46 = vadd.f32 %v7941_v58, %v4547_v33  ;;  %v9215_v5 = vadd.f32 %v4576_v11, %v3824_v8 }
 0x97f   : > { %v4597_v29 = vmul.f32 %v4589_v46, %v8524_v50 }
 0x980   : > { %v4620_v4 = vld [vmem:[#allocation2 + $0x1c] sm:$0xff] }
 0x981   : > { %4613 = vst [vmem:[#allocation2 + $0x28] sm:$0xff] %v4597_v29  ;;  %v4637_v45 = vpack.c.bf16 %v4620_v4, %v4619_v12  ;;  %v7063_v12 = vld [vmem:[#allocation5 + $0x888] sm:$0xf0] }
 0x982   : > { %v4548_v24 = vpop.f32.mrf.mxu0  ;;  %v9218_v41 = vpop.f32.mrf.mxu1  ;;  %v7066_v57 = vor.u32 %v7560_v19, %v7063_v12  ;;  %v7583_v19 = vld [vmem:[#allocation8 + $0x78] sm:$0xff] }
 0x983   : > { %v4549_v56 = vadd.f32 %v4548_v24, %v9176_v6  ;;  %4955 = vmatmul.bf16.gmra.mxu2 %v4637_v45  ;;  %5042 = vmatmul.bf16.gmra.mxu1 %v4637_v45 }
 0x984   : > { %5094 = vmatpush.bf16.msra.mxu3 %v7066_v57  ;;  %5233 = vmatpush.bf16.msra.mxu0 %v7583_v19  ;;  %v7577_v19 = vld [vmem:[#allocation8 + $0x48] sm:$0xff] }
 0x985   : > { %v4590_v53 = vadd.f32 %v7942_v26, %v4549_v56  ;;  %v4696_v26 = vld [vmem:[#allocation11 + $0xa] sm:$0x3] }
 0x987   : > { %v4598_v47 = vmul.f32 %v4590_v53, %v8516_v35  ;;  %v4698_v53 = vperm.slane %v4696_v26, 0 }
 0x988   : > { %v4621_v8 = vld [vmem:[#allocation2 + $0x24] sm:$0xff] }
 0x989   : > { %4614 = vst [vmem:[#allocation2 + $0x30] sm:$0xff] %v4598_v47  ;;  %v4639_v2 = vpack.c.bf16 %v4621_v8, %v4620_v4  ;;  %v4641_v27 = vpack.c.bf16 %v4598_v47, %v4597_v29  ;;  %v7944_v4 = vld [vmem:[#allocation2 + $0x40] sm:$0xff] }
 0x98a   : > { %v4551_v60 = vpop.f32.mrf.mxu0  ;;  %v4580_v22 = vpop.f32.mrf.mxu1 }
 0x98b   : > { %v4552_v33 = vadd.f32 %v4551_v60, %v9176_v6  ;;  %v4581_v11 = vadd.f32 %v4580_v22, %v9178_v17  ;;  %5013 = vmatmul.bf16.gmra.mxu0 %v4639_v2  ;;  %4989 = vmatmul.bf16.gmra.mxu3 %v4641_v27  ;;  %v7581_v22 = vld [vmem:[#allocation8 + $0x68] sm:$0xff] }
 0x98d   : > { %v4591_v39 = vadd.f32 %v7943_v42, %v4552_v33  ;;  %v9226_v30 = vadd.f32 %v4581_v11, %v3829_v48 }
 0x98f   : > { %v4599_v58 = vmul.f32 %v4591_v39, %v8526_v51 }
 0x990   : > { %v4622_v46 = vld [vmem:[#allocation2 + $0x2c] sm:$0xff] }
 0x991   : > { %4615 = vst [vmem:[#allocation2 + $0x38] sm:$0xff] %v4599_v58  ;;  %v4640_v23 = vpack.c.bf16 %v4622_v46, %v4621_v8 }
 0x992   : > { %v4553_v13 = vpop.f32.mrf.mxu0 }
 0x993   : > { %v4554_v29 = vadd.f32 %v4553_v13, %v9176_v6  ;;  %4960 = vmatmul.bf16.gmra.mxu2 %v4640_v23  ;;  %5047 = vmatmul.bf16.gmra.mxu1 %v4640_v23 }
 0x995   : > { %v4592_v45 = vadd.f32 %v7944_v4, %v4554_v29  ;;  %v9242_v4 = vpop.f32.mrf.mxu1 }
 0x997   : > { %v4600_v24 = vmul.f32 %v4592_v45, %v8504_v44 }
 0x998   : > { %v4623_v36 = vld [vmem:[#allocation2 + $0x34] sm:$0xff] }
 0x999   : > { %4616 = vst [vmem:[#allocation2 + $0x40] sm:$0xff] %v4600_v24  ;;  %v4642_v9 = vpack.c.bf16 %v4623_v36, %v4622_v46  ;;  %v4644_v56 = vpack.c.bf16 %v4600_v24, %v4599_v58  ;;  %v7579_v58 = vld [vmem:[#allocation8 + $0x58] sm:$0xff] }
 0x99b   : > { %5018 = vmatmul.bf16.gmra.mxu0 %v4642_v9  ;;  %4994 = vmatmul.bf16.gmra.mxu3 %v4644_v56 }
 0x9a0   : > { %v4624_v25 = vld [vmem:[#allocation2 + $0x3c] sm:$0xff]  ;;  %v4633_v37 = vld [vmem:[#allocation2 + $0x44] sm:$0xff] }
 0x9a1   : > { %v4643_v31 = vpack.c.bf16 %v4624_v25, %v4623_v36  ;;  %v4645_v20 = vpack.c.bf16 %v4633_v37, %v4624_v25 }
 0x9a3   : > { %4965 = vmatmul.bf16.gmra.mxu2 %v4643_v31  ;;  %5052 = vmatmul.bf16.gmra.mxu1 %v4643_v31 }
 0x9ab   : > { %5023 = vmatmul.bf16.gmra.mxu0 %v4645_v20  ;;  %5095 = vmatmul.bf16.vlgmr.msra.gmra.mxu3 %v9205_v21  ;;  %v7582_v21 = vld [vmem:[#allocation8 + $0x70] sm:$0xff] }
 0x9ac   : > { %5234 = vmatpush.bf16.msra.mxu0 %v7582_v21 }
 0x9b0   : > { %5235 = vmatpush.bf16.msra.mxu0 %v7581_v22 }
 0x9b3   : > { %5066 = vmatmul.bf16.vlgmr.msra.gmra.mxu2 %v9191_v10 }
 0x9b4   : > { %5236 = vmatpush.bf16.msra.mxu0 %v7580_v59 }
 0x9b8   : > { %5237 = vmatpush.bf16.msra.mxu0 %v7579_v58 }
 0x9bb   : > { %5100 = vmatmul.bf16.gmra.mxu3 %v4639_v2 }
 0x9c3   : > { %5071 = vmatmul.bf16.gmra.mxu2 %v9207_v52 }
 0x9cb   : > { %5105 = vmatmul.bf16.gmra.mxu3 %v4642_v9 }
 0x9d3   : > { %5076 = vmatmul.bf16.gmra.mxu2 %v4641_v27 }
 0x9db   : > { %5110 = vmatmul.bf16.gmra.mxu3 %v4645_v20  ;;  %v7578_v20 = vld [vmem:[#allocation8 + $0x50] sm:$0xff] }
 0x9dc   : > { %5238 = vmatpush.bf16.msra.mxu0 %v7578_v20 }
 0x9e0   : > { %5239 = vmatpush.bf16.msra.mxu0 %v7577_v19 }
 0x9e3   : > { %5081 = vmatmul.bf16.gmra.mxu2 %v4644_v56 }
 0x9ee   : > { %v4980_v6 = vpop.f32.mrf.mxu3 }
 0x9f0   : > { %v5038_v56 = vpop.f32.mrf.mxu1 }
 0x9f6   : > { %v4951_v12 = vpop.f32.mrf.mxu2  ;;  %v4982_v47 = vpop.f32.mrf.mxu3 }
 0x9f7   : > { %v4952_v57 = vadd.f32 %v4951_v12, %v4698_v53 }
 0x9f8   : > { %v5009_v12 = vpop.f32.mrf.mxu0 }
 0x9f9   : > { %v9234_v8 = vadd.f32 %v4980_v6, %v4952_v57 }
 0x9fe   : > { %v4953_v60 = vpop.f32.mrf.mxu2  ;;  %v4985_v10 = vpop.f32.mrf.mxu3 }
 0x9ff   : > { %v4954_v2 = vadd.f32 %v4953_v60, %v4698_v53 }
 0xa00   : > { %v5011_v59 = vpop.f32.mrf.mxu0 }
 0xa01   : > { %v4983_v52 = vadd.f32 %v4982_v47, %v4954_v2  ;;  %v5040_v47 = vpop.f32.mrf.mxu1  ;;  %v9248_v2 = vperm.slane %v4696_v26, 1 }
 0xa06   : > { %v4956_v27 = vpop.f32.mrf.mxu2  ;;  %v4987_v48 = vpop.f32.mrf.mxu3 }
 0xa07   : > { %v4957_v33 = vadd.f32 %v4956_v27, %v4698_v53  ;;  %v5039_v27 = vadd.f32 %v5038_v56, %v9248_v2 }
 0xa08   : > { %v5014_v26 = vpop.f32.mrf.mxu0 }
 0xa09   : > { %v9236_v11 = vadd.f32 %v4985_v10, %v4957_v33  ;;  %v7576_v10 = vld [vmem:[#allocation8 + $0x40] sm:$0xff] }
 0xa0a   : > { %5240 = vmatpush.bf16.msra.mxu0 %v7576_v10 }
 0xa0e   : > { %v4958_v43 = vpop.f32.mrf.mxu2  ;;  %v4990_v32 = vpop.f32.mrf.mxu3 }
 0xa0f   : > { %v4959_v42 = vadd.f32 %v4958_v43, %v4698_v53 }
 0xa10   : > { %v5016_v10 = vpop.f32.mrf.mxu0 }
 0xa11   : > { %v9238_v39 = vadd.f32 %v4987_v48, %v4959_v42 }
 0xa16   : > { %v4961_v46 = vpop.f32.mrf.mxu2  ;;  %v4992_v23 = vpop.f32.mrf.mxu3 }
 0xa17   : > { %v4962_v13 = vadd.f32 %v4961_v46, %v4698_v53  ;;  %v5041_v46 = vadd.f32 %v5040_v47, %v9248_v2 }
 0xa19   : > { %v9240_v29 = vadd.f32 %v4990_v32, %v4962_v13  ;;  %v5043_v32 = vpop.f32.mrf.mxu1 }
 0xa1e   : > { %v4963_v45 = vpop.f32.mrf.mxu2  ;;  %v4995_v24 = vpop.f32.mrf.mxu3 }
 0xa1f   : > { %v4964_v36 = vadd.f32 %v4963_v45, %v4698_v53 }
 0xa21   : > { %v9244_v9 = vadd.f32 %v4992_v23, %v4964_v36 }
 0xa26   : > { %v4966_v25 = vpop.f32.mrf.mxu2  ;;  %v4997_v31 = vpop.f32.mrf.mxu3 }
 0xa27   : > { %v4967_v37 = vadd.f32 %v4966_v25, %v4698_v53  ;;  %v5010_v25 = vadd.f32 %v5009_v12, %v9234_v8 }
 0xa29   : > { %v9246_v6 = vadd.f32 %v4995_v24, %v4967_v37  ;;  %v5045_v24 = vpop.f32.mrf.mxu1  ;;  %v5044_v37 = vadd.f32 %v5043_v32, %v9248_v2 }
 0xa2a   : > { %v5046_v8 = vadd.f32 %v5045_v24, %v9248_v2 }
 0xa2e   : > { %v4968_v57 = vpop.f32.mrf.mxu2  ;;  %v5096_v21 = vpop.f32.mrf.mxu3 }
 0xa2f   : > { %v4969_v60 = vadd.f32 %v4968_v57, %v4698_v53 }
 0xa31   : > { %v9250_v22 = vadd.f32 %v4997_v31, %v4969_v60  ;;  %v5012_v31 = vadd.f32 %v5011_v59, %v4983_v52 }
 0xa36   : > { %v5067_v48 = vpop.f32.mrf.mxu2  ;;  %v5098_v33 = vpop.f32.mrf.mxu3 }
 0xa37   : > { %v5068_v43 = vadd.f32 %v5067_v48, %v5039_v27  ;;  %v5048_v48 = vpop.f32.mrf.mxu1 }
 0xa38   : > { %v5049_v24 = vadd.f32 %v5048_v48, %v9248_v2 }
 0xa39   : > { %v5097_v42 = vadd.f32 %v5096_v21, %v5068_v43 }
 0xa3b   : > { %v5124_v58 = vmul.f32 0.5, %v5097_v42 }
 0xa3d   : > { %7881 = vtanh.f32 %v5124_v58 }
 0xa3e   : > { %v5069_v23 = vpop.f32.mrf.mxu2  ;;  %v5101_v13 = vpop.f32.mrf.mxu3 }
 0xa3f   : > { %v5070_v53 = vadd.f32 %v5069_v23, %v5041_v46 }
 0xa41   : > { %v5099_v45 = vadd.f32 %v5098_v33, %v5070_v53 }
 0xa43   : > { %v5125_v36 = vmul.f32 0.5, %v5099_v45  ;;  %v7882_v56 = vpop.eup %7881 }
 0xa44   : > { %v5140_v57 = vmul.f32 0.5, %v7882_v56  ;;  %v5017_v56 = vadd.f32 %v5016_v10, %v9238_v39 }
 0xa45   : > { %7883 = vtanh.f32 %v5125_v36  ;;  %v5015_v36 = vadd.f32 %v5014_v26, %v9236_v11 }
 0xa46   : > { %v5072_v20 = vpop.f32.mrf.mxu2  ;;  %7885 = vtanh.f32 %v5010_v25  ;;  %v5103_v47 = vpop.f32.mrf.mxu3  ;;  %v5148_v33 = vadd.f32 0.5, %v5140_v57 }
 0xa47   : > { %v5073_v19 = vadd.f32 %v5072_v20, %v5044_v37  ;;  %7887 = vtanh.f32 %v5012_v31  ;;  %v5019_v31 = vpop.f32.mrf.mxu0  ;;  %v5050_v37 = vpop.f32.mrf.mxu1 }
 0xa48   : > { %v5051_v26 = vadd.f32 %v5050_v37, %v9248_v2 }
 0xa49   : > { %v5102_v21 = vadd.f32 %v5101_v13, %v5073_v19 }
 0xa4b   : > { %v7884_v60 = vpop.eup %7883  ;;  %v5126_v27 = vmul.f32 0.5, %v5102_v21 }
 0xa4c   : > { %v5141_v43 = vmul.f32 0.5, %v7884_v60  ;;  %v7886_v12 = vpop.eup %7885 }
 0xa4d   : > { %v7888_v32 = vpop.eup %7887  ;;  %7889 = vtanh.f32 %v5126_v27  ;;  %v5156_v58 = vmul.f32 %v7886_v12, %v5148_v33 }
 0xa4e   : > { %v5149_v52 = vadd.f32 0.5, %v5141_v43  ;;  %v5074_v59 = vpop.f32.mrf.mxu2  ;;  %v5106_v45 = vpop.f32.mrf.mxu3 }
 0xa4f   : > { %v5075_v42 = vadd.f32 %v5074_v59, %v5046_v8  ;;  %v5021_v12 = vpop.f32.mrf.mxu0 }
 0xa50   : > { %v5157_v46 = vmul.f32 %v7888_v32, %v5149_v52  ;;  %v5053_v52 = vpop.f32.mrf.mxu1 }
 0xa51   : > { %v5104_v23 = vadd.f32 %v5103_v47, %v5075_v42 }
 0xa52   : > { %v5164_v53 = vpack.c.bf16 %v5157_v46, %v5156_v58 }
 0xa53   : > { %v5127_v13 = vmul.f32 0.5, %v5104_v23  ;;  %v7890_v25 = vpop.eup %7889  ;;  %v5020_v23 = vadd.f32 %v5019_v31, %v9240_v29 }
 0xa54   : > { %5241 = vmatmul.bf16.vlgmr.msra.gmra.mxu0 %v5164_v53  ;;  %v5142_v57 = vmul.f32 0.5, %v7890_v25  ;;  %v7591_v53 = vld [vmem:[%s9374_s6 + $0x78] sm:$0xff] }
 0xa55   : > { %7891 = vtanh.f32 %v5127_v13  ;;  %v5022_v13 = vadd.f32 %v5021_v12, %v9244_v9  ;;  %5365 = vmatpush.bf16.msra.mxu1 %v7591_v53  ;;  %v7589_v9 = vld [vmem:[%s9374_s6 + $0x68] sm:$0xff]  ;;  %v7586_v53 = vld [vmem:[%s9374_s6 + $0x50] sm:$0xff] }
 0xa56   : > { %v5077_v20 = vpop.f32.mrf.mxu2  ;;  %7893 = vtanh.f32 %v5015_v36  ;;  %v5150_v27 = vadd.f32 0.5, %v5142_v57  ;;  %v5108_v11 = vpop.f32.mrf.mxu3  ;;  %v5054_v36 = vadd.f32 %v5053_v52, %v9248_v2 }
 0xa57   : > { %v5078_v19 = vadd.f32 %v5077_v20, %v5049_v24  ;;  %7895 = vtanh.f32 %v5017_v56  ;;  %v7590_v24 = vld [vmem:[%s9374_s6 + $0x70] sm:$0xff]  ;;  %v5024_v20 = vpop.f32.mrf.mxu0 }
 0xa59   : > { %v5107_v47 = vadd.f32 %v5106_v45, %v5078_v19  ;;  %v5055_v19 = vpop.f32.mrf.mxu1  ;;  %5366 = vmatpush.bf16.msra.mxu1 %v7590_v24 }
 0xa5b   : > { %v7892_v21 = vpop.eup %7891  ;;  %v5128_v60 = vmul.f32 0.5, %v5107_v47 }
 0xa5c   : > { %v5143_v33 = vmul.f32 0.5, %v7892_v21  ;;  %v7894_v43 = vpop.eup %7893 }
 0xa5d   : > { %v7896_v48 = vpop.eup %7895  ;;  %7897 = vtanh.f32 %v5128_v60  ;;  %v5158_v59 = vmul.f32 %v7894_v43, %v5150_v27  ;;  %v5056_v27 = vadd.f32 %v5055_v19, %v9248_v2  ;;  %5367 = vmatpush.bf16.msra.mxu1 %v7589_v9  ;;  %v7588_v43 = vld [vmem:[%s9374_s6 + $0x60] sm:$0xff]  ;;  %v7587_v2 = vld [vmem:[%s9374_s6 + $0x58] sm:$0xff]  ;;  %v4568_v9 = vadd.f32 %v9187_v55, %v9178_v17 }
 0xa5e   : > { %v5151_v39 = vadd.f32 0.5, %v5143_v33  ;;  %v5079_v10 = vpop.f32.mrf.mxu2  ;;  %v5111_v56 = vpop.f32.mrf.mxu3  ;;  %v4573_v55 = vadd.f32 %v9201_v49, %v9178_v17  ;;  %v4578_v49 = vadd.f32 %v9218_v41, %v9178_v17  ;;  %v4583_v41 = vadd.f32 %v9242_v4, %v9178_v17 }
 0xa5f   : > { %v5080_v8 = vadd.f32 %v5079_v10, %v5051_v26 }
 0xa60   : > { %v5159_v32 = vmul.f32 %v7896_v48, %v5151_v39 }
 0xa61   : > { %v5109_v42 = vadd.f32 %v5108_v11, %v5080_v8  ;;  %5368 = vmatpush.bf16.msra.mxu1 %v7588_v43 }
 0xa62   : > { %v5165_v58 = vpack.c.bf16 %v5159_v32, %v5158_v59 }
 0xa63   : > { %v5129_v46 = vmul.f32 0.5, %v5109_v42  ;;  %v7898_v45 = vpop.eup %7897  ;;  %v5025_v42 = vadd.f32 %v5024_v20, %v9246_v6  ;;  %v7584_v20 = vld [vmem:[%s9374_s6 + $0x40] sm:$0xff] }
 0xa64   : > { %5246 = vmatmul.bf16.gmra.mxu0 %v5165_v58  ;;  %v5144_v29 = vmul.f32 0.5, %v7898_v45  ;;  %v5026_v58 = vpop.f32.mrf.mxu0 }
 0xa65   : > { %7899 = vtanh.f32 %v5129_v46  ;;  %5369 = vmatpush.bf16.msra.mxu1 %v7587_v2 }
 0xa66   : > { %v5082_v25 = vpop.f32.mrf.mxu2  ;;  %7901 = vtanh.f32 %v5020_v23  ;;  %v5152_v21 = vadd.f32 0.5, %v5144_v29  ;;  %v5113_v12 = vpop.f32.mrf.mxu3  ;;  %v5027_v23 = vadd.f32 %v5026_v58, %v9250_v22  ;;  %v7585_v22 = vld [vmem:[%s9374_s6 + $0x48] sm:$0xff] }
 0xa67   : > { %v5083_v37 = vadd.f32 %v5082_v25, %v5054_v36  ;;  %7903 = vtanh.f32 %v5022_v13 }
 0xa69   : > { %v5112_v31 = vadd.f32 %v5111_v56, %v5083_v37  ;;  %5370 = vmatpush.bf16.msra.mxu1 %v7586_v53 }
 0xa6b   : > { %v7900_v57 = vpop.eup %7899  ;;  %v5130_v47 = vmul.f32 0.5, %v5112_v31 }
 0xa6c   : > { %v5145_v60 = vmul.f32 0.5, %v7900_v57  ;;  %v7902_v33 = vpop.eup %7901  ;;  %v3816_v57 = vadd.f32 %v9100_v54, %v9174_v40  ;;  %v3821_v54 = vadd.f32 %v9106_v18, %v9174_v40  ;;  %v3826_v18 = vadd.f32 %v9122_v61, %v9174_v40 }
 0xa6d   : > { %v7904_v39 = vpop.eup %7903  ;;  %7905 = vtanh.f32 %v5130_v47  ;;  %v5160_v48 = vmul.f32 %v7902_v33, %v5152_v21  ;;  %5371 = vmatpush.bf16.msra.mxu1 %v7585_v22  ;;  %v7719_v21 = vld [vmem:[#allocation14 + $0x1] ss:$0 sm:$0xff]  ;;  %v3831_v61 = vadd.f32 %v9136_v16, %v9174_v40  ;;  %v5419_v40 = vpop.permute.xlu1 %5418 }
 0xa6e   : > { %v5153_v11 = vadd.f32 0.5, %v5145_v60  ;;  %v5084_v26 = vpop.f32.mrf.mxu2  ;;  %v4602_v60 = vadd.f32 %v4568_v9, %v3816_v57 }
 0xa6f   : > { %v5085_v10 = vadd.f32 %v5084_v26, %v5056_v27 }
 0xa70   : > { %v5161_v8 = vmul.f32 %v7904_v39, %v5153_v11 }
 0xa71   : > { %v5114_v52 = vadd.f32 %v5113_v12, %v5085_v10  ;;  %5372 = vmatpush.bf16.msra.mxu1 %v7584_v20 }
 0xa72   : > { %v5166_v59 = vpack.c.bf16 %v5161_v8, %v5160_v48  ;;  %v4604_v8 = vadd.f32 %v4573_v55, %v3821_v54 }
 0xa73   : > { %v5131_v32 = vmul.f32 0.5, %v5114_v52  ;;  %v7906_v46 = vpop.eup %7905 }
 0xa74   : > { %5251 = vmatmul.bf16.gmra.mxu0 %v5166_v59  ;;  %v5146_v45 = vmul.f32 0.5, %v7906_v46 }
 0xa75   : > { %7907 = vtanh.f32 %v5131_v32 }
 0xa76   : > { %7909 = vtanh.f32 %v5025_v42  ;;  %v5154_v36 = vadd.f32 0.5, %v5146_v45 }
 0xa77   : > { %7911 = vtanh.f32 %v5027_v23  ;;  %v4606_v23 = vadd.f32 %v4578_v49, %v3826_v18 }
 0xa7b   : > { %v7908_v13 = vpop.eup %7907 }
 0xa7c   : > { %v5147_v25 = vmul.f32 0.5, %v7908_v13  ;;  %v7910_v56 = vpop.eup %7909 }
 0xa7d   : > { %v7912_v24 = vpop.eup %7911  ;;  %v5162_v37 = vmul.f32 %v7910_v56, %v5154_v36 }
 0xa7e   : > { %v5155_v6 = vadd.f32 0.5, %v5147_v25 }
 0xa80   : > { %v5163_v29 = vmul.f32 %v7912_v24, %v5155_v6 }
 0xa82   : > { %v5167_v31 = vpack.c.bf16 %v5163_v29, %v5162_v37  ;;  %v4608_v37 = vadd.f32 %v4583_v41, %v3831_v61 }
 0xa84   : > { %5256 = vmatmul.bf16.gmra.mxu0 %v5167_v31 }
 0xad1   : > { %v5242_v19 = vpop.f32.mrf.mxu0 }
 0xad2   : > { %v5262_v47 = vadd.f32 %v5242_v19, %v9184_v15 }
 0xad4   : > { %v5275_v33 = vadd.f32 %v7719_v21, %v5262_v47  ;;  %v7720_v47 = vld [vmem:[#allocation16 + $0x1] ss:$0 sm:$0xff] }
 0xad6   : > { %v5283_v43 = vmul.f32 %v5275_v33, %v8506_v7 }
 0xad9   : > { %v5244_v27 = vpop.f32.mrf.mxu0 }
 0xada   : > { %v5263_v11 = vadd.f32 %v5244_v27, %v4602_v60 }
 0xadc   : > { %v5276_v26 = vadd.f32 %v7719_v21, %v5263_v11  ;;  %v5421_v11 = vpop.permute.xlu2 %5420 }
 0xade   : > { %v5284_v39 = vmul.f32 %v5276_v26, %v8540_v63 }
 0xae0   : > { %v5291_v10 = vpack.c.bf16 %v5284_v39, %v5283_v43 }
 0xae1   : > { %v5247_v48 = vpop.f32.mrf.mxu0 }
 0xae2   : > { %5373 = vmatmul.bf16.vlgmr.msra.gmra.mxu1 %v5291_v10  ;;  %v5264_v15 = vadd.f32 %v5247_v48, %v9198_v62  ;;  %v5423_v48 = vpop.permute.xlu0 %5422 }
 0xae4   : > { %v5277_v52 = vadd.f32 %v7719_v21, %v5264_v15 }
 0xae6   : > { %v5285_v32 = vmul.f32 %v5277_v52, %v8542_v0 }
 0xae9   : > { %v5249_v12 = vpop.f32.mrf.mxu0 }
 0xaea   : > { %v5265_v59 = vadd.f32 %v5249_v12, %v4604_v8  ;;  %v5425_v8 = vpop.permute.xlu1 %5424  ;;  %v5429_v49 = vpop.permute.xlu0 %5428 }
 0xaec   : > { %v5278_v2 = vadd.f32 %v7719_v21, %v5265_v59 }
 0xaee   : > { %v5286_v42 = vmul.f32 %v5278_v2, %v8514_v34  ;;  %v5427_v2 = vpop.permute.xlu2 %5426 }
 0xaf0   : > { %v5292_v58 = vpack.c.bf16 %v5286_v42, %v5285_v32 }
 0xaf1   : > { %v5252_v46 = vpop.f32.mrf.mxu0 }
 0xaf2   : > { %5378 = vmatmul.bf16.gmra.mxu1 %v5292_v58  ;;  %v5266_v62 = vadd.f32 %v5252_v46, %v9215_v5  ;;  %v9407_v58 = vld [vmem:[#allocation23_spill] sm:$0xff] }
 0xaf4   : > { %v5279_v45 = vadd.f32 %v7719_v21, %v5266_v62 }
 0xaf6   : > { %v5287_v25 = vmul.f32 %v5279_v45, %v8524_v50  ;;  %v5431_v45 = vpop.permute.xlu1 %5430 }
 0xaf9   : > { %v5254_v53 = vpop.f32.mrf.mxu0 }
 0xafa   : > { %v5267_v13 = vadd.f32 %v5254_v53, %v4606_v23  ;;  %v9408_v23 = vld [vmem:[#allocation22_spill] sm:$0xff] }
 0xafc   : > { %v5280_v36 = vadd.f32 %v7719_v21, %v5267_v13 }
 0xafe   : > { %v5288_v56 = vmul.f32 %v5280_v36, %v8516_v35 }
 0xb00   : > { %v5293_v6 = vpack.c.bf16 %v5288_v56, %v5287_v25  ;;  %v9409_v56 = vld [vmem:[#allocation24_spill] sm:$0xff] }
 0xb01   : > { %v5257_v24 = vpop.f32.mrf.mxu0 }
 0xb02   : > { %5383 = vmatmul.bf16.gmra.mxu1 %v5293_v6  ;;  %v5268_v5 = vadd.f32 %v5257_v24, %v9226_v30  ;;  %v5433_v24 = vpop.permute.xlu2 %5432 }
 0xb04   : > { %v5281_v31 = vadd.f32 %v7719_v21, %v5268_v5 }
 0xb06   : > { %v5289_v19 = vmul.f32 %v5281_v31, %v8526_v51 }
 0xb09   : > { %v5259_v29 = vpop.f32.mrf.mxu0 }
 0xb0a   : > { %v5269_v22 = vadd.f32 %v5259_v29, %v4608_v37 }
 0xb0c   : > { %v5282_v20 = vadd.f32 %v7719_v21, %v5269_v22 }
 0xb0e   : > { %v5290_v9 = vmul.f32 %v5282_v20, %v8504_v44 }
 0xb10   : > { %v5294_v57 = vpack.c.bf16 %v5290_v9, %v5289_v19 }
 0xb12   : > { %5388 = vmatmul.bf16.gmra.mxu1 %v5294_v57 }
 0xb5f   : > { %v5374_v60 = vpop.f32.mrf.mxu1 }
 0xb60   : > { %v5375_v17 = vadd.f32 %v7720_v47, %v5374_v60 }
 0xb62   : > { %v5394_v4 = vmul.f32 %v5375_v17, %v8506_v7 }
 0xb64   : > { %v5402_v16 = vadd.f32 %v5394_v4, %v8510_v14 }
 0xb66   : > { %v5442_v30 = vsel %vm611_vm1, %v5402_v16, %v5419_v40 }
 0xb67   : > { %5451 = vst.msk [vmem:[%s9324_s25] sm:$0xff] %vm5450_vm2, %v5442_v30  ;;  %v5376_v21 = vpop.f32.mrf.mxu1 }
 0xb68   : > { %v5377_v27 = vadd.f32 %v7720_v47, %v5376_v21 }
 0xb6a   : > { %v5395_v7 = vmul.f32 %v5377_v27, %v8540_v63 }
 0xb6c   : > { %v5403_v33 = vadd.f32 %v5395_v7, %v8546_v1 }
 0xb6e   : > { %v5443_v26 = vsel %vm611_vm1, %v5403_v33, %v5421_v11 }
 0xb6f   : > { %5452 = vst.msk [vmem:[%s9324_s25 + $0x8] sm:$0xff] %vm5450_vm2, %v5443_v26  ;;  %v5379_v14 = vpop.f32.mrf.mxu1 }
 0xb70   : > { %v5380_v43 = vadd.f32 %v7720_v47, %v5379_v14 }
 0xb72   : > { %v5396_v39 = vmul.f32 %v5380_v43, %v8542_v0 }
 0xb74   : > { %v5404_v10 = vadd.f32 %v5396_v39, %v8550_v3 }
 0xb76   : > { %v5444_v55 = vsel %vm611_vm1, %v5404_v10, %v5423_v48 }
 0xb77   : > { %5453 = vst.msk [vmem:[%s9324_s25 + $0x10] sm:$0xff] %vm5450_vm2, %v5444_v55  ;;  %v5381_v63 = vpop.f32.mrf.mxu1 }
 0xb78   : > { %v5382_v1 = vadd.f32 %v7720_v47, %v5381_v63 }
 0xb7a   : > { %v5397_v54 = vmul.f32 %v5382_v1, %v8514_v34 }
 0xb7c   : > { %v5405_v15 = vadd.f32 %v5397_v54, %v8520_v38 }
 0xb7e   : > { %v5445_v12 = vsel %vm611_vm1, %v5405_v15, %v5425_v8 }
 0xb7f   : > { %5454 = vst.msk [vmem:[%s9324_s25 + $0x18] sm:$0xff] %vm5450_vm2, %v5445_v12  ;;  %v5384_v0 = vpop.f32.mrf.mxu1 }
 0xb80   : > { %v5385_v3 = vadd.f32 %v7720_v47, %v5384_v0 }
 0xb82   : > { %v5398_v52 = vmul.f32 %v5385_v3, %v8524_v50 }
 0xb84   : > { %v5406_v59 = vadd.f32 %v5398_v52, %v8564_v28 }
 0xb86   : > { %v5446_v32 = vsel %vm611_vm1, %v5406_v59, %v5427_v2 }
 0xb87   : > { %5455 = vst.msk [vmem:[%s9324_s25 + $0x20] sm:$0xff] %vm5450_vm2, %v5446_v32  ;;  %v5386_v34 = vpop.f32.mrf.mxu1 }
 0xb88   : > { %v5387_v38 = vadd.f32 %v7720_v47, %v5386_v34 }
 0xb8a   : > { %v5399_v42 = vmul.f32 %v5387_v38, %v8516_v35 }
 0xb8c   : > { %v5407_v46 = vadd.f32 %v5399_v42, %v9407_v58 }
 0xb8e   : > { %v5447_v18 = vsel %vm611_vm1, %v5407_v46, %v5429_v49 }
 0xb8f   : > { %5456 = vst.msk [vmem:[%s9324_s25 + $0x28] sm:$0xff] %vm5450_vm2, %v5447_v18  ;;  %v5389_v50 = vpop.f32.mrf.mxu1 }
 0xb90   : > { %v5390_v28 = vadd.f32 %v7720_v47, %v5389_v50 }
 0xb92   : > { %v5400_v62 = vmul.f32 %v5390_v28, %v8526_v51 }
 0xb94   : > { %v5408_v53 = vadd.f32 %v5400_v62, %v9408_v23 }
 0xb96   : > { %v5448_v13 = vsel %vm611_vm1, %v5408_v53, %v5431_v45 }
 0xb97   : > { %5457 = vst.msk [vmem:[%s9324_s25 + $0x30] sm:$0xff] %vm5450_vm2, %v5448_v13  ;;  %v5391_v35 = vpop.f32.mrf.mxu1 }
 0xb98   : > { %v5392_v36 = vadd.f32 %v7720_v47, %v5391_v35 }
 0xb9a   : > { %v5401_v25 = vmul.f32 %v5392_v36, %v8504_v44 }
 0xb9c   : > { %v5409_v6 = vadd.f32 %v5401_v25, %v9409_v56 }
 0xb9e   : > { %v5449_v41 = vsel %vm611_vm1, %v5409_v6, %v5433_v24 }
 0xb9f   : > { %5458 = vst.msk [vmem:[%s9324_s25 + $0x38] sm:$0xff] %vm5450_vm2, %v5449_v41 }
 0xba0 PF: > { %s27_s21 = sadd.s32 1, %s8241_s21  }
 0xba1   : > { %p24_p7 = scmp.ge.s32.totalorder %s27_s21, 4  }
 0xba3   :  { %26 = sbr.rel (!%p24_p7) target bundleno = 8 (0x8), region = 160 }
 0xba8   :  { %5480 = vsyncpa [#allocation4], 1 }
 0xba9   :  { %5482 = vsyncpa [#allocation4 + $0x1], 1 }
 0xbaa   :  { %5483 = vsyncpa [#allocation6], 1 }
 0xbab   :  { %5484 = vsyncpa [#allocation9], 1 }
 0xbac   :  { %5485 = vsyncpa [#allocation12], 1 }
 0xbad   :  { %5486 = vsyncpa [#allocation15], 1 }

</bundles_post_ra>
